<compile_context>
chip_gen: v7x
topology: tpu7x:2x2x1
jax: 0.10.0
libtpu: 0.0.40
codegen_flags: <defaults>
</compile_context>

<pallas_src>
import functools

import numpy as np
import jax
import jax.numpy as jnp
from jax.experimental import pallas as pl
from jax.experimental.pallas import tpu as pltpu

KSIZE = 4
LEAKY_SLOPE = 0.2
BN_EPS = 1e-5
ACT_DTYPE = jnp.bfloat16          # intermediate activation storage dtype
LANE_MULT = 128                   # pad activation lane widths to multiples of this

# (stride, pad, batchnorm, activation) of the five Conv2d(4x4, bias=False)
# stages of the DCGAN Discriminator.
LAYERS = (
    (2, 0, False, "leaky"),
    (2, 2, True, "leaky"),
    (2, 1, True, "leaky"),
    (2, 1, True, "leaky"),
    (1, 0, False, "sigmoid"),
)


def _round_up(x, m):
    return ((x + m - 1) // m) * m


def _ceil_even(x):
    return x + (x % 2)


# --------------------------------------------------------------------------
# Fused kernel
# --------------------------------------------------------------------------
def _dcgan_disc_kernel(*refs, batch, metas, n_tensors):
    n_in = 1 + n_tensors
    in_refs = refs[:n_in]                 # [paired image] + prepared weights
    out_ref = refs[n_in]                  # (batch, 1) f32
    bufs = refs[n_in + 1:]                # bf16 activation buffers, layers 2..5

    # Zero ONLY the H-zero-padding rows of each intermediate buffer; the
    # interior rows are fully overwritten by the producing layer below.
    for li, buf in enumerate(bufs):
        nxt = metas[li + 1]
        pad, h_buf, lanes = nxt["pad"], nxt["h_buf"], nxt["lanes_in"]
        hi_start = pad + metas[li]["h_out"]
        if pad > 0:
            buf[:, :pad, :] = jnp.zeros((batch, pad, lanes), ACT_DTYPE)
        if hi_start < h_buf:
            buf[:, hi_start:, :] = jnp.zeros(
                (batch, h_buf - hi_start, lanes), ACT_DTYPE)

    src = in_refs[0]                      # (batch, H/2, 2*W*C) bf16 paired image
    ti = 1
    n_layers = len(metas)
    for li, m in enumerate(metas):
        if li < n_layers - 1:
            # --- stride-2 conv: two lane-dense bf16 GEMMs, batch folded in M.
            band_lo = in_refs[ti][...]            # (2*L_in, L_out) bf16
            band_hi = in_refs[ti + 1][...]
            ti += 2
            ho, l_in, l_out = m["h_out"], m["lanes_in"], m["lanes_out"]

            x = src[...]                          # (batch, h_buf, l_in) bf16
            if m["paired_input"]:
                xp = x                            # image pre-paired in wrapper
            else:
                # pair adjacent padded rows into lanes: (b, h, L) -> (b, h/2, 2L)
                xp = x.reshape(batch, m["h_buf"] // 2, 2 * l_in)
            lo = xp[:, 0:ho, :].reshape(batch * ho, 2 * l_in)
            hi = xp[:, 1:ho + 1, :].reshape(batch * ho, 2 * l_in)
            y = (jnp.dot(lo, band_lo, preferred_element_type=jnp.float32)
                 + jnp.dot(hi, band_hi, preferred_element_type=jnp.float32))

            # --- training-mode BatchNorm2d via accumulated moments ----------
            if m["bn"]:
                sel = in_refs[ti][...]            # (L_out, C) lane -> channel
                selt = in_refs[ti + 1][...]       # (C, L_out) channel -> lane
                gamma = in_refs[ti + 2][...]      # (1, C)
                beta = in_refs[ti + 3][...]       # (1, C)
                ti += 4
                cnt = float(batch * ho * m["w_out"])
                s1 = jnp.sum(y, axis=0, keepdims=True)
                s2 = jnp.sum(y * y, axis=0, keepdims=True)
                mean_c = jnp.dot(s1, sel, preferred_element_type=jnp.float32) / cnt
                ex2_c = jnp.dot(s2, sel, preferred_element_type=jnp.float32) / cnt
                inv_c = jax.lax.rsqrt(ex2_c - mean_c * mean_c + BN_EPS)
                scale_c = gamma * inv_c                       # fold gamma in channel domain
                shift_c = beta - mean_c * scale_c
                # single (2,C)x(C,L_out) GEMM expands scale & shift to lanes
                both = jnp.dot(jnp.concatenate([scale_c, shift_c], axis=0),
                               selt, preferred_element_type=jnp.float32)
                y = y * both[0:1, :] + both[1:2, :]

            # --- LeakyReLU(0.2) ---------------------------------------------
            y = jnp.where(y >= 0.0, y, LEAKY_SLOPE * y)

            # --- lane-dense bf16 store into the next layer's padded buffer ---
            pad_next = metas[li + 1]["pad"]
            dst = bufs[li]
            dst[:, pad_next:pad_next + ho, :] = (
                y.reshape(batch, ho, l_out).astype(ACT_DTYPE))
            src = dst
        else:
            # --- final 4x4 / stride-1 conv to one logit: VPU mul + reduce ----
            w5 = in_refs[ti][...]                         # (KSIZE, L_in) f32
            x = src[...].astype(jnp.float32)              # (batch, KSIZE, L_in)
            y = jnp.sum(x * w5[None, :, :], axis=2)       # (batch, KSIZE)
            y = jnp.sum(y, axis=1, keepdims=True)         # (batch, 1)
            out_ref[...] = 1.0 / (1.0 + jnp.exp(-y))      # exact sigmoid


# --------------------------------------------------------------------------
# Parameters (PyTorch layout) and one-time kernel-layout preparation
# --------------------------------------------------------------------------
def init_params(key, ndf, nc):
    """Deterministic parameters in the PyTorch layout of the nn.Module."""
    ks = jax.random.split(key, 12)

    def conv_w(k, co, ci):
        return 0.02 * jax.random.normal(k, (co, ci, KSIZE, KSIZE), jnp.float32)

    return {
        "w1": conv_w(ks[0], ndf, nc),
        "w2": conv_w(ks[1], ndf * 2, ndf),
        "g2": 1.0 + 0.02 * jax.random.normal(ks[2], (ndf * 2,), jnp.float32),
        "b2": 0.02 * jax.random.normal(ks[3], (ndf * 2,), jnp.float32),
        "w3": conv_w(ks[4], ndf * 4, ndf * 2),
        "g3": 1.0 + 0.02 * jax.random.normal(ks[5], (ndf * 4,), jnp.float32),
        "b3": 0.02 * jax.random.normal(ks[6], (ndf * 4,), jnp.float32),
        "w4": conv_w(ks[7], ndf * 8, ndf * 4),
        "g4": 1.0 + 0.02 * jax.random.normal(ks[8], (ndf * 8,), jnp.float32),
        "b4": 0.02 * jax.random.normal(ks[9], (ndf * 8,), jnp.float32),
        "w5": conv_w(ks[10], 1, ndf * 8),
    }


def _band_pair(w_conv, w_in, w_out, stride, pad, lanes_in, lanes_out):
    """Fold the kw taps, the W zero-padding and the channel contraction of a
    4x4 stride-2 conv into TWO block-banded matrices consuming the H-paired
    input layout:  Y[r] = P[r] @ band[0] + P[r+1] @ band[1],
    where P[j] = [padded_row(2j) ; padded_row(2j+1)] along lanes."""
    c_out, c_in, k, _ = w_conv.shape
    taps = np.transpose(np.asarray(w_conv, np.float32), (2, 3, 1, 0))  # kh,kw,ci,co
    bands = np.zeros((2, 2 * lanes_in, lanes_out), np.float32)
    for kh in range(k):
        b_idx, half = divmod(kh, 2)          # kh 0,1 -> band0; kh 2,3 -> band1
        for wo in range(w_out):
            for kw in range(k):
                w = stride * wo + kw - pad
                if 0 <= w < w_in:
                    r0 = half * lanes_in + w * c_in
                    c0 = wo * c_out
                    bands[b_idx, r0:r0 + c_in, c0:c0 + c_out] = taps[kh, kw]
    return bands


def prepare_discriminator(params, image_size):
    """One-time lowering of the PyTorch-layout parameters into the banded /
    lane-packed bf16 form the fused kernel consumes (no weight reshapes or
    transposes happen in the forward pass)."""
    nc = params["w1"].shape[1]
    if image_size % 2:
        raise ValueError("image size must be even")
    metas, tensors = [], []
    c_in, h_in, w_in = nc, image_size, image_size
    lanes_in = w_in * c_in          # image is stored at its exact lane width
    h_buf = h_in                    # layer-1 pad is 0 and H is even
    for li, (stride, pad, bn, act) in enumerate(LAYERS):
        w_conv = np.asarray(params[f"w{li + 1}"], np.float32)
        c_out = w_conv.shape[0]
        h_out = (h_in + 2 * pad - KSIZE) // stride + 1
        w_out = (w_in + 2 * pad - KSIZE) // stride + 1
        last = li == len(LAYERS) - 1
        if not last:
            assert stride == 2
            lanes_out = _round_up(w_out * c_out, LANE_MULT)   # lane-dense stores
            bands = _band_pair(w_conv, w_in, w_out, stride, pad, lanes_in, lanes_out)
            tensors.append(jnp.asarray(bands[0], jnp.bfloat16))
            tensors.append(jnp.asarray(bands[1], jnp.bfloat16))
        else:
            assert stride == 1 and pad == 0 and h_in == KSIZE and w_in == KSIZE
            lanes_out = c_out                                  # == 1
            w5 = np.zeros((KSIZE, lanes_in), np.float32)
            for kh in range(KSIZE):
                for kw in range(KSIZE):
                    w5[kh, kw * c_in:(kw + 1) * c_in] = w_conv[0, :, kh, kw]
            tensors.append(jnp.asarray(w5, jnp.float32))
        if bn:
            sel = np.zeros((lanes_out, c_out), np.float32)     # lane -> channel
            for wo in range(w_out):
                sel[wo * c_out:(wo + 1) * c_out, :] = np.eye(c_out, dtype=np.float32)
            tensors += [
                jnp.asarray(sel, jnp.float32),
                jnp.asarray(np.ascontiguousarray(sel.T), jnp.float32),
                jnp.asarray(np.asarray(params[f"g{li + 1}"], np.float32)[None, :]),
                jnp.asarray(np.asarray(params[f"b{li + 1}"], np.float32)[None, :]),
            ]
        metas.append(dict(
            stride=stride, pad=pad, bn=bn, act=act,
            h_in=h_in, w_in=w_in, c_in=c_in,
            h_out=h_out, w_out=w_out, c_out=c_out,
            lanes_in=lanes_in, lanes_out=lanes_out,
            h_buf=h_buf, paired_input=(li == 0)))
        # geometry of the next layer's (zero-padded) input buffer
        c_in, h_in, w_in = c_out, h_out, w_out
        lanes_in = lanes_out
        if not last:
            next_pad = LAYERS[li + 1][1]
            h_buf = _ceil_even(h_in + 2 * next_pad)
    if not (h_in == 1 and w_in == 1 and c_in == 1):
        raise ValueError("DCGAN discriminator expects 64x64 inputs")
    return tuple(metas), tuple(tensors)


# --------------------------------------------------------------------------
# Forward pass
# --------------------------------------------------------------------------
def discriminator_forward(metas, tensors, x):
    """x: (N, C, H, W) float32 (PyTorch NCHW).  Returns shape (N,), matching
    Discriminator.forward(...).view(-1, 1).squeeze(1) in training mode."""
    n, c, h, w = x.shape
    m0 = metas[0]
    assert (c, h, w) == (m0["c_in"], m0["h_in"], m0["w_in"])

    # Only out-of-kernel layout work: NCHW -> lane-packed, H-paired, bf16
    # image of shape (N, H/2, 2*W*C).
    x_rows = jnp.transpose(x, (0, 2, 3, 1)).reshape(n, h, w * c)
    x_pair = x_rows.reshape(n, h // 2, 2 * w * c).astype(ACT_DTYPE)

    vmem = pl.BlockSpec(memory_space=pltpu.MemorySpace.VMEM)
    inputs = (x_pair,) + tuple(tensors)

    # bf16, H-zero-padded, VMEM-resident activation buffers feeding layers 2..5.
    scratch = [
        pltpu.VMEM((n, metas[li + 1]["h_buf"], metas[li]["lanes_out"]), ACT_DTYPE)
        for li in range(len(metas) - 1)
    ]

    kernel = functools.partial(_dcgan_disc_kernel, batch=n, metas=metas,
                               n_tensors=len(tensors))
    out = pl.pallas_call(
        kernel,
        out_shape=jax.ShapeDtypeStruct((n, 1), jnp.float32),
        in_specs=[vmem] * len(inputs),
        out_specs=vmem,
        scratch_shapes=scratch,
        # Working set is ~3 MiB; bound it explicitly so the same kernel is
        # safe on v7x (64 MiB physical VMEM) as well as v5e/v6e.
        compiler_params=pltpu.CompilerParams(
            vmem_limit_bytes=32 * 1024 * 1024),
    )(*inputs)
    # output.view(-1, 1).squeeze(1)
    return out.reshape(-1)


if __name__ == "__main__":
    ndf, nc, batch, spatial = 8, 3, 2, 64  # 64x64 is the minimum this stack supports
    key = jax.random.PRNGKey(0)
    k_param, k_x = jax.random.split(key)

    params = init_params(k_param, ndf, nc)
    metas, ktensors = prepare_discriminator(params, spatial)

    x = jax.random.normal(k_x, (batch, nc, spatial, spatial), jnp.float32)
    out = jax.block_until_ready(discriminator_forward(metas, ktensors, x))

    assert out.shape == (batch,), out.shape
    assert bool(jnp.all(jnp.isfinite(out)))
    assert bool(jnp.all((out >= 0.0) & (out <= 1.0)))
    print("KERNEL_OK")
</pallas_src>

<mosaic_0001>
module attributes {stable_mosaic.version = 11 : i64} {
  func.func @_dcgan_disc_kernel(%arg0: memref<2x32x384xbf16, #tpu.memory_space<vmem>>, %arg1: memref<384x256xbf16, #tpu.memory_space<vmem>>, %arg2: memref<384x256xbf16, #tpu.memory_space<vmem>>, %arg3: memref<512x256xbf16, #tpu.memory_space<vmem>>, %arg4: memref<512x256xbf16, #tpu.memory_space<vmem>>, %arg5: memref<256x16xf32, #tpu.memory_space<vmem>>, %arg6: memref<16x256xf32, #tpu.memory_space<vmem>>, %arg7: memref<1x16xf32, #tpu.memory_space<vmem>>, %arg8: memref<1x16xf32, #tpu.memory_space<vmem>>, %arg9: memref<512x256xbf16, #tpu.memory_space<vmem>>, %arg10: memref<512x256xbf16, #tpu.memory_space<vmem>>, %arg11: memref<256x32xf32, #tpu.memory_space<vmem>>, %arg12: memref<32x256xf32, #tpu.memory_space<vmem>>, %arg13: memref<1x32xf32, #tpu.memory_space<vmem>>, %arg14: memref<1x32xf32, #tpu.memory_space<vmem>>, %arg15: memref<512x256xbf16, #tpu.memory_space<vmem>>, %arg16: memref<512x256xbf16, #tpu.memory_space<vmem>>, %arg17: memref<256x64xf32, #tpu.memory_space<vmem>>, %arg18: memref<64x256xf32, #tpu.memory_space<vmem>>, %arg19: memref<1x64xf32, #tpu.memory_space<vmem>>, %arg20: memref<1x64xf32, #tpu.memory_space<vmem>>, %arg21: memref<4x256xf32, #tpu.memory_space<vmem>>, %arg22: memref<2x1xf32, #tpu.memory_space<vmem>>, %arg23: memref<2x36x256xbf16, #tpu.memory_space<vmem>>, %arg24: memref<2x18x256xbf16, #tpu.memory_space<vmem>>, %arg25: memref<2x10x256xbf16, #tpu.memory_space<vmem>>, %arg26: memref<2x4x256xbf16, #tpu.memory_space<vmem>>) attributes {dimension_semantics = [], scalar_prefetch = 0 : i64, scratch_operands = 4 : i64, tpu.core_type = #tpu.core_type<tc>} {
    %cst = arith.constant 0.000000e+00 : bf16
    %0 = vector.broadcast %cst : bf16 to vector<2x2x256xbf16>
    %c0 = arith.constant 0 : index
    %c0_0 = arith.constant 0 : index
    %c0_1 = arith.constant 0 : index
    %1 = vector.load %arg23[%c0, %c0_0, %c0_1] : memref<2x36x256xbf16, #tpu.memory_space<vmem>>, vector<2x2x256xbf16>
    tpu.vector_store %arg23[%c0, %c0_0, %c0_1], %0 {strides = array<i32>} : memref<2x36x256xbf16, #tpu.memory_space<vmem>>, vector<2x2x256xbf16>,
    %cst_2 = arith.constant 0.000000e+00 : bf16
    %2 = vector.broadcast %cst_2 : bf16 to vector<2x3x256xbf16>
    %c0_3 = arith.constant 0 : index
    %c33 = arith.constant 33 : index
    %c0_4 = arith.constant 0 : index
    %3 = vector.load %arg23[%c0_3, %c33, %c0_4] : memref<2x36x256xbf16, #tpu.memory_space<vmem>>, vector<2x3x256xbf16>
    tpu.vector_store %arg23[%c0_3, %c33, %c0_4], %2 {strides = array<i32>} : memref<2x36x256xbf16, #tpu.memory_space<vmem>>, vector<2x3x256xbf16>,
    %cst_5 = arith.constant 0.000000e+00 : bf16
    %4 = vector.broadcast %cst_5 : bf16 to vector<2x1x256xbf16>
    %c0_6 = arith.constant 0 : index
    %c0_7 = arith.constant 0 : index
    %c0_8 = arith.constant 0 : index
    %5 = vector.load %arg24[%c0_6, %c0_7, %c0_8] : memref<2x18x256xbf16, #tpu.memory_space<vmem>>, vector<2x1x256xbf16>
    tpu.vector_store %arg24[%c0_6, %c0_7, %c0_8], %4 {strides = array<i32>} : memref<2x18x256xbf16, #tpu.memory_space<vmem>>, vector<2x1x256xbf16>,
    %cst_9 = arith.constant 0.000000e+00 : bf16
    %6 = vector.broadcast %cst_9 : bf16 to vector<2x1x256xbf16>
    %c0_10 = arith.constant 0 : index
    %c17 = arith.constant 17 : index
    %c0_11 = arith.constant 0 : index
    %7 = vector.load %arg24[%c0_10, %c17, %c0_11] : memref<2x18x256xbf16, #tpu.memory_space<vmem>>, vector<2x1x256xbf16>
    tpu.vector_store %arg24[%c0_10, %c17, %c0_11], %6 {strides = array<i32>} : memref<2x18x256xbf16, #tpu.memory_space<vmem>>, vector<2x1x256xbf16>,
    %cst_12 = arith.constant 0.000000e+00 : bf16
    %8 = vector.broadcast %cst_12 : bf16 to vector<2x1x256xbf16>
    %c0_13 = arith.constant 0 : index
    %c0_14 = arith.constant 0 : index
    %c0_15 = arith.constant 0 : index
    %9 = vector.load %arg25[%c0_13, %c0_14, %c0_15] : memref<2x10x256xbf16, #tpu.memory_space<vmem>>, vector<2x1x256xbf16>
    tpu.vector_store %arg25[%c0_13, %c0_14, %c0_15], %8 {strides = array<i32>} : memref<2x10x256xbf16, #tpu.memory_space<vmem>>, vector<2x1x256xbf16>,
    %cst_16 = arith.constant 0.000000e+00 : bf16
    %10 = vector.broadcast %cst_16 : bf16 to vector<2x1x256xbf16>
    %c0_17 = arith.constant 0 : index
    %c9 = arith.constant 9 : index
    %c0_18 = arith.constant 0 : index
    %11 = vector.load %arg25[%c0_17, %c9, %c0_18] : memref<2x10x256xbf16, #tpu.memory_space<vmem>>, vector<2x1x256xbf16>
    tpu.vector_store %arg25[%c0_17, %c9, %c0_18], %10 {strides = array<i32>} : memref<2x10x256xbf16, #tpu.memory_space<vmem>>, vector<2x1x256xbf16>,
    %c0_19 = arith.constant 0 : index
    %c0_20 = arith.constant 0 : index
    %12 = vector.load %arg1[%c0_19, %c0_20] : memref<384x256xbf16, #tpu.memory_space<vmem>>, vector<384x256xbf16>
    %c0_21 = arith.constant 0 : index
    %c0_22 = arith.constant 0 : index
    %13 = vector.load %arg2[%c0_21, %c0_22] : memref<384x256xbf16, #tpu.memory_space<vmem>>, vector<384x256xbf16>
    %c0_23 = arith.constant 0 : index
    %c0_24 = arith.constant 0 : index
    %c0_25 = arith.constant 0 : index
    %14 = vector.load %arg0[%c0_23, %c0_24, %c0_25] : memref<2x32x384xbf16, #tpu.memory_space<vmem>>, vector<2x32x384xbf16>
    %15 = vector.extract_strided_slice %14 {offsets = [0, 0, 0], sizes = [2, 31, 384], strides = [1, 1, 1]} : vector<2x32x384xbf16> to vector<2x31x384xbf16>
    %16 = vector.shape_cast %15 : vector<2x31x384xbf16> to vector<62x384xbf16>
    %17 = vector.extract_strided_slice %14 {offsets = [0, 1, 0], sizes = [2, 31, 384], strides = [1, 1, 1]} : vector<2x32x384xbf16> to vector<2x31x384xbf16>
    %18 = vector.shape_cast %17 : vector<2x31x384xbf16> to vector<62x384xbf16>
    %cst_26 = arith.constant dense<0.000000e+00> : vector<62x256xf32>
    %19 = tpu.matmul %16, %12, %cst_26 {dimension_numbers = #tpu.dot_dimension_numbers<[1], [0], [0], [1], [0, 0, 1, 1], [], []>} : vector<62x384xbf16>, vector<384x256xbf16>, vector<62x256xf32> -> vector<62x256xf32>
    %cst_27 = arith.constant dense<0.000000e+00> : vector<62x256xf32>
    %20 = tpu.matmul %18, %13, %cst_27 {dimension_numbers = #tpu.dot_dimension_numbers<[1], [0], [0], [1], [0, 0, 1, 1], [], []>} : vector<62x384xbf16>, vector<384x256xbf16>, vector<62x256xf32> -> vector<62x256xf32>
    %21 = arith.addf %19, %20 : vector<62x256xf32>
    %cst_28 = arith.constant 0.000000e+00 : f32
    %22 = vector.broadcast %cst_28 : f32 to vector<62x256xf32>
    %23 = arith.cmpf oge, %21, %22 : vector<62x256xf32>
    %cst_29 = arith.constant 2.000000e-01 : f32
    %24 = vector.broadcast %cst_29 : f32 to vector<62x256xf32>
    %25 = arith.mulf %24, %21 : vector<62x256xf32>
    %26 = arith.select %23, %21, %25 : vector<62x256xi1>, vector<62x256xf32>
    %27 = vector.shape_cast %26 : vector<62x256xf32> to vector<2x31x256xf32>
    %28 = arith.truncf %27 : vector<2x31x256xf32> to vector<2x31x256xbf16>
    %c0_30 = arith.constant 0 : index
    %c2 = arith.constant 2 : index
    %c0_31 = arith.constant 0 : index
    %29 = vector.load %arg23[%c0_30, %c2, %c0_31] : memref<2x36x256xbf16, #tpu.memory_space<vmem>>, vector<2x31x256xbf16>
    tpu.vector_store %arg23[%c0_30, %c2, %c0_31], %28 {strides = array<i32>} : memref<2x36x256xbf16, #tpu.memory_space<vmem>>, vector<2x31x256xbf16>,
    %c0_32 = arith.constant 0 : index
    %c0_33 = arith.constant 0 : index
    %30 = vector.load %arg3[%c0_32, %c0_33] : memref<512x256xbf16, #tpu.memory_space<vmem>>, vector<512x256xbf16>
    %c0_34 = arith.constant 0 : index
    %c0_35 = arith.constant 0 : index
    %31 = vector.load %arg4[%c0_34, %c0_35] : memref<512x256xbf16, #tpu.memory_space<vmem>>, vector<512x256xbf16>
    %c0_36 = arith.constant 0 : index
    %c0_37 = arith.constant 0 : index
    %c0_38 = arith.constant 0 : index
    %32 = vector.load %arg23[%c0_36, %c0_37, %c0_38] : memref<2x36x256xbf16, #tpu.memory_space<vmem>>, vector<2x36x256xbf16>
    %33 = vector.shape_cast %32 : vector<2x36x256xbf16> to vector<2x18x512xbf16>
    %34 = vector.extract_strided_slice %33 {offsets = [0, 0, 0], sizes = [2, 16, 512], strides = [1, 1, 1]} : vector<2x18x512xbf16> to vector<2x16x512xbf16>
    %35 = vector.shape_cast %34 : vector<2x16x512xbf16> to vector<32x512xbf16>
    %36 = vector.extract_strided_slice %33 {offsets = [0, 1, 0], sizes = [2, 16, 512], strides = [1, 1, 1]} : vector<2x18x512xbf16> to vector<2x16x512xbf16>
    %37 = vector.shape_cast %36 : vector<2x16x512xbf16> to vector<32x512xbf16>
    %cst_39 = arith.constant dense<0.000000e+00> : vector<32x256xf32>
    %38 = tpu.matmul %35, %30, %cst_39 {dimension_numbers = #tpu.dot_dimension_numbers<[1], [0], [0], [1], [0, 0, 1, 1], [], []>} : vector<32x512xbf16>, vector<512x256xbf16>, vector<32x256xf32> -> vector<32x256xf32>
    %cst_40 = arith.constant dense<0.000000e+00> : vector<32x256xf32>
    %39 = tpu.matmul %37, %31, %cst_40 {dimension_numbers = #tpu.dot_dimension_numbers<[1], [0], [0], [1], [0, 0, 1, 1], [], []>} : vector<32x512xbf16>, vector<512x256xbf16>, vector<32x256xf32> -> vector<32x256xf32>
    %40 = arith.addf %38, %39 : vector<32x256xf32>
    %c0_41 = arith.constant 0 : index
    %c0_42 = arith.constant 0 : index
    %41 = vector.load %arg5[%c0_41, %c0_42] : memref<256x16xf32, #tpu.memory_space<vmem>>, vector<256x16xf32>
    %c0_43 = arith.constant 0 : index
    %c0_44 = arith.constant 0 : index
    %42 = vector.load %arg6[%c0_43, %c0_44] : memref<16x256xf32, #tpu.memory_space<vmem>>, vector<16x256xf32>
    %c0_45 = arith.constant 0 : index
    %c0_46 = arith.constant 0 : index
    %43 = vector.load %arg7[%c0_45, %c0_46] : memref<1x16xf32, #tpu.memory_space<vmem>>, vector<1x16xf32>
    %c0_47 = arith.constant 0 : index
    %c0_48 = arith.constant 0 : index
    %44 = vector.load %arg8[%c0_47, %c0_48] : memref<1x16xf32, #tpu.memory_space<vmem>>, vector<1x16xf32>
    %cst_49 = arith.constant dense<0.000000e+00> : vector<256xf32>
    %45 = vector.multi_reduction <add>, %40, %cst_49 [0] : vector<32x256xf32> to vector<256xf32>
    %46 = vector.shape_cast %45 : vector<256xf32> to vector<1x256xf32>
    %47 = arith.mulf %40, %40 : vector<32x256xf32>
    %cst_50 = arith.constant dense<0.000000e+00> : vector<256xf32>
    %48 = vector.multi_reduction <add>, %47, %cst_50 [0] : vector<32x256xf32> to vector<256xf32>
    %49 = vector.shape_cast %48 : vector<256xf32> to vector<1x256xf32>
    %cst_51 = arith.constant dense<0.000000e+00> : vector<1x16xf32>
    %50 = tpu.matmul %46, %41, %cst_51 {dimension_numbers = #tpu.dot_dimension_numbers<[1], [0], [0], [1], [0, 0, 1, 1], [], []>} : vector<1x256xf32>, vector<256x16xf32>, vector<1x16xf32> -> vector<1x16xf32>
    %cst_52 = arith.constant 5.120000e+02 : f32
    %51 = vector.broadcast %cst_52 : f32 to vector<1x16xf32>
    %52 = arith.divf %50, %51 : vector<1x16xf32>
    %cst_53 = arith.constant dense<0.000000e+00> : vector<1x16xf32>
    %53 = tpu.matmul %49, %41, %cst_53 {dimension_numbers = #tpu.dot_dimension_numbers<[1], [0], [0], [1], [0, 0, 1, 1], [], []>} : vector<1x256xf32>, vector<256x16xf32>, vector<1x16xf32> -> vector<1x16xf32>
    %cst_54 = arith.constant 5.120000e+02 : f32
    %54 = vector.broadcast %cst_54 : f32 to vector<1x16xf32>
    %55 = arith.divf %53, %54 : vector<1x16xf32>
    %56 = arith.mulf %52, %52 : vector<1x16xf32>
    %57 = arith.subf %55, %56 : vector<1x16xf32>
    %cst_55 = arith.constant 9.99999974E-6 : f32
    %58 = vector.broadcast %cst_55 : f32 to vector<1x16xf32>
    %59 = arith.addf %57, %58 : vector<1x16xf32>
    %60 = math.rsqrt %59 : vector<1x16xf32>
    %61 = arith.mulf %43, %60 : vector<1x16xf32>
    %62 = arith.mulf %52, %61 : vector<1x16xf32>
    %63 = arith.subf %44, %62 : vector<1x16xf32>
    %64 = tpu.concatenate %61, %63 in 0 : vector<1x16xf32>, vector<1x16xf32> -> vector<2x16xf32>
    %cst_56 = arith.constant dense<0.000000e+00> : vector<2x256xf32>
    %65 = tpu.matmul %64, %42, %cst_56 {dimension_numbers = #tpu.dot_dimension_numbers<[1], [0], [0], [1], [0, 0, 1, 1], [], []>} : vector<2x16xf32>, vector<16x256xf32>, vector<2x256xf32> -> vector<2x256xf32>
    %66 = vector.extract_strided_slice %65 {offsets = [0, 0], sizes = [1, 256], strides = [1, 1]} : vector<2x256xf32> to vector<1x256xf32>
    %67 = vector.broadcast %66 : vector<1x256xf32> to vector<32x256xf32>
    %68 = arith.mulf %40, %67 : vector<32x256xf32>
    %69 = vector.extract_strided_slice %65 {offsets = [1, 0], sizes = [1, 256], strides = [1, 1]} : vector<2x256xf32> to vector<1x256xf32>
    %70 = vector.broadcast %69 : vector<1x256xf32> to vector<32x256xf32>
    %71 = arith.addf %68, %70 : vector<32x256xf32>
    %cst_57 = arith.constant 0.000000e+00 : f32
    %72 = vector.broadcast %cst_57 : f32 to vector<32x256xf32>
    %73 = arith.cmpf oge, %71, %72 : vector<32x256xf32>
    %cst_58 = arith.constant 2.000000e-01 : f32
    %74 = vector.broadcast %cst_58 : f32 to vector<32x256xf32>
    %75 = arith.mulf %74, %71 : vector<32x256xf32>
    %76 = arith.select %73, %71, %75 : vector<32x256xi1>, vector<32x256xf32>
    %77 = vector.shape_cast %76 : vector<32x256xf32> to vector<2x16x256xf32>
    %78 = arith.truncf %77 : vector<2x16x256xf32> to vector<2x16x256xbf16>
    %c0_59 = arith.constant 0 : index
    %c1 = arith.constant 1 : index
    %c0_60 = arith.constant 0 : index
    %79 = vector.load %arg24[%c0_59, %c1, %c0_60] : memref<2x18x256xbf16, #tpu.memory_space<vmem>>, vector<2x16x256xbf16>
    tpu.vector_store %arg24[%c0_59, %c1, %c0_60], %78 {strides = array<i32>} : memref<2x18x256xbf16, #tpu.memory_space<vmem>>, vector<2x16x256xbf16>,
    %c0_61 = arith.constant 0 : index
    %c0_62 = arith.constant 0 : index
    %80 = vector.load %arg9[%c0_61, %c0_62] : memref<512x256xbf16, #tpu.memory_space<vmem>>, vector<512x256xbf16>
    %c0_63 = arith.constant 0 : index
    %c0_64 = arith.constant 0 : index
    %81 = vector.load %arg10[%c0_63, %c0_64] : memref<512x256xbf16, #tpu.memory_space<vmem>>, vector<512x256xbf16>
    %c0_65 = arith.constant 0 : index
    %c0_66 = arith.constant 0 : index
    %c0_67 = arith.constant 0 : index
    %82 = vector.load %arg24[%c0_65, %c0_66, %c0_67] : memref<2x18x256xbf16, #tpu.memory_space<vmem>>, vector<2x18x256xbf16>
    %83 = vector.shape_cast %82 : vector<2x18x256xbf16> to vector<2x9x512xbf16>
    %84 = vector.extract_strided_slice %83 {offsets = [0, 0, 0], sizes = [2, 8, 512], strides = [1, 1, 1]} : vector<2x9x512xbf16> to vector<2x8x512xbf16>
    %85 = vector.shape_cast %84 : vector<2x8x512xbf16> to vector<16x512xbf16>
    %86 = vector.extract_strided_slice %83 {offsets = [0, 1, 0], sizes = [2, 8, 512], strides = [1, 1, 1]} : vector<2x9x512xbf16> to vector<2x8x512xbf16>
    %87 = vector.shape_cast %86 : vector<2x8x512xbf16> to vector<16x512xbf16>
    %cst_68 = arith.constant dense<0.000000e+00> : vector<16x256xf32>
    %88 = tpu.matmul %85, %80, %cst_68 {dimension_numbers = #tpu.dot_dimension_numbers<[1], [0], [0], [1], [0, 0, 1, 1], [], []>} : vector<16x512xbf16>, vector<512x256xbf16>, vector<16x256xf32> -> vector<16x256xf32>
    %cst_69 = arith.constant dense<0.000000e+00> : vector<16x256xf32>
    %89 = tpu.matmul %87, %81, %cst_69 {dimension_numbers = #tpu.dot_dimension_numbers<[1], [0], [0], [1], [0, 0, 1, 1], [], []>} : vector<16x512xbf16>, vector<512x256xbf16>, vector<16x256xf32> -> vector<16x256xf32>
    %90 = arith.addf %88, %89 : vector<16x256xf32>
    %c0_70 = arith.constant 0 : index
    %c0_71 = arith.constant 0 : index
    %91 = vector.load %arg11[%c0_70, %c0_71] : memref<256x32xf32, #tpu.memory_space<vmem>>, vector<256x32xf32>
    %c0_72 = arith.constant 0 : index
    %c0_73 = arith.constant 0 : index
    %92 = vector.load %arg12[%c0_72, %c0_73] : memref<32x256xf32, #tpu.memory_space<vmem>>, vector<32x256xf32>
    %c0_74 = arith.constant 0 : index
    %c0_75 = arith.constant 0 : index
    %93 = vector.load %arg13[%c0_74, %c0_75] : memref<1x32xf32, #tpu.memory_space<vmem>>, vector<1x32xf32>
    %c0_76 = arith.constant 0 : index
    %c0_77 = arith.constant 0 : index
    %94 = vector.load %arg14[%c0_76, %c0_77] : memref<1x32xf32, #tpu.memory_space<vmem>>, vector<1x32xf32>
    %cst_78 = arith.constant dense<0.000000e+00> : vector<256xf32>
    %95 = vector.multi_reduction <add>, %90, %cst_78 [0] : vector<16x256xf32> to vector<256xf32>
    %96 = vector.shape_cast %95 : vector<256xf32> to vector<1x256xf32>
    %97 = arith.mulf %90, %90 : vector<16x256xf32>
    %cst_79 = arith.constant dense<0.000000e+00> : vector<256xf32>
    %98 = vector.multi_reduction <add>, %97, %cst_79 [0] : vector<16x256xf32> to vector<256xf32>
    %99 = vector.shape_cast %98 : vector<256xf32> to vector<1x256xf32>
    %cst_80 = arith.constant dense<0.000000e+00> : vector<1x32xf32>
    %100 = tpu.matmul %96, %91, %cst_80 {dimension_numbers = #tpu.dot_dimension_numbers<[1], [0], [0], [1], [0, 0, 1, 1], [], []>} : vector<1x256xf32>, vector<256x32xf32>, vector<1x32xf32> -> vector<1x32xf32>
    %cst_81 = arith.constant 1.280000e+02 : f32
    %101 = vector.broadcast %cst_81 : f32 to vector<1x32xf32>
    %102 = arith.divf %100, %101 : vector<1x32xf32>
    %cst_82 = arith.constant dense<0.000000e+00> : vector<1x32xf32>
    %103 = tpu.matmul %99, %91, %cst_82 {dimension_numbers = #tpu.dot_dimension_numbers<[1], [0], [0], [1], [0, 0, 1, 1], [], []>} : vector<1x256xf32>, vector<256x32xf32>, vector<1x32xf32> -> vector<1x32xf32>
    %cst_83 = arith.constant 1.280000e+02 : f32
    %104 = vector.broadcast %cst_83 : f32 to vector<1x32xf32>
    %105 = arith.divf %103, %104 : vector<1x32xf32>
    %106 = arith.mulf %102, %102 : vector<1x32xf32>
    %107 = arith.subf %105, %106 : vector<1x32xf32>
    %cst_84 = arith.constant 9.99999974E-6 : f32
    %108 = vector.broadcast %cst_84 : f32 to vector<1x32xf32>
    %109 = arith.addf %107, %108 : vector<1x32xf32>
    %110 = math.rsqrt %109 : vector<1x32xf32>
    %111 = arith.mulf %93, %110 : vector<1x32xf32>
    %112 = arith.mulf %102, %111 : vector<1x32xf32>
    %113 = arith.subf %94, %112 : vector<1x32xf32>
    %114 = tpu.concatenate %111, %113 in 0 : vector<1x32xf32>, vector<1x32xf32> -> vector<2x32xf32>
    %cst_85 = arith.constant dense<0.000000e+00> : vector<2x256xf32>
    %115 = tpu.matmul %114, %92, %cst_85 {dimension_numbers = #tpu.dot_dimension_numbers<[1], [0], [0], [1], [0, 0, 1, 1], [], []>} : vector<2x32xf32>, vector<32x256xf32>, vector<2x256xf32> -> vector<2x256xf32>
    %116 = vector.extract_strided_slice %115 {offsets = [0, 0], sizes = [1, 256], strides = [1, 1]} : vector<2x256xf32> to vector<1x256xf32>
    %117 = vector.broadcast %116 : vector<1x256xf32> to vector<16x256xf32>
    %118 = arith.mulf %90, %117 : vector<16x256xf32>
    %119 = vector.extract_strided_slice %115 {offsets = [1, 0], sizes = [1, 256], strides = [1, 1]} : vector<2x256xf32> to vector<1x256xf32>
    %120 = vector.broadcast %119 : vector<1x256xf32> to vector<16x256xf32>
    %121 = arith.addf %118, %120 : vector<16x256xf32>
    %cst_86 = arith.constant 0.000000e+00 : f32
    %122 = vector.broadcast %cst_86 : f32 to vector<16x256xf32>
    %123 = arith.cmpf oge, %121, %122 : vector<16x256xf32>
    %cst_87 = arith.constant 2.000000e-01 : f32
    %124 = vector.broadcast %cst_87 : f32 to vector<16x256xf32>
    %125 = arith.mulf %124, %121 : vector<16x256xf32>
    %126 = arith.select %123, %121, %125 : vector<16x256xi1>, vector<16x256xf32>
    %127 = vector.shape_cast %126 : vector<16x256xf32> to vector<2x8x256xf32>
    %128 = arith.truncf %127 : vector<2x8x256xf32> to vector<2x8x256xbf16>
    %c0_88 = arith.constant 0 : index
    %c1_89 = arith.constant 1 : index
    %c0_90 = arith.constant 0 : index
    %129 = vector.load %arg25[%c0_88, %c1_89, %c0_90] : memref<2x10x256xbf16, #tpu.memory_space<vmem>>, vector<2x8x256xbf16>
    tpu.vector_store %arg25[%c0_88, %c1_89, %c0_90], %128 {strides = array<i32>} : memref<2x10x256xbf16, #tpu.memory_space<vmem>>, vector<2x8x256xbf16>,
    %c0_91 = arith.constant 0 : index
    %c0_92 = arith.constant 0 : index
    %130 = vector.load %arg15[%c0_91, %c0_92] : memref<512x256xbf16, #tpu.memory_space<vmem>>, vector<512x256xbf16>
    %c0_93 = arith.constant 0 : index
    %c0_94 = arith.constant 0 : index
    %131 = vector.load %arg16[%c0_93, %c0_94] : memref<512x256xbf16, #tpu.memory_space<vmem>>, vector<512x256xbf16>
    %c0_95 = arith.constant 0 : index
    %c0_96 = arith.constant 0 : index
    %c0_97 = arith.constant 0 : index
    %132 = vector.load %arg25[%c0_95, %c0_96, %c0_97] : memref<2x10x256xbf16, #tpu.memory_space<vmem>>, vector<2x10x256xbf16>
    %133 = vector.shape_cast %132 : vector<2x10x256xbf16> to vector<2x5x512xbf16>
    %134 = vector.extract_strided_slice %133 {offsets = [0, 0, 0], sizes = [2, 4, 512], strides = [1, 1, 1]} : vector<2x5x512xbf16> to vector<2x4x512xbf16>
    %135 = vector.shape_cast %134 : vector<2x4x512xbf16> to vector<8x512xbf16>
    %136 = vector.extract_strided_slice %133 {offsets = [0, 1, 0], sizes = [2, 4, 512], strides = [1, 1, 1]} : vector<2x5x512xbf16> to vector<2x4x512xbf16>
    %137 = vector.shape_cast %136 : vector<2x4x512xbf16> to vector<8x512xbf16>
    %cst_98 = arith.constant dense<0.000000e+00> : vector<8x256xf32>
    %138 = tpu.matmul %135, %130, %cst_98 {dimension_numbers = #tpu.dot_dimension_numbers<[1], [0], [0], [1], [0, 0, 1, 1], [], []>} : vector<8x512xbf16>, vector<512x256xbf16>, vector<8x256xf32> -> vector<8x256xf32>
    %cst_99 = arith.constant dense<0.000000e+00> : vector<8x256xf32>
    %139 = tpu.matmul %137, %131, %cst_99 {dimension_numbers = #tpu.dot_dimension_numbers<[1], [0], [0], [1], [0, 0, 1, 1], [], []>} : vector<8x512xbf16>, vector<512x256xbf16>, vector<8x256xf32> -> vector<8x256xf32>
    %140 = arith.addf %138, %139 : vector<8x256xf32>
    %c0_100 = arith.constant 0 : index
    %c0_101 = arith.constant 0 : index
    %141 = vector.load %arg17[%c0_100, %c0_101] : memref<256x64xf32, #tpu.memory_space<vmem>>, vector<256x64xf32>
    %c0_102 = arith.constant 0 : index
    %c0_103 = arith.constant 0 : index
    %142 = vector.load %arg18[%c0_102, %c0_103] : memref<64x256xf32, #tpu.memory_space<vmem>>, vector<64x256xf32>
    %c0_104 = arith.constant 0 : index
    %c0_105 = arith.constant 0 : index
    %143 = vector.load %arg19[%c0_104, %c0_105] : memref<1x64xf32, #tpu.memory_space<vmem>>, vector<1x64xf32>
    %c0_106 = arith.constant 0 : index
    %c0_107 = arith.constant 0 : index
    %144 = vector.load %arg20[%c0_106, %c0_107] : memref<1x64xf32, #tpu.memory_space<vmem>>, vector<1x64xf32>
    %cst_108 = arith.constant dense<0.000000e+00> : vector<256xf32>
    %145 = vector.multi_reduction <add>, %140, %cst_108 [0] : vector<8x256xf32> to vector<256xf32>
    %146 = vector.shape_cast %145 : vector<256xf32> to vector<1x256xf32>
    %147 = arith.mulf %140, %140 : vector<8x256xf32>
    %cst_109 = arith.constant dense<0.000000e+00> : vector<256xf32>
    %148 = vector.multi_reduction <add>, %147, %cst_109 [0] : vector<8x256xf32> to vector<256xf32>
    %149 = vector.shape_cast %148 : vector<256xf32> to vector<1x256xf32>
    %cst_110 = arith.constant dense<0.000000e+00> : vector<1x64xf32>
    %150 = tpu.matmul %146, %141, %cst_110 {dimension_numbers = #tpu.dot_dimension_numbers<[1], [0], [0], [1], [0, 0, 1, 1], [], []>} : vector<1x256xf32>, vector<256x64xf32>, vector<1x64xf32> -> vector<1x64xf32>
    %cst_111 = arith.constant 3.200000e+01 : f32
    %151 = vector.broadcast %cst_111 : f32 to vector<1x64xf32>
    %152 = arith.divf %150, %151 : vector<1x64xf32>
    %cst_112 = arith.constant dense<0.000000e+00> : vector<1x64xf32>
    %153 = tpu.matmul %149, %141, %cst_112 {dimension_numbers = #tpu.dot_dimension_numbers<[1], [0], [0], [1], [0, 0, 1, 1], [], []>} : vector<1x256xf32>, vector<256x64xf32>, vector<1x64xf32> -> vector<1x64xf32>
    %cst_113 = arith.constant 3.200000e+01 : f32
    %154 = vector.broadcast %cst_113 : f32 to vector<1x64xf32>
    %155 = arith.divf %153, %154 : vector<1x64xf32>
    %156 = arith.mulf %152, %152 : vector<1x64xf32>
    %157 = arith.subf %155, %156 : vector<1x64xf32>
    %cst_114 = arith.constant 9.99999974E-6 : f32
    %158 = vector.broadcast %cst_114 : f32 to vector<1x64xf32>
    %159 = arith.addf %157, %158 : vector<1x64xf32>
    %160 = math.rsqrt %159 : vector<1x64xf32>
    %161 = arith.mulf %143, %160 : vector<1x64xf32>
    %162 = arith.mulf %152, %161 : vector<1x64xf32>
    %163 = arith.subf %144, %162 : vector<1x64xf32>
    %164 = tpu.concatenate %161, %163 in 0 : vector<1x64xf32>, vector<1x64xf32> -> vector<2x64xf32>
    %cst_115 = arith.constant dense<0.000000e+00> : vector<2x256xf32>
    %165 = tpu.matmul %164, %142, %cst_115 {dimension_numbers = #tpu.dot_dimension_numbers<[1], [0], [0], [1], [0, 0, 1, 1], [], []>} : vector<2x64xf32>, vector<64x256xf32>, vector<2x256xf32> -> vector<2x256xf32>
    %166 = vector.extract_strided_slice %165 {offsets = [0, 0], sizes = [1, 256], strides = [1, 1]} : vector<2x256xf32> to vector<1x256xf32>
    %167 = vector.broadcast %166 : vector<1x256xf32> to vector<8x256xf32>
    %168 = arith.mulf %140, %167 : vector<8x256xf32>
    %169 = vector.extract_strided_slice %165 {offsets = [1, 0], sizes = [1, 256], strides = [1, 1]} : vector<2x256xf32> to vector<1x256xf32>
    %170 = vector.broadcast %169 : vector<1x256xf32> to vector<8x256xf32>
    %171 = arith.addf %168, %170 : vector<8x256xf32>
    %cst_116 = arith.constant 0.000000e+00 : f32
    %172 = vector.broadcast %cst_116 : f32 to vector<8x256xf32>
    %173 = arith.cmpf oge, %171, %172 : vector<8x256xf32>
    %cst_117 = arith.constant 2.000000e-01 : f32
    %174 = vector.broadcast %cst_117 : f32 to vector<8x256xf32>
    %175 = arith.mulf %174, %171 : vector<8x256xf32>
    %176 = arith.select %173, %171, %175 : vector<8x256xi1>, vector<8x256xf32>
    %177 = vector.shape_cast %176 : vector<8x256xf32> to vector<2x4x256xf32>
    %178 = arith.truncf %177 : vector<2x4x256xf32> to vector<2x4x256xbf16>
    %c0_118 = arith.constant 0 : index
    %c0_119 = arith.constant 0 : index
    %c0_120 = arith.constant 0 : index
    %179 = vector.load %arg26[%c0_118, %c0_119, %c0_120] : memref<2x4x256xbf16, #tpu.memory_space<vmem>>, vector<2x4x256xbf16>
    tpu.vector_store %arg26[%c0_118, %c0_119, %c0_120], %178 {strides = array<i32>} : memref<2x4x256xbf16, #tpu.memory_space<vmem>>, vector<2x4x256xbf16>,
    %c0_121 = arith.constant 0 : index
    %c0_122 = arith.constant 0 : index
    %180 = vector.load %arg21[%c0_121, %c0_122] : memref<4x256xf32, #tpu.memory_space<vmem>>, vector<4x256xf32>
    %c0_123 = arith.constant 0 : index
    %c0_124 = arith.constant 0 : index
    %c0_125 = arith.constant 0 : index
    %181 = vector.load %arg26[%c0_123, %c0_124, %c0_125] : memref<2x4x256xbf16, #tpu.memory_space<vmem>>, vector<2x4x256xbf16>
    %182 = arith.extf %181 : vector<2x4x256xbf16> to vector<2x4x256xf32>
    %183 = vector.shape_cast %180 : vector<4x256xf32> to vector<1x4x256xf32>
    %184 = vector.broadcast %183 : vector<1x4x256xf32> to vector<2x4x256xf32>
    %185 = arith.mulf %182, %184 : vector<2x4x256xf32>
    %cst_126 = arith.constant dense<0.000000e+00> : vector<2x4xf32>
    %186 = vector.multi_reduction <add>, %185, %cst_126 [2] : vector<2x4x256xf32> to vector<2x4xf32>
    %cst_127 = arith.constant dense<0.000000e+00> : vector<2xf32>
    %187 = vector.multi_reduction <add>, %186, %cst_127 [1] : vector<2x4xf32> to vector<2xf32>
    %188 = vector.shape_cast %187 : vector<2xf32> to vector<2x1xf32>
    %cst_128 = arith.constant 0.000000e+00 : f32
    %189 = vector.broadcast %cst_128 : f32 to vector<2x1xf32>
    %190 = arith.subf %189, %188 : vector<2x1xf32>
    %191 = math.exp %190 : vector<2x1xf32>
    %cst_129 = arith.constant 1.000000e+00 : f32
    %192 = vector.broadcast %cst_129 : f32 to vector<2x1xf32>
    %193 = arith.addf %192, %191 : vector<2x1xf32>
    %cst_130 = arith.constant 1.000000e+00 : f32
    %194 = vector.broadcast %cst_130 : f32 to vector<2x1xf32>
    %195 = arith.divf %194, %193 : vector<2x1xf32>
    %c0_131 = arith.constant 0 : index
    %c0_132 = arith.constant 0 : index
    %196 = vector.load %arg22[%c0_131, %c0_132] : memref<2x1xf32, #tpu.memory_space<vmem>>, vector<2x1xf32>
    tpu.vector_store %arg22[%c0_131, %c0_132], %195 {strides = array<i32>} : memref<2x1xf32, #tpu.memory_space<vmem>>, vector<2x1xf32>,
    return
  }
}

</mosaic_0001>

<bundles_post_ra>
// kernel: tpu_custom_call.1
= control target key start
LH: loop header
LB: loop body
LE: loop exit
PB: predicated region body
PF: predicated region fallthrough
CT: control target
= control target key end

     0   :  { %s12275_s0 = inlined_call_operand.hbm [shape: bf16[2,32,384], index: 0, kind: input, shape index: {}]   ;;  %s12276_s1 = inlined_call_operand.hbm [shape: bf16[384,256], index: 1, kind: input, shape index: {}]   ;;  %s12277_s2 = inlined_call_operand.hbm [shape: bf16[384,256], index: 2, kind: input, shape index: {}]   ;;  %s12278_s3 = inlined_call_operand.vmem [shape: bf16[512,256], index: 3, kind: input, shape index: {}]   ;;  %s12279_s4 = inlined_call_operand.hbm [shape: bf16[512,256], index: 4, kind: input, shape index: {}]   ;;  %s12280_s5 = inlined_call_operand.vmem [shape: f32[256,16], index: 5, kind: input, shape index: {}]   ;;  %s12281_s6 = inlined_call_operand.hbm [shape: f32[16,256], index: 6, kind: input, shape index: {}]   ;;  %s12282_s7 = inlined_call_operand.vmem [shape: f32[1,16], index: 7, kind: input, shape index: {}]   ;;  %s12283_s8 = inlined_call_operand.vmem [shape: f32[1,16], index: 8, kind: input, shape index: {}]   ;;  %s12284_s9 = inlined_call_operand.vmem [shape: bf16[512,256], index: 9, kind: input, shape index: {}]   ;;  %s12285_s10 = inlined_call_operand.hbm [shape: bf16[512,256], index: 10, kind: input, shape index: {}]   ;;  %s12286_s11 = inlined_call_operand.vmem [shape: f32[256,32], index: 11, kind: input, shape index: {}]   ;;  %s12287_s12 = inlined_call_operand.hbm [shape: f32[32,256], index: 12, kind: input, shape index: {}]   ;;  %s12288_s13 = inlined_call_operand.vmem [shape: f32[1,32], index: 13, kind: input, shape index: {}]   ;;  %s12289_s14 = inlined_call_operand.vmem [shape: f32[1,32], index: 14, kind: input, shape index: {}]   ;;  %s12290_s15 = inlined_call_operand.hbm [shape: bf16[512,256], index: 15, kind: input, shape index: {}]   ;;  %s12291_s16 = inlined_call_operand.hbm [shape: bf16[512,256], index: 16, kind: input, shape index: {}]   ;;  %s12292_s17 = inlined_call_operand.vmem [shape: f32[256,64], index: 17, kind: input, shape index: {}]   ;;  %s12293_s18 = inlined_call_operand.hbm [shape: f32[64,256], index: 18, kind: input, shape index: {}]   ;;  %s12294_s19 = inlined_call_operand.vmem [shape: f32[1,64], index: 19, kind: input, shape index: {}]   ;;  %s12295_s20 = inlined_call_operand.vmem [shape: f32[1,64], index: 20, kind: input, shape index: {}]   ;;  %s12296_s21 = inlined_call_operand.vmem [shape: f32[4,256], index: 21, kind: input, shape index: {}]   ;;  %s12297_s22 = inlined_call_operand.vmem [shape: f32[2,1], index: 22, kind: output, shape index: {}]  }
   0x1   :  { %12307 = sst [smem:[#allocation28_spill]] %s12275_s0 }
   0x2   :  { %12308 = sst [smem:[#allocation29_spill]] %s12276_s1 }
   0x3   :  { %12309 = sst [smem:[#allocation30_spill]] %s12277_s2 }
   0x4   :  { %12310 = sst [smem:[#allocation31_spill]] %s12278_s3 }
   0x5   :  { %12311 = sst [smem:[#allocation32_spill]] %s12279_s4 }
   0x6   :  { %12312 = sst [smem:[#allocation33_spill]] %s12280_s5 }
   0x7   :  { %12313 = sst [smem:[#allocation34_spill]] %s12281_s6 }
   0x8   :  { %12314 = sst [smem:[#allocation35_spill]] %s12295_s20 }
   0x9   :  { %12315 = sst [smem:[#allocation36_spill]] %s12296_s21 }
   0xa   :  { %12316 = sst [smem:[#allocation37_spill]] %s12297_s22 }
   0xb   :  { %27 = vsyncpa [#allocation7], 0 }
   0xc   :  { %28 = vsyncpa [#allocation9], 0 }
   0xd   :  { %29 = vsyncpa [#allocation12], 0 }
   0xe   :  { %30 = vsyncpa [#allocation15], 0 }
   0xf   :  { %31 = vsyncpa [#allocation18], 0 }
  0x10   :  { %32 = vsyncpa [#allocation21], 0  ;;  %s9988_s3 = smov [#allocation8]   ;;  %s12317_s4 = sld [smem:[#allocation29_spill]] }
  0x11   :  { %s50_s28 = sshll.u32 %s9988_s3, 4  ;;  %s51_s28 = int_to_ptr.vmem [resolvable:$true] %s50_s28 }
  0x16   :  { %s9756_s0 = scalar_lea.hbm %s12317_s4, 6144 }
  0x17   :  { %p9757_p0 = scmp.ne.s32.totalorder %s12317_s4, %s9756_s0  ;;  %p9760_p1 = scmp.lt.u32.totalorder %s9756_s0, %s12317_s4 }
  0x19   :  { %p9762_p2 = pnand %p9760_p1, %p9757_p0 }
  0x1b   :  { %9765 = shalt.err (!%p9762_p2)
}
  0x1c   :  { %s9766_s6 = scalar_lea.vmem %s51_s28, 6144  ;;  %p9771_p4 = scmp.lt.s32.totalorder %s51_s28, %s51_s28 }
  0x1d   :  { %p9767_p3 = scmp.ne.s32.totalorder %s51_s28, %s9766_s6  ;;  %p9772_p5 = scmp.lt.s32.totalorder %s9766_s6, %s9766_s6 }
  0x1f   :  { %p9773_p6 = por %p9772_p5, %p9771_p4 }
  0x21   :  { %p9774_p7 = pnand %p9773_p6, %p9767_p3 }
  0x23   :  { %9777 = shalt.err (!%p9774_p7)
}
  0x24   :  { %s9989_s25 = smov 128   ;;  %s9990_s26 = smov 8  }
  0x25   :  { %56 = dma.hbm_to_vmem [thread:$0]  %s12317_s4, 6144, %s51_s28, [#allocation9], %s9989_s25, %s9989_s25, %s9990_s26  }
  0x26   :  { %s9991_s3 = smov [#allocation11]   ;;  %s9992_s30 = smov [#allocation14]  }
  0x27   :  { %s76_s29 = sshll.u32 %s9991_s3, 4  ;;  %s108_s0 = sshll.u32 %s9992_s30, 4  ;;  %s77_s29 = int_to_ptr.vmem [resolvable:$true] %s76_s29  ;;  %s109_s0 = int_to_ptr.vmem [resolvable:$true] %s108_s0 }
  0x28   :  { %s12318_s5 = sld [smem:[#allocation32_spill]] }
  0x2e   :  { %s9778_s24 = scalar_lea.hbm %s12318_s5, 8192 }
  0x2f   :  { %p9779_p8 = scmp.ne.s32.totalorder %s12318_s5, %s9778_s24  ;;  %p9782_p9 = scmp.lt.u32.totalorder %s9778_s24, %s12318_s5 }
  0x31   :  { %p9784_p10 = pnand %p9782_p9, %p9779_p8 }
  0x33   :  { %9787 = shalt.err (!%p9784_p10)
}
  0x34   :  { %s9788_s28 = scalar_lea.vmem %s77_s29, 8192  ;;  %p9793_p12 = scmp.lt.s32.totalorder %s77_s29, %s77_s29 }
  0x35   :  { %p9789_p11 = scmp.ne.s32.totalorder %s77_s29, %s9788_s28  ;;  %p9794_p13 = scmp.lt.s32.totalorder %s9788_s28, %s9788_s28 }
  0x37   :  { %p9795_p0 = por %p9794_p13, %p9793_p12 }
  0x39   :  { %p9796_p1 = pnand %p9795_p0, %p9789_p11 }
  0x3b   :  { %9799 = shalt.err (!%p9796_p1)
}
  0x3c   :  { %82 = dma.hbm_to_vmem [thread:$0]  %s12318_s5, 8192, %s77_s29, [#allocation12], %s9989_s25, %s9989_s25, %s9990_s26  }
  0x3d   :  { %s9800_s21 = scalar_lea.hbm %s12285_s10, 8192 }
  0x3e   :  { %p9801_p2 = scmp.ne.s32.totalorder %s12285_s10, %s9800_s21  ;;  %p9804_p3 = scmp.lt.u32.totalorder %s9800_s21, %s12285_s10 }
  0x40   :  { %p9806_p4 = pnand %p9804_p3, %p9801_p2 }
  0x42   :  { %9809 = shalt.err (!%p9806_p4)
}
  0x43   :  { %s9810_s1 = scalar_lea.vmem %s109_s0, 8192  ;;  %p9815_p6 = scmp.lt.s32.totalorder %s109_s0, %s109_s0 }
  0x44   :  { %p9811_p5 = scmp.ne.s32.totalorder %s109_s0, %s9810_s1  ;;  %p9816_p7 = scmp.lt.s32.totalorder %s9810_s1, %s9810_s1 }
  0x46   :  { %p9817_p8 = por %p9816_p7, %p9815_p6 }
  0x48   :  { %p9818_p9 = pnand %p9817_p8, %p9811_p5 }
  0x4a   :  { %9821 = shalt.err (!%p9818_p9)
}
  0x4b   :  { %114 = dma.hbm_to_vmem [thread:$0]  %s12285_s10, 8192, %s109_s0, [#allocation15], %s9989_s25, %s9989_s25, %s9990_s26  }
  0x4c   :  { %s9993_s24 = smov [#allocation17]   ;;  %s9994_s28 = smov [#allocation6]  }
  0x4d   :  { %s138_s6 = sshll.u32 %s9993_s24, 4  ;;  %s38_s4 = sshll.u32 %s9994_s28, 4  ;;  %s139_s6 = int_to_ptr.vmem [resolvable:$true] %s138_s6  ;;  %s39_s4 = int_to_ptr.vmem [resolvable:$true] %s38_s4 }
  0x4e   :  { %s9822_s20 = scalar_lea.hbm %s12290_s15, 8192 }
  0x4f   :  { %p9823_p10 = scmp.ne.s32.totalorder %s12290_s15, %s9822_s20  ;;  %p9826_p11 = scmp.lt.u32.totalorder %s9822_s20, %s12290_s15 }
  0x51   :  { %p9828_p12 = pnand %p9826_p11, %p9823_p10 }
  0x53   :  { %9831 = shalt.err (!%p9828_p12)
}
  0x54   :  { %s9832_s10 = scalar_lea.vmem %s139_s6, 8192  ;;  %p9837_p0 = scmp.lt.s32.totalorder %s139_s6, %s139_s6 }
  0x55   :  { %p9833_p13 = scmp.ne.s32.totalorder %s139_s6, %s9832_s10  ;;  %p9838_p1 = scmp.lt.s32.totalorder %s9832_s10, %s9832_s10 }
  0x57   :  { %p9839_p2 = por %p9838_p1, %p9837_p0 }
  0x59   :  { %p9840_p3 = pnand %p9839_p2, %p9833_p13 }
  0x5b   :  { %9843 = shalt.err (!%p9840_p3)
}
  0x5c   :  { %144 = dma.hbm_to_vmem [thread:$0]  %s12290_s15, 8192, %s139_s6, [#allocation18], %s9989_s25, %s9989_s25, %s9990_s26  }
  0x5d   :  { %s12319_s5 = sld [smem:[#allocation28_spill]] }
  0x63   :  { %s9844_s24 = scalar_lea.hbm %s12319_s5, 1536 }
  0x64   :  { %p9845_p4 = scmp.ne.s32.totalorder %s12319_s5, %s9844_s24  ;;  %p9848_p5 = scmp.lt.u32.totalorder %s9844_s24, %s12319_s5 }
  0x66   :  { %p9850_p6 = pnand %p9848_p5, %p9845_p4 }
  0x68   :  { %9853 = shalt.err (!%p9850_p6)
}
  0x69   :  { %s9854_s21 = scalar_lea.vmem %s39_s4, 1536  ;;  %p9859_p8 = scmp.lt.s32.totalorder %s39_s4, %s39_s4 }
  0x6a   :  { %p9855_p7 = scmp.ne.s32.totalorder %s39_s4, %s9854_s21  ;;  %p9860_p9 = scmp.lt.s32.totalorder %s9854_s21, %s9854_s21 }
  0x6c   :  { %p9861_p10 = por %p9860_p9, %p9859_p8 }
  0x6e   :  { %p9862_p11 = pnand %p9861_p10, %p9855_p7 }
  0x70   :  { %9865 = shalt.err (!%p9862_p11)
}
  0x71   :  { %s9995_s15 = smov 192   ;;  %s9996_s6 = smov 12  }
  0x72   :  { %44 = dma.hbm_to_vmem [thread:$0]  %s12319_s5, 1536, %s39_s4, [#allocation7], %s9995_s15, %s9995_s15, %s9996_s6  }
  0x73   :  { %s9997_s30 = smov [#allocation10]   ;;  %s9998_s0 = smov [#allocation13]  }
  0x74   :  { %s62_s10 = sshll.u32 %s9997_s30, 4  ;;  %s90_s23 = sshll.u32 %s9998_s0, 4  ;;  %s63_s10 = int_to_ptr.vmem [resolvable:$true] %s62_s10  ;;  %s91_s23 = int_to_ptr.vmem [resolvable:$true] %s90_s23 }
  0x75   :  { %s12320_s24 = sld [smem:[#allocation30_spill]] }
  0x7b   :  { %s9866_s28 = scalar_lea.hbm %s12320_s24, 6144 }
  0x7c   :  { %p9867_p12 = scmp.ne.s32.totalorder %s12320_s24, %s9866_s28  ;;  %p9870_p13 = scmp.lt.u32.totalorder %s9866_s28, %s12320_s24 }
  0x7e   :  { %p9872_p0 = pnand %p9870_p13, %p9867_p12 }
  0x80   :  { %9875 = shalt.err (!%p9872_p0)
}
  0x81   :  { %s9876_s4 = scalar_lea.vmem %s63_s10, 6144  ;;  %p9881_p2 = scmp.lt.s32.totalorder %s63_s10, %s63_s10 }
  0x82   :  { %p9877_p1 = scmp.ne.s32.totalorder %s63_s10, %s9876_s4  ;;  %p9882_p3 = scmp.lt.s32.totalorder %s9876_s4, %s9876_s4 }
  0x84   :  { %p9883_p4 = por %p9882_p3, %p9881_p2 }
  0x86   :  { %p9884_p5 = pnand %p9883_p4, %p9877_p1 }
  0x88   :  { %9887 = shalt.err (!%p9884_p5)
}
  0x89   :  { %68 = dma.hbm_to_vmem [thread:$0]  %s12320_s24, 6144, %s63_s10, [#allocation9], %s9989_s25, %s9989_s25, %s9990_s26  }
  0x8a   :  { %s12321_s3 = sld [smem:[#allocation34_spill]] }
  0x90   :  { %s9888_s30 = scalar_lea.hbm %s12321_s3, 512 }
  0x91   :  { %p9889_p6 = scmp.ne.s32.totalorder %s12321_s3, %s9888_s30  ;;  %p9892_p7 = scmp.lt.u32.totalorder %s9888_s30, %s12321_s3 }
  0x93   :  { %p9894_p8 = pnand %p9892_p7, %p9889_p6 }
  0x95   :  { %9897 = shalt.err (!%p9894_p8)
}
  0x96   :  { %s9898_s2 = scalar_lea.vmem %s91_s23, 512  ;;  %p9903_p10 = scmp.lt.s32.totalorder %s91_s23, %s91_s23 }
  0x97   :  { %p9899_p9 = scmp.ne.s32.totalorder %s91_s23, %s9898_s2  ;;  %p9904_p11 = scmp.lt.s32.totalorder %s9898_s2, %s9898_s2 }
  0x99   :  { %p9905_p12 = por %p9904_p11, %p9903_p10 }
  0x9b   :  { %p9906_p13 = pnand %p9905_p12, %p9899_p9 }
  0x9d   :  { %9909 = shalt.err (!%p9906_p13)
}
  0x9e   :  { %s9999_s10 = smov 256   ;;  %s10000_s24 = smov 16  }
  0x9f   :  { %96 = dma.hbm_to_vmem [thread:$0]  %s12321_s3, 512, %s91_s23, [#allocation12], %s9999_s10, %s9999_s10, %s10000_s24  }
  0xa0   :  { %s10001_s21 = smov [#allocation16]   ;;  %s10002_s5 = smov [#allocation19]  }
  0xa1   :  { %s122_s4 = sshll.u32 %s10001_s21, 4  ;;  %s150_s15 = sshll.u32 %s10002_s5, 4  ;;  %s123_s4 = int_to_ptr.vmem [resolvable:$true] %s122_s4  ;;  %s151_s15 = int_to_ptr.vmem [resolvable:$true] %s150_s15 }
  0xa2   :  { %s9910_s30 = scalar_lea.hbm %s12287_s12, 1024 }
  0xa3   :  { %p9911_p0 = scmp.ne.s32.totalorder %s12287_s12, %s9910_s30  ;;  %p9914_p1 = scmp.lt.u32.totalorder %s9910_s30, %s12287_s12 }
  0xa5   :  { %p9916_p2 = pnand %p9914_p1, %p9911_p0 }
  0xa7   :  { %9919 = shalt.err (!%p9916_p2)
}
  0xa8   :  { %s9920_s23 = scalar_lea.vmem %s123_s4, 1024  ;;  %p9925_p4 = scmp.lt.s32.totalorder %s123_s4, %s123_s4 }
  0xa9   :  { %p9921_p3 = scmp.ne.s32.totalorder %s123_s4, %s9920_s23  ;;  %p9926_p5 = scmp.lt.s32.totalorder %s9920_s23, %s9920_s23 }
  0xab   :  { %p9927_p6 = por %p9926_p5, %p9925_p4 }
  0xad   :  { %p9928_p7 = pnand %p9927_p6, %p9921_p3 }
  0xaf   :  { %9931 = shalt.err (!%p9928_p7)
}
  0xb0   :  { %128 = dma.hbm_to_vmem [thread:$0]  %s12287_s12, 1024, %s123_s4, [#allocation15], %s9999_s10, %s9999_s10, %s10000_s24  }
  0xb1   :  { %s9932_s21 = scalar_lea.hbm %s12291_s16, 8192 }
  0xb2   :  { %p9933_p8 = scmp.ne.s32.totalorder %s12291_s16, %s9932_s21  ;;  %p9936_p9 = scmp.lt.u32.totalorder %s9932_s21, %s12291_s16 }
  0xb4   :  { %p9938_p10 = pnand %p9936_p9, %p9933_p8 }
  0xb6   :  { %9941 = shalt.err (!%p9938_p10)
}
  0xb7   :  { %s9942_s0 = scalar_lea.vmem %s151_s15, 8192  ;;  %p9947_p12 = scmp.lt.s32.totalorder %s151_s15, %s151_s15 }
  0xb8   :  { %p9943_p11 = scmp.ne.s32.totalorder %s151_s15, %s9942_s0  ;;  %p9948_p13 = scmp.lt.s32.totalorder %s9942_s0, %s9942_s0 }
  0xba   :  { %p9949_p0 = por %p9948_p13, %p9947_p12 }
  0xbc   :  { %p9950_p1 = pnand %p9949_p0, %p9943_p11 }
  0xbe   :  { %9953 = shalt.err (!%p9950_p1)
}
  0xbf   :  { %156 = dma.hbm_to_vmem [thread:$0]  %s12291_s16, 8192, %s151_s15, [#allocation18], %s9989_s25, %s9989_s25, %s9990_s26  }
  0xc0   :  { %s10003_s1 = smov [#allocation20]   ;;  %s9954_s3 = scalar_lea.hbm %s12293_s18, 2048 }
  0xc1   :  { %s164_s29 = sshll.u32 %s10003_s1, 4  ;;  %p9955_p2 = scmp.ne.s32.totalorder %s12293_s18, %s9954_s3  ;;  %s165_s29 = int_to_ptr.vmem [resolvable:$true] %s164_s29 }
  0xc2   :  { %p9958_p3 = scmp.lt.u32.totalorder %s9954_s3, %s12293_s18 }
  0xc4   :  { %p9960_p4 = pnand %p9958_p3, %p9955_p2 }
  0xc6   :  { %9963 = shalt.err (!%p9960_p4)
}
  0xc7   :  { %s9964_s5 = scalar_lea.vmem %s165_s29, 2048  ;;  %p9969_p6 = scmp.lt.s32.totalorder %s165_s29, %s165_s29 }
  0xc8   :  { %p9965_p5 = scmp.ne.s32.totalorder %s165_s29, %s9964_s5  ;;  %p9970_p7 = scmp.lt.s32.totalorder %s9964_s5, %s9964_s5 }
  0xca   :  { %p9971_p8 = por %p9970_p7, %p9969_p6 }
  0xcc   :  { %p9972_p9 = pnand %p9971_p8, %p9965_p5 }
  0xce   :  { %9975 = shalt.err (!%p9972_p9)
}
  0xcf   :  { %170 = dma.hbm_to_vmem [thread:$0]  %s12293_s18, 2048, %s165_s29, [#allocation21], %s9999_s10, %s9999_s10, %s10000_s24  }
  0xd0   :  { %9976 = dma.done.wait [#allocation7], 1536  }
  0xd1   :  { %9977 = vsyncadd [#allocation7], 4294965760 }
  0xd2   :  { %9978 = dma.done.wait [#allocation9], 12288  }
  0xd3   :  { %9979 = vsyncadd [#allocation9], 4294955008 }
  0xd4   :  { %9980 = dma.done.wait [#allocation12], 8704  }
  0xd5   :  { %9981 = vsyncadd [#allocation12], 4294958592 }
  0xd6   :  { %9982 = dma.done.wait [#allocation15], 9216  }
  0xd7   :  { %9983 = vsyncadd [#allocation15], 4294958080 }
  0xd8   :  { %9984 = dma.done.wait [#allocation18], 16384  }
  0xd9   :  { %9985 = vsyncadd [#allocation18], 4294950912 }
  0xda   :  { %9986 = dma.done.wait [#allocation21], 2048  }
  0xdb   :  { %9987 = vsyncadd [#allocation21], 4294965248  ;;  %v10004_v0 = vmov 0   ;;  %v9026_v1 = vld [vmem:[#allocation10 + $0x4] ss:$8 sps:$4 sm:$0xff]   ;;  %v12305_v12 = vlaneseq  ;;  %vm213_vm0 = vcmask 1045508  }
  0xdc   :  { %209 = vst [vmem:[#allocation2 + $0x28] sm:$0x11] %v10004_v0  ;;  %208 = vst [vmem:[#allocation2] sm:$0x11] %v10004_v0  ;;  %v9028_v2 = vld [vmem:[#allocation10] ss:$8 sps:$4 sm:$0xff]   ;;  %1255 = vmatprep.subr.bf16.mxu0 %v9026_v1 }
  0xdd   :  { %v9029_v3 = vld [vmem:[#allocation10 + $0x14] ss:$8 sps:$4 sm:$0xff]   ;;  %1256 = vmatpush1.bf16.msra.mxu0 %v9028_v2  ;;  %v9031_v4 = vld [vmem:[#allocation10 + $0x10] ss:$8 sps:$4 sm:$0xff]   ;;  %v9032_v5 = vld [vmem:[#allocation10 + $0x24] ss:$8 sps:$4 sm:$0xff]  }
  0xde   :  { %1257 = vmatprep.subr.bf16.mxu0 %v9029_v3  ;;  %v9034_v6 = vld [vmem:[#allocation10 + $0x20] ss:$8 sps:$4 sm:$0xff]   ;;  %v9035_v7 = vld [vmem:[#allocation10 + $0x34] ss:$8 sps:$4 sm:$0xff]   ;;  %v9037_v8 = vld [vmem:[#allocation10 + $0x30] ss:$8 sps:$4 sm:$0xff]  }
  0xdf   :  { %v9038_v9 = vld [vmem:[#allocation10 + $0x44] ss:$8 sps:$4 sm:$0xff]   ;;  %v10005_v10 = vmov 1966171168   ;;  %v9040_v13 = vld [vmem:[#allocation10 + $0x40] ss:$8 sps:$4 sm:$0xff]  }
  0xe0   :  { %v402_v11 = vunpack.c.l.s4 %v10005_v10  ;;  %v9041_v14 = vld [vmem:[#allocation10 + $0x54] ss:$8 sps:$4 sm:$0xff]   ;;  %v10273_v16 = vshrl.u32 %v12305_v12, 7  ;;  %v9043_v17 = vld [vmem:[#allocation10 + $0x50] ss:$8 sps:$4 sm:$0xff]   ;;  %vm210_vm4 = vcmask 1041408  }
  0xe1   :  { %1258 = vmatpush1.bf16.msra.mxu0 %v9031_v4  ;;  %v9044_v18 = vld [vmem:[#allocation10 + $0x64] ss:$8 sps:$4 sm:$0xff]   ;;  %v9046_v19 = vld [vmem:[#allocation10 + $0x60] ss:$8 sps:$4 sm:$0xff]   ;;  %v9047_v27 = vld [vmem:[#allocation10 + $0x74] ss:$8 sps:$4 sm:$0xff]  }
  0xe2   :  { %1259 = vmatprep.subr.bf16.mxu0 %v9032_v5  ;;  %v403_v15 = vunpack.c.0.s8 %v402_v11  ;;  %v7868_v20 = vld.sshfl [vmem:[#allocation6] sm:$0xff pattern:$0x75316420]  ;;  %v7870_v23 = vld.sshfl [vmem:[#allocation6 + $0xc] sm:$0xff pattern:$0x75316420] }
  0xe3   :  { %v7869_v22 = vld.sshfl [vmem:[#allocation6 + $0x8] sm:$0x33 pattern:$0x75316420]  ;;  %v9049_v36 = vld [vmem:[#allocation10 + $0x70] ss:$8 sps:$4 sm:$0xff]  }
  0xe4   :  { %v10276_v21 = vsub.s32 %v403_v15, %v10273_v16  ;;  %v7872_v24 = vld.sshfl [vmem:[#allocation6 + $0x18] sm:$0xff pattern:$0x75316420]  ;;  %v399_v25 = vcombine.low %v7868_v20, %v7869_v22  ;;  %v400_v26 = vcombine.high %v7868_v20, %v7869_v22  ;;  %v9050_v41 = vld [vmem:[#allocation10 + $0x84] ss:$8 sps:$4 sm:$0xff]   ;;  %vm12306_vm13 = vcmask 1040384  }
  0xe5   :  { %1260 = vmatpush1.bf16.msra.mxu0 %v9034_v6  ;;  %v7871_v28 = vld.sshfl [vmem:[#allocation6 + $0x14] sm:$0x33 pattern:$0x75316420]  ;;  %v9052_v46 = vld [vmem:[#allocation10 + $0x80] ss:$8 sps:$4 sm:$0xff]  }
  0xe6   :  { %1261 = vmatprep.subr.bf16.mxu0 %v9035_v7  ;;  %v7873_v29 = vld.sshfl [vmem:[#allocation6 + $0x20] sm:$0x33 pattern:$0x75316420]  ;;  %v10279_v30 = vrot.slane %v399_v25, %v10276_v21  ;;  %v10282_v31 = vrot.slane %v400_v26, %v10276_v21  ;;  %v431_v32 = vcombine.low %v7870_v23, %v7871_v28  ;;  %v432_v33 = vcombine.high %v7870_v23, %v7871_v28  ;;  %v9053_v62 = vld [vmem:[#allocation10 + $0x94] ss:$8 sps:$4 sm:$0xff]  }
  0xe7   :  { %v463_v34 = vcombine.low %v7872_v24, %v7873_v29  ;;  %v464_v35 = vcombine.high %v7872_v24, %v7873_v29  ;;  %v7874_v51 = vld.sshfl [vmem:[#allocation6 + $0x24] sm:$0xff pattern:$0x75316420]  ;;  %v10309_v56 = vld.sshfl [vmem:[#allocation6 + $0x30] sm:$0xff pattern:$0x75316420] }
  0xe8   :  { %v415_v37 = vcombine.high %v10279_v30, %v10279_v30  ;;  %v416_v38 = vcombine.high %v10282_v31, %v10282_v31  ;;  %v10289_v39 = vrot.slane %v431_v32, %v10276_v21  ;;  %v10292_v40 = vrot.slane %v432_v33, %v10276_v21  ;;  %v7875_v61 = vld.sshfl [vmem:[#allocation6 + $0x2c] sm:$0x33 pattern:$0x75316420]  ;;  %s12335_s10 = sld [smem:[#allocation31_spill]]  ;;  %s12336_s21 = sld [smem:[#allocation33_spill]] }
  0xe9   :  { %1262 = vmatpush1.bf16.msra.mxu0 %v9037_v8  ;;  %v10295_v42 = vrot.slane %v463_v34, %v10276_v21  ;;  %v642_v43 = vunpack.i.h.s16 %v10279_v30  ;;  %v644_v44 = vunpack.i.h.s16 %v10282_v31  ;;  %v10300_v45 = vrot.slane %v464_v35, %v10276_v21  ;;  %v10313_v3 = vld.sshfl [vmem:[#allocation6 + $0x38] sm:$0x33 pattern:$0x75316420]  ;;  %v9058_v35 = vld [vmem:[#allocation10 + $0xa0] ss:$8 sps:$4 sm:$0xff]  }
  0xea   :  { %1263 = vmatprep.subr.bf16.mxu0 %v9038_v9  ;;  %v447_v47 = vcombine.high %v10289_v39, %v10289_v39  ;;  %v448_v48 = vcombine.high %v10292_v40, %v10292_v40  ;;  %v646_v49 = vunpack.i.h.s16 %v415_v37  ;;  %v648_v50 = vunpack.i.h.s16 %v416_v38  ;;  %s12348_s15 = sld [smem:[#allocation36_spill]]  ;;  %s12350_s30 = sld [smem:[#allocation37_spill]] }
  0xeb   :  { %v650_v52 = vunpack.i.h.s16 %v10289_v39  ;;  %v652_v53 = vunpack.i.h.s16 %v10292_v40  ;;  %v7884_v54 = vpack.i.b16 %v10282_v31, %v642_v43  ;;  %v7885_v55 = vpack.i.b16 %v415_v37, %v644_v44  ;;  %v9059_v43 = vld [vmem:[#allocation10 + $0xb4] ss:$8 sps:$4 sm:$0xff]  }
  0xec   :  { %v654_v57 = vunpack.i.h.s16 %v447_v47  ;;  %v656_v58 = vunpack.i.h.s16 %v448_v48  ;;  %v7886_v59 = vpack.i.b16 %v416_v38, %v646_v49  ;;  %v7887_v60 = vpack.i.b16 %v10289_v39, %v648_v50  ;;  %v9061_v49 = vld [vmem:[#allocation10 + $0xb0] ss:$8 sps:$4 sm:$0xff]  }
  0xed   :  { %1264 = vmatpush1.bf16.msra.mxu0 %v9040_v13  ;;  %v7888_v63 = vpack.i.b16 %v10292_v40, %v650_v52  ;;  %v7889_v1 = vpack.i.b16 %v447_v47, %v652_v53  ;;  %v736_v2 = vcombine.low %v7884_v54, %v7885_v55  ;;  %v479_v4 = vcombine.high %v10295_v42, %v10295_v42  ;;  %v7878_v53 = vld.sshfl [vmem:[#allocation6 + $0x3c] sm:$0xff pattern:$0x75316420] }
  0xee   :  { %1265 = vmatprep.subr.bf16.mxu0 %v9041_v14  ;;  %v7890_v5 = vpack.i.b16 %v448_v48, %v654_v57  ;;  %v7891_v6 = vpack.i.b16 %v10295_v42, %v656_v58  ;;  %v737_v7 = vcombine.low %v7886_v59, %v7887_v60  ;;  %v480_v8 = vcombine.high %v10300_v45, %v10300_v45  ;;  %v9055_v14 = vld [vmem:[#allocation10 + $0x90] ss:$8 sps:$4 sm:$0xff]   ;;  %v7879_v59 = vld.sshfl [vmem:[#allocation6 + $0x44] sm:$0x33 pattern:$0x75316420] }
  0xef   :  { %v738_v9 = vcombine.low %v7888_v63, %v7889_v1  ;;  %v746_v10 = vrot.slane %v736_v2, %v10276_v21  ;;  %v495_v11 = vcombine.low %v7874_v51, %v7875_v61  ;;  %v496_v13 = vcombine.high %v7874_v51, %v7875_v61  ;;  %v9062_v60 = vld [vmem:[#allocation10 + $0xc4] ss:$8 sps:$4 sm:$0xff]  }
  0xf0   :  { %v739_v15 = vcombine.low %v7890_v5, %v7891_v6  ;;  %v658_v24 = vunpack.i.h.s16 %v10295_v42  ;;  %v660_v28 = vunpack.i.h.s16 %v10300_v45  ;;  %v662_v33 = vunpack.i.h.s16 %v479_v4  ;;  %v7880_v2 = vld.sshfl [vmem:[#allocation6 + $0x48] sm:$0xff pattern:$0x75316420] }
  0xf1   :  { %1266 = vmatpush1.bf16.msra.mxu0 %v9043_v17  ;;  %v753_v17 = vrot.slane %v737_v7, %v10276_v21  ;;  %v760_v20 = vrot.slane %v738_v9, %v10276_v21  ;;  %v10326_v22 = vrot.slane %v495_v11, %v10276_v21  ;;  %v10329_v23 = vrot.slane %v496_v13, %v10276_v21 }
  0xf2   :  { %1267 = vmatprep.subr.bf16.mxu0 %v9044_v18  ;;  %v527_v18 = vcombine.low %v10309_v56, %v10313_v3  ;;  %v767_v25 = vrot.slane %v739_v15, %v10276_v21  ;;  %v664_v34 = vunpack.i.h.s16 %v480_v8  ;;  %v7892_v52 = vpack.i.b16 %v10300_v45, %v658_v24 }
  0xf3   :  { %v769_v26 = vcombine.high %v746_v10, %v753_v17  ;;  %v10339_v29 = vcombine.high %v10326_v22, %v10326_v22  ;;  %v10343_v32 = vcombine.high %v10329_v23, %v10329_v23  ;;  %v768_v38 = vcombine.low %v746_v10, %v753_v17 }
  0xf4   :  { %v666_v44 = vunpack.i.h.s16 %v10326_v22  ;;  %v7893_v54 = vpack.i.b16 %v479_v4, %v660_v28  ;;  %v7894_v55 = vpack.i.b16 %v480_v8, %v662_v33  ;;  %v7895_v57 = vpack.i.b16 %v10326_v22, %v664_v34  ;;  %v7881_v8 = vld.sshfl [vmem:[#allocation6 + $0x50] sm:$0x33 pattern:$0x75316420] }
  0xf5   :  { %1268 = vmatpush1.bf16.msra.mxu0 %v9046_v19  ;;  %v9056_v19 = vld [vmem:[#allocation10 + $0xa4] ss:$8 sps:$4 sm:$0xff]   ;;  %v785_v37 = vrot.slane %v769_v26, %v10276_v21  ;;  %v670_v47 = vunpack.i.h.s16 %v10339_v29  ;;  %v703_v51 = vunpack.i.h.s16 %v10343_v32  ;;  %v528_v10 = vcombine.high %v10309_v56, %v10313_v3 }
  0xf6   :  { %1269 = vmatprep.subr.bf16.mxu0 %v9047_v27  ;;  %v10334_v27 = vrot.slane %v527_v18, %v10276_v21  ;;  %v7896_v58 = vpack.i.b16 %v10329_v23, %v666_v44  ;;  %v803_v6 = vcombine.low %v7892_v52, %v7893_v54  ;;  %v804_v7 = vcombine.low %v7894_v55, %v7895_v57  ;;  %v9068_v54 = vld [vmem:[#allocation10 + $0xe4] ss:$8 sps:$4 sm:$0xff]  }
  0xf7   :  { %v7898_v4 = vpack.i.b16 %v10343_v32, %v670_v47  ;;  %v559_v13 = vcombine.low %v7878_v53, %v7879_v59  ;;  %v560_v18 = vcombine.high %v7878_v53, %v7879_v59  ;;  %v10375_v24 = vrot.slane %v528_v10, %v10276_v21  ;;  %v7883_v47 = vld.sshfl [vmem:[#allocation6 + $0x5c] sm:$0x33 pattern:$0x75316420] }
  0xf8   :  { %v673_v48 = vunpack.i.h.s16 %v10334_v27  ;;  %v10369_v11 = vcombine.high %v10334_v27, %v10334_v27  ;;  %v813_v15 = vrot.slane %v803_v6, %v10276_v21  ;;  %v820_v17 = vrot.slane %v804_v7, %v10276_v21 }
  0xf9   :  { %1270 = vmatpush1.bf16.msra.mxu0 %v9049_v36  ;;  %v771_v36 = vcombine.high %v760_v20, %v767_v25  ;;  %v10378_v56 = vrot.slane %v559_v13, %v10276_v21  ;;  %v591_v3 = vcombine.low %v7880_v2, %v7881_v8  ;;  %v10382_v33 = vrot.slane %v560_v18, %v10276_v21 }
  0xfa   :  { %1271 = vmatprep.subr.bf16.mxu0 %v9050_v41  ;;  %v770_v41 = vcombine.low %v760_v20, %v767_v25  ;;  %v720_v5 = vpack.i.b16 %v673_v48, %v703_v51  ;;  %v9065_v25 = vld [vmem:[#allocation10 + $0xd4] ss:$8 sps:$4 sm:$0xff]   ;;  %v836_v28 = vcombine.high %v813_v15, %v820_v17  ;;  %v10386_v34 = vcombine.high %v10375_v24, %v10375_v24 }
  0xfb   :  { %v799_v50 = vrot.slane %v771_v36, %v10276_v21  ;;  %v10393_v36 = vrot.slane %v591_v3, %v10276_v21  ;;  %v835_v44 = vcombine.low %v813_v15, %v820_v17  ;;  %v9071_v15 = vld [vmem:[#allocation10 + $0xf4] ss:$8 sps:$4 sm:$0xff]   ;;  %vm214_vm1 = vsmask.f32 7954 }
  0xfc   :  { %v10359_v63 = vrot.slane %v770_v41, %v10276_v21  ;;  %v871_v51 = vcombine.low %v10386_v34, %v10378_v56  ;;  %v10409_v55 = vrot.slane %v836_v28, %v10276_v21  ;;  %vm211_vm2 = vsmask.f32 7938  ;;  %vm10704_vm3 = vmand %vm213_vm0, %vm214_vm1 }
  0xfd   :  { %1272 = vmatpush1.bf16.msra.mxu0 %v9052_v46  ;;  %v668_v46 = vunpack.i.h.s16 %v10329_v23  ;;  %v802_v61 = vcombine.low %v785_v37, %v799_v50  ;;  %v870_v37 = vcombine.low %v10375_v24, %v10369_v11  ;;  %v10401_v50 = vcombine.high %v10382_v33, %v10382_v33  ;;  %vm10709_vm5 = vmand %vm210_vm4, %vm211_vm2 }
  0xfe   :  { %1273 = vmatprep.subr.bf16.mxu0 %v9053_v62  ;;  %v10356_v62 = vrot.slane %v768_v38, %v10276_v21  ;;  %v7882_v38 = vld.sshfl [vmem:[#allocation6 + $0x54] sm:$0xff pattern:$0x75316420]  ;;  %v10416_v59 = vcombine.high %v10393_v36, %v10393_v36  ;;  %vm216_vm6 = vmor %vm10704_vm3, %vm10709_vm5  ;;  %vm226_vm14 = vcmask 1044484  }
  0xff   :  { %v7897_v1 = vpack.i.b16 %v10339_v29, %v668_v46  ;;  %1287 = vmatprep.mubr.bf16.mxu0 %v802_v61  ;;  %v880_v53 = vrot.slane %v870_v37, %v10276_v21  ;;  %v887_v61 = vrot.slane %v871_v51, %v10276_v21  ;;  %v624_v7 = vcombine.high %v7882_v38, %v7883_v47  ;;  %vm10788_vm3 = vmor %vm12306_vm13, %vm226_vm14 }
 0x100   :  { %v800_v41 = vcombine.low %v10356_v62, %v10359_v63  ;;  %v1432_v51 = vcombine.low %v10279_v30, %v10282_v31 }
 0x101   :  { %1274 = vmatpush1.bf16.msra.mxu0 %v9055_v14  ;;  %v805_v9 = vcombine.low %v7896_v58, %v7897_v1  ;;  %v806_v14 = vcombine.low %v7898_v4, %v720_v5  ;;  %v592_v58 = vcombine.high %v7880_v2, %v7881_v8  ;;  %v623_v4 = vcombine.low %v7882_v38, %v7883_v47  ;;  %v9070_v8 = vld [vmem:[#allocation10 + $0xe0] ss:$8 sps:$4 sm:$0xff]  }
 0x102   :  { %1275 = vmatprep.subr.bf16.mxu0 %v9056_v19  ;;  %v9064_v19 = vld [vmem:[#allocation10 + $0xc0] ss:$8 sps:$4 sm:$0xff]   ;;  %v10423_v5 = vrot.slane %v835_v44, %v10276_v21  ;;  %v903_v10 = vcombine.high %v880_v53, %v887_v61  ;;  %v902_v13 = vcombine.low %v880_v53, %v887_v61  ;;  %v9076_v53 = vld [vmem:[#allocation10 + $0x104] ss:$8 sps:$4 sm:$0xff]  }
 0x103   :  { %v827_v20 = vrot.slane %v805_v9, %v10276_v21  ;;  %v834_v26 = vrot.slane %v806_v14, %v10276_v21  ;;  %v10429_v2 = vrot.slane %v592_v58, %v10276_v21  ;;  %v10433_v14 = vrot.slane %v623_v4, %v10276_v21 }
 0x104   :  { %v10450_v28 = vrot.slane %v902_v13, %v10276_v21  ;;  %v1434_v58 = vcombine.low %v10289_v39, %v10292_v40 }
 0x105   :  { %1276 = vmatpush1.bf16.msra.mxu0 %v9058_v35  ;;  %v10390_v35 = vcombine.high %v10378_v56, %v10378_v56  ;;  %v837_v46 = vcombine.low %v827_v20, %v834_v26  ;;  %v10439_v18 = vcombine.high %v10429_v2, %v10429_v2  ;;  %v10454_v37 = vcombine.high %v10433_v14, %v10433_v14 }
 0x106   :  { %1277 = vmatprep.subr.bf16.mxu0 %v9059_v43  ;;  %v838_v43 = vcombine.high %v827_v20, %v834_v26  ;;  %v937_v20 = vcombine.low %v10429_v2, %v10416_v59  ;;  %v1456_v13 = vrot.slane %v1434_v58, %v10276_v21 }
 0x107   :  { %v872_v52 = vcombine.low %v10382_v33, %v10390_v35  ;;  %v10426_v6 = vrot.slane %v837_v46, %v10276_v21  ;;  %v9073_v46 = vld [vmem:[#allocation10 + $0xf0] ss:$8 sps:$4 sm:$0xff]  }
 0x108   :  { %v10412_v57 = vrot.slane %v838_v43, %v10276_v21  ;;  %v938_v43 = vcombine.low %v10439_v18, %v10433_v14  ;;  %v946_v44 = vrot.slane %v937_v20, %v10276_v21  ;;  %v7947_v20 = vpack.i.b16 %v10334_v27, %v10343_v32 }
 0x109   :  { %1278 = vmatpush1.bf16.msra.mxu0 %v9061_v49  ;;  %v9067_v49 = vld [vmem:[#allocation10 + $0xd0] ss:$8 sps:$4 sm:$0xff]   ;;  %v894_v1 = vrot.slane %v872_v52, %v10276_v21  ;;  %v7963_v52 = vcombine.high %v10279_v30, %v10282_v31  ;;  %v7964_v31 = vcombine.high %v10289_v39, %v10292_v40 }
 0x10a   :  { %1279 = vmatprep.subr.bf16.mxu0 %v9062_v60  ;;  %v873_v60 = vcombine.low %v10401_v50, %v10393_v36  ;;  %v869_v17 = vcombine.low %v10409_v55, %v10412_v57  ;;  %v953_v55 = vrot.slane %v938_v43, %v10276_v21 }
 0x10c   :  { %v901_v9 = vrot.slane %v873_v60, %v10276_v21  ;;  %v867_v60 = vcombine.low %v10423_v5, %v10426_v6  ;;  %v969_v4 = vcombine.high %v946_v44, %v953_v55 }
 0x10d   :  { %1280 = vmatpush1.bf16.msra.mxu0 %v9064_v19  ;;  %v10442_v19 = vrot.slane %v624_v7, %v10276_v21  ;;  %v968_v7 = vcombine.low %v946_v44, %v953_v55  ;;  %v7965_v55 = vcombine.high %v10295_v42, %v10300_v45 }
 0x10e   :  { %1281 = vmatprep.subr.bf16.mxu0 %v9065_v25  ;;  %v905_v3 = vcombine.high %v894_v1, %v901_v9  ;;  %v10447_v25 = vrot.slane %v903_v10, %v10276_v21  ;;  %v904_v26 = vcombine.low %v894_v1, %v901_v9  ;;  %v9074_v9 = vld [vmem:[#allocation10 + $0x100] ss:$8 sps:$4 sm:$0xff]   ;;  %v1449_v10 = vrot.slane %v7963_v52, %v10276_v21 }
 0x10f   :  { %v10458_v38 = vcombine.high %v10442_v19, %v10442_v19  ;;  %v10496_v40 = vrot.slane %v969_v4, %v10276_v21  ;;  %v10499_v43 = vrot.slane %v968_v7, %v10276_v21 }
 0x110   :  { %v10464_v47 = vrot.slane %v905_v3, %v10276_v21  ;;  %v9079_v3 = vld [vmem:[#allocation10 + $0x114] ss:$8 sps:$4 sm:$0xff]  }
 0x111   :  { %1282 = vmatpush1.bf16.msra.mxu0 %v9067_v49  ;;  %v10467_v49 = vrot.slane %v904_v26, %v10276_v21  ;;  %v967_v57 = vrot.slane %v10458_v38, %v10276_v21 }
 0x112   :  { %1283 = vmatprep.subr.bf16.mxu0 %v9068_v54  ;;  %v939_v54 = vcombine.low %v10442_v19, %v10454_v37  ;;  %v936_v61 = vcombine.low %v10447_v25, %v10464_v47  ;;  %v9086_v25 = vld [vmem:[#allocation10 + $0x140] ss:$8 sps:$4 sm:$0xff]  }
 0x113   :  { %v934_v30 = vcombine.low %v10450_v28, %v10467_v49 }
 0x114   :  { %v960_v1 = vrot.slane %v939_v54, %v10276_v21  ;;  %v1499_v54 = vcombine.low %v10295_v42, %v10300_v45 }
 0x115   :  { %1284 = vmatpush1.bf16.msra.mxu0 %v9070_v8  ;;  %v1442_v8 = vrot.slane %v1432_v51, %v10276_v21 }
 0x116   :  { %1285 = vmatprep.subr.bf16.mxu0 %v9071_v15  ;;  %v1463_v15 = vrot.slane %v7964_v31, %v10276_v21  ;;  %v971_v39 = vcombine.high %v960_v1, %v967_v57  ;;  %v970_v26 = vcombine.low %v960_v1, %v967_v57  ;;  %v9077_v57 = vld [vmem:[#allocation10 + $0x110] ss:$8 sps:$4 sm:$0xff]   ;;  %v9082_v1 = vld [vmem:[#allocation10 + $0x124] ss:$8 sps:$4 sm:$0xff]  }
 0x117   :  { %v1464_v44 = vcombine.low %v1442_v8, %v1449_v10 }
 0x118   :  { %v1466_v51 = vcombine.low %v1456_v13, %v1463_v15  ;;  %v1467_v52 = vcombine.high %v1456_v13, %v1463_v15  ;;  %v10505_v32 = vrot.slane %v971_v39, %v10276_v21  ;;  %v1516_v15 = vrot.slane %v7965_v55, %v10276_v21  ;;  %v9083_v55 = vld [vmem:[#allocation10 + $0x130] ss:$8 sps:$4 sm:$0xff]  }
 0x119   :  { %1286 = vmatpush1.bf16.msra.mxu0 %v9073_v46  ;;  %v1465_v46 = vcombine.high %v1442_v8, %v1449_v10  ;;  %v10521_v31 = vrot.slane %v1464_v44, %v10276_v21  ;;  %v1501_v8 = vcombine.low %v10326_v22, %v10329_v23  ;;  %v1509_v10 = vrot.slane %v1499_v54, %v10276_v21  ;;  %v9085_v44 = vld [vmem:[#allocation10 + $0x134] ss:$8 sps:$4 sm:$0xff]  }
 0x11a   :  { %1328 = vmatprep.subr.bf16.mxu0 %v9076_v53  ;;  %v10508_v53 = vrot.slane %v970_v26, %v10276_v21  ;;  %v1002_v4 = vcombine.low %v10496_v40, %v10505_v32  ;;  %v10528_v45 = vrot.slane %v1466_v51, %v10276_v21  ;;  %v679_v39 = vunpack.i.h.s16 %v10386_v34  ;;  %v9080_v26 = vld [vmem:[#allocation10 + $0x120] ss:$8 sps:$4 sm:$0xff]  }
 0x11b   :  { %v10515_v58 = vrot.slane %v1465_v46, %v10276_v21  ;;  %v1523_v46 = vrot.slane %v1501_v8, %v10276_v21  ;;  %v681_v23 = vunpack.i.h.s16 %v10378_v56  ;;  %v1531_v51 = vcombine.low %v1509_v10, %v1516_v15  ;;  %v9092_v40 = vld [vmem:[#allocation10 + $0x160] ss:$8 sps:$4 sm:$0xff]  }
 0x11c   :  { %1288 = vmatmul.mubr.bf16.vlgmr.msra.gmra.mrb[0].mxu0 %v800_v41  ;;  %v10518_v41 = vrot.slane %v1467_v52, %v10276_v21  ;;  %v1000_v42 = vcombine.low %v10499_v43, %v10508_v53  ;;  %v685_v52 = vunpack.i.h.s16 %v10390_v35  ;;  %v687_v54 = vunpack.i.h.s16 %v10401_v50 }
 0x11d   :  { %1329 = vmatpush1.bf16.msra.mxu0 %v9074_v9  ;;  %1297 = vmatprep.mubr.bf16.mxu0 %v869_v17  ;;  %v675_v17 = vunpack.i.h.s16 %v10375_v24  ;;  %v1502_v9 = vcombine.low %v10339_v29, %v7947_v20  ;;  %v683_v29 = vunpack.i.h.s16 %v10382_v33  ;;  %v1532_v20 = vcombine.high %v1509_v10, %v1516_v15 }
 0x11e   :  { %1330 = vmatprep.subr.bf16.mxu0 %v9079_v3  ;;  %v1498_v7 = vcombine.low %v10515_v58, %v10518_v41  ;;  %v677_v3 = vunpack.i.h.s16 %v10369_v11  ;;  %v7948_v8 = vpack.i.b16 %v10375_v24, %v673_v48  ;;  %v10559_v15 = vrot.slane %v1531_v51, %v10276_v21  ;;  %v9139_v58 = vld [vmem:[#allocation8 + $0xd4] ss:$8 sps:$4 sm:$0xff]   ;;  %v9137_v41 = vld [vmem:[#allocation8 + $0xd0] ss:$8 sps:$4 sm:$0xff]  }
 0x11f   :  { %v1530_v22 = vrot.slane %v1502_v9, %v10276_v21  ;;  %v7949_v9 = vpack.i.b16 %v10369_v11, %v675_v17  ;;  %v10556_v10 = vrot.slane %v1532_v20, %v10276_v21  ;;  %v7952_v11 = vpack.i.b16 %v10382_v33, %v681_v23 }
 0x120   :  { %v7950_v13 = vpack.i.b16 %v10386_v34, %v677_v3  ;;  %v689_v24 = vunpack.i.h.s16 %v10393_v36  ;;  %v7953_v34 = vpack.i.b16 %v10390_v35, %v683_v29  ;;  %v691_v33 = vunpack.i.h.s16 %v10429_v2  ;;  %v9091_v3 = vld [vmem:[#allocation10 + $0x154] ss:$8 sps:$4 sm:$0xff]  }
 0x121   :  { %1331 = vmatpush1.bf16.msra.mxu0 %v9077_v57  ;;  %v1534_v12 = vcombine.high %v1523_v46, %v1530_v22  ;;  %v1533_v57 = vcombine.low %v1523_v46, %v1530_v22  ;;  %v7951_v46 = vpack.i.b16 %v10378_v56, %v679_v39  ;;  %v7954_v56 = vpack.i.b16 %v10401_v50, %v685_v52  ;;  %v9089_v52 = vld [vmem:[#allocation10 + $0x150] ss:$8 sps:$4 sm:$0xff]  }
 0x122   :  { %1332 = vmatprep.subr.bf16.mxu0 %v9082_v1  ;;  %v9088_v1 = vld [vmem:[#allocation10 + $0x144] ss:$8 sps:$4 sm:$0xff]   ;;  %v1566_v17 = vcombine.low %v7948_v8, %v7949_v9  ;;  %v1568_v39 = vcombine.low %v7952_v11, %v7953_v34  ;;  %v693_v50 = vunpack.i.h.s16 %v10416_v59  ;;  %v697_v22 = vunpack.i.h.s16 %v10433_v14 }
 0x123   :  { %v10567_v27 = vrot.slane %v1534_v12, %v10276_v21  ;;  %v10570_v48 = vrot.slane %v1533_v57, %v10276_v21  ;;  %v699_v23 = vunpack.i.h.s16 %v10442_v19  ;;  %v701_v20 = vunpack.i.h.s16 %v10454_v37  ;;  %v9094_v9 = vld [vmem:[#allocation10 + $0x164] ss:$8 sps:$4 sm:$0xff]  }
 0x124   :  { %1298 = vmatmul.mubr.bf16.gmra.mrb[4].mxu0 %v867_v60  ;;  %v7955_v60 = vpack.i.b16 %v10393_v36, %v687_v54  ;;  %v1576_v35 = vrot.slane %v1566_v17, %v10276_v21  ;;  %v7956_v51 = vpack.i.b16 %v10429_v2, %v689_v24  ;;  %v7957_v57 = vpack.i.b16 %v10416_v59, %v691_v33 }
 0x125   :  { %1333 = vmatpush1.bf16.msra.mxu0 %v9080_v26  ;;  %1307 = vmatprep.mubr.bf16.mxu0 %v936_v61  ;;  %v1565_v12 = vcombine.low %v10556_v10, %v10567_v27  ;;  %v1563_v47 = vcombine.low %v10559_v15, %v10570_v48  ;;  %v1567_v61 = vcombine.low %v7950_v13, %v7951_v46  ;;  %v9163_v10 = vld [vmem:[#allocation8 + $0x154] ss:$8 sps:$4 sm:$0xff]   ;;  %v9161_v27 = vld [vmem:[#allocation8 + $0x150] ss:$8 sps:$4 sm:$0xff]  }
 0x126   :  { %1334 = vmatprep.subr.bf16.mxu0 %v9085_v44  ;;  %v1569_v26 = vcombine.low %v7954_v56, %v7955_v60  ;;  %v695_v44 = vunpack.i.h.s16 %v10439_v18  ;;  %v1590_v13 = vrot.slane %v1568_v39, %v10276_v21  ;;  %v7958_v8 = vpack.i.b16 %v10439_v18, %v693_v50 }
 0x127   :  { %v1583_v36 = vrot.slane %v1567_v61, %v10276_v21  ;;  %v7960_v34 = vpack.i.b16 %v10442_v19, %v697_v22  ;;  %v7961_v18 = vpack.i.b16 %v10454_v37, %v699_v23  ;;  %v7962_v19 = vpack.i.b16 %v10458_v38, %v701_v20  ;;  %v9097_v37 = vld [vmem:[#allocation10 + $0x174] ss:$8 sps:$4 sm:$0xff]   ;;  %v9100_v22 = vld [vmem:[#allocation8 + $0x4] ss:$8 sps:$4 sm:$0xff]  }
 0x128   :  { %v1597_v29 = vrot.slane %v1569_v26, %v10276_v21  ;;  %v7959_v11 = vpack.i.b16 %v10433_v14, %v695_v44  ;;  %v1633_v24 = vcombine.low %v7956_v51, %v7957_v57  ;;  %v1497_v56 = vcombine.high %v10521_v31, %v10528_v45  ;;  %v9095_v26 = vld [vmem:[#allocation10 + $0x170] ss:$8 sps:$4 sm:$0xff]   ;;  %v9098_v51 = vld [vmem:[#allocation8] ss:$8 sps:$4 sm:$0xff]  }
 0x129   :  { %1335 = vmatpush1.bf16.msra.mxu0 %v9083_v55  ;;  %v1599_v54 = vcombine.high %v1576_v35, %v1583_v36  ;;  %v1598_v55 = vcombine.low %v1576_v35, %v1583_v36  ;;  %v1564_v60 = vcombine.high %v10559_v15, %v10570_v48  ;;  %v1663_v38 = vrot.slane %v7962_v19, %v10276_v21  ;;  %v9176_v15 = vld [vmem:[#allocation11 + $0x24] ss:$8 sps:$4 sm:$0xff]   ;;  %v9178_v48 = vld [vmem:[#allocation11 + $0x20] ss:$8 sps:$4 sm:$0xff]  }
 0x12a   :  { %1336 = vmatprep.subr.bf16.mxu0 %v9088_v1  ;;  %v1601_v1 = vcombine.high %v1590_v13, %v1597_v29  ;;  %v1600_v46 = vcombine.low %v1590_v13, %v1597_v29  ;;  %v1634_v32 = vcombine.low %v7958_v8, %v7959_v11  ;;  %v1642_v61 = vrot.slane %v1633_v24, %v10276_v21  ;;  %v9101_v8 = vld [vmem:[#allocation8 + $0x10] ss:$8 sps:$4 sm:$0xff]   ;;  %v9112_v11 = vld [vmem:[#allocation8 + $0x44] ss:$8 sps:$4 sm:$0xff]  }
 0x12b   :  { %v10603_v59 = vrot.slane %v1599_v54, %v10276_v21  ;;  %v10606_v2 = vrot.slane %v1598_v55, %v10276_v21  ;;  %v9103_v54 = vld [vmem:[#allocation8 + $0x14] ss:$8 sps:$4 sm:$0xff]   ;;  %v935_v19 = vcombine.high %v10450_v28, %v10467_v49  ;;  %v9113_v24 = vld [vmem:[#allocation8 + $0x50] ss:$8 sps:$4 sm:$0xff]   ;;  %v9122_v28 = vld [vmem:[#allocation8 + $0x80] ss:$8 sps:$4 sm:$0xff]  }
 0x12c   :  { %1308 = vmatmul.mubr.bf16.gmra.mrb[8].mxu0 %v934_v30  ;;  %v10610_v30 = vrot.slane %v1601_v1, %v10276_v21  ;;  %v10613_v14 = vrot.slane %v1600_v46, %v10276_v21  ;;  %v1649_v33 = vrot.slane %v1634_v32, %v10276_v21  ;;  %v9104_v1 = vld [vmem:[#allocation8 + $0x20] ss:$8 sps:$4 sm:$0xff]   ;;  %v9109_v46 = vld [vmem:[#allocation8 + $0x34] ss:$8 sps:$4 sm:$0xff]   ;;  %v1001_v32 = vcombine.high %v10499_v43, %v10508_v53 }
 0x12d   :  { %1337 = vmatpush1.bf16.msra.mxu0 %v9086_v25  ;;  %1317 = vmatprep.mubr.bf16.mxu0 %v1002_v4  ;;  %v1635_v4 = vcombine.low %v7960_v34, %v7961_v18  ;;  %v9110_v34 = vld [vmem:[#allocation8 + $0x40] ss:$8 sps:$4 sm:$0xff]   ;;  %v9115_v18 = vld [vmem:[#allocation8 + $0x54] ss:$8 sps:$4 sm:$0xff]  }
 0x12e   :  { %1338 = vmatprep.subr.bf16.mxu0 %v9091_v3  ;;  %v1632_v17 = vcombine.low %v10603_v59, %v10610_v30  ;;  %v1630_v25 = vcombine.low %v10606_v2, %v10613_v14  ;;  %v1631_v39 = vcombine.high %v10606_v2, %v10613_v14  ;;  %v1665_v35 = vcombine.high %v1642_v61, %v1649_v33  ;;  %v9127_v49 = vld [vmem:[#allocation8 + $0x94] ss:$8 sps:$4 sm:$0xff]   ;;  %v9128_v43 = vld [vmem:[#allocation8 + $0xa0] ss:$8 sps:$4 sm:$0xff]   ;;  %v9167_v30 = vld [vmem:[#allocation8 + $0x170] ss:$8 sps:$4 sm:$0xff]  }
 0x12f   :  { %v1656_v3 = vrot.slane %v1635_v4, %v10276_v21  ;;  %v1664_v36 = vcombine.low %v1642_v61, %v1649_v33  ;;  %v9119_v4 = vld [vmem:[#allocation8 + $0x70] ss:$8 sps:$4 sm:$0xff]   ;;  %v9133_v53 = vld [vmem:[#allocation8 + $0xb4] ss:$8 sps:$4 sm:$0xff]  }
 0x130   :  { %v10635_v23 = vrot.slane %v1665_v35, %v10276_v21  ;;  %v9125_v61 = vld [vmem:[#allocation8 + $0x90] ss:$8 sps:$4 sm:$0xff]   ;;  %v9140_v35 = vld [vmem:[#allocation8 + $0xe0] ss:$8 sps:$4 sm:$0xff]   ;;  %v9169_v59 = vld [vmem:[#allocation8 + $0x174] ss:$8 sps:$4 sm:$0xff]  }
 0x131   :  { %1339 = vmatpush1.bf16.msra.mxu0 %v9089_v52  ;;  %v1667_v50 = vcombine.high %v1656_v3, %v1663_v38  ;;  %v1666_v44 = vcombine.low %v1656_v3, %v1663_v38  ;;  %v10641_v29 = vrot.slane %v1664_v36, %v10276_v21  ;;  %v801_v52 = vcombine.high %v10356_v62, %v10359_v63  ;;  %v9107_v63 = vld [vmem:[#allocation8 + $0x30] ss:$8 sps:$4 sm:$0xff]   ;;  %v9130_v38 = vld [vmem:[#allocation8 + $0xa4] ss:$8 sps:$4 sm:$0xff]   ;;  %v9179_v2 = vld [vmem:[#allocation11 + $0x34] ss:$8 sps:$4 sm:$0xff]  }
 0x132   :  { %1340 = vmatprep.subr.bf16.mxu0 %v9094_v9  ;;  %v9106_v9 = vld [vmem:[#allocation8 + $0x24] ss:$8 sps:$4 sm:$0xff]   ;;  %v868_v62 = vcombine.high %v10423_v5, %v10426_v6  ;;  %v9116_v5 = vld [vmem:[#allocation8 + $0x60] ss:$8 sps:$4 sm:$0xff]   ;;  %v9121_v6 = vld [vmem:[#allocation8 + $0x74] ss:$8 sps:$4 sm:$0xff]  }
 0x133   :  { %v10638_v13 = vrot.slane %v1667_v50, %v10276_v21  ;;  %v10644_v20 = vrot.slane %v1666_v44, %v10276_v21  ;;  %v9131_v33 = vld [vmem:[#allocation8 + $0xb0] ss:$8 sps:$4 sm:$0xff]   ;;  %v9136_v3 = vld [vmem:[#allocation8 + $0xc4] ss:$8 sps:$4 sm:$0xff]   ;;  %v9145_v50 = vld [vmem:[#allocation8 + $0xf4] ss:$8 sps:$4 sm:$0xff]  }
 0x134   :  { %1318 = vmatmul.mubr.bf16.gmra.mrb[12].mxu0 %v1000_v42  ;;  %v9143_v36 = vld [vmem:[#allocation8 + $0xf0] ss:$8 sps:$4 sm:$0xff]   ;;  %v9148_v44 = vld [vmem:[#allocation8 + $0x104] ss:$8 sps:$4 sm:$0xff]  }
 0x135   :  { %1341 = vmatpush1.bf16.msra.mxu0 %v9092_v40  ;;  %1360 = vmatprep.mubr.bf16.mxu0 %v10004_v0  ;;  %v1698_v42 = vcombine.low %v10635_v23, %v10638_v13  ;;  %v1696_v55 = vcombine.low %v10641_v29, %v10644_v20  ;;  %v1697_v57 = vcombine.high %v10641_v29, %v10644_v20  ;;  %v9118_v40 = vld [vmem:[#allocation8 + $0x64] ss:$8 sps:$4 sm:$0xff]   ;;  %v9181_v14 = vld [vmem:[#allocation11 + $0x30] ss:$8 sps:$4 sm:$0xff]   ;;  %v9185_v29 = vld [vmem:[#allocation11 + $0x54] ss:$8 sps:$4 sm:$0xff]  }
 0x136   :  { %1342 = vmatprep.subr.bf16.mxu0 %v9097_v37  ;;  %v9124_v37 = vld [vmem:[#allocation8 + $0x84] ss:$8 sps:$4 sm:$0xff]   ;;  %v217_v23 = vld [vmem:[#allocation2 + $0x20] sm:$0x33] }
 0x137   :  { %v218_v13 = vsel %vm216_vm6, 0, %v217_v23  ;;  %v9187_v20 = vld [vmem:[#allocation11 + $0x50] ss:$8 sps:$4 sm:$0xff]  }
 0x138   :  { %219 = vst [vmem:[#allocation2 + $0x20] sm:$0x33] %v218_v13 }
 0x139   :  { %1343 = vmatpush1.bf16.msra.mxu0 %v9095_v26  ;;  %v9134_v26 = vld [vmem:[#allocation8 + $0xc0] ss:$8 sps:$4 sm:$0xff]  }
 0x13a   :  { %1951 = vmatprep.subr.bf16.mxu0 %v9100_v22  ;;  %v9146_v22 = vld [vmem:[#allocation8 + $0x100] ss:$8 sps:$4 sm:$0xff]  }
 0x13c   :  { %1361 = vmatmul.mubr.bf16.vlgmr.msra.gmra.mrb[0].mxu0 %v801_v52  ;;  %v9149_v52 = vld [vmem:[#allocation8 + $0x110] ss:$8 sps:$4 sm:$0xff]  }
 0x13d   :  { %1952 = vmatpush1.bf16.msra.mxu0 %v9098_v51  ;;  %1370 = vmatprep.mubr.bf16.mxu0 %v10004_v0  ;;  %v9151_v51 = vld [vmem:[#allocation8 + $0x114] ss:$8 sps:$4 sm:$0xff]  }
 0x13e   :  { %1953 = vmatprep.subr.bf16.mxu0 %v9103_v54  ;;  %v12322_v54 = vcombine.low %v10521_v31, %v10528_v45  ;;  %v9170_v31 = vld [vmem:[#allocation11 + $0x4] ss:$8 sps:$4 sm:$0xff]   ;;  %v9172_v45 = vld [vmem:[#allocation11] ss:$8 sps:$4 sm:$0xff]  }
 0x13f   :  { %3861 = vmatprep.subr.bf16.mxu1 %v9170_v31 }
 0x140   :  { %3862 = vmatpush1.bf16.msra.mxu1 %v9172_v45 }
 0x141   :  { %1954 = vmatpush1.bf16.msra.mxu0 %v9101_v8  ;;  %v9154_v8 = vld [vmem:[#allocation8 + $0x124] ss:$8 sps:$4 sm:$0xff]  }
 0x142   :  { %1955 = vmatprep.subr.bf16.mxu0 %v9106_v9  ;;  %v9152_v9 = vld [vmem:[#allocation8 + $0x120] ss:$8 sps:$4 sm:$0xff]  }
 0x144   :  { %1371 = vmatmul.mubr.bf16.gmra.mrb[4].mxu0 %v868_v62  ;;  %v9160_v62 = vld [vmem:[#allocation8 + $0x144] ss:$8 sps:$4 sm:$0xff]  }
 0x145   :  { %1956 = vmatpush1.bf16.msra.mxu0 %v9104_v1  ;;  %1380 = vmatprep.mubr.bf16.mxu0 %v10004_v0  ;;  %v9157_v1 = vld [vmem:[#allocation8 + $0x134] ss:$8 sps:$4 sm:$0xff]  }
 0x146   :  { %1957 = vmatprep.subr.bf16.mxu0 %v9109_v46  ;;  %v9155_v46 = vld [vmem:[#allocation8 + $0x130] ss:$8 sps:$4 sm:$0xff]  }
 0x149   :  { %1958 = vmatpush1.bf16.msra.mxu0 %v9107_v63  ;;  %v9158_v63 = vld [vmem:[#allocation8 + $0x140] ss:$8 sps:$4 sm:$0xff]  }
 0x14a   :  { %1959 = vmatprep.subr.bf16.mxu0 %v9112_v11  ;;  %v9193_v11 = vld [vmem:[#allocation11 + $0x70] ss:$8 sps:$4 sm:$0xff]  }
 0x14c   :  { %1381 = vmatmul.mubr.bf16.gmra.mrb[8].mxu0 %v935_v19  ;;  %v9197_v19 = vld [vmem:[#allocation11 + $0x94] ss:$8 sps:$4 sm:$0xff]  }
 0x14d   :  { %1960 = vmatpush1.bf16.msra.mxu0 %v9110_v34  ;;  %1390 = vmatprep.mubr.bf16.mxu0 %v10004_v0  ;;  %v9194_v34 = vld [vmem:[#allocation11 + $0x84] ss:$8 sps:$4 sm:$0xff]  }
 0x14e   :  { %1961 = vmatprep.subr.bf16.mxu0 %v9115_v18  ;;  %v9196_v18 = vld [vmem:[#allocation11 + $0x80] ss:$8 sps:$4 sm:$0xff]  }
 0x151   :  { %1962 = vmatpush1.bf16.msra.mxu0 %v9113_v24  ;;  %v9199_v24 = vld [vmem:[#allocation11 + $0x90] ss:$8 sps:$4 sm:$0xff]  }
 0x152   :  { %1963 = vmatprep.subr.bf16.mxu0 %v9118_v40  ;;  %v9200_v40 = vld [vmem:[#allocation11 + $0xa4] ss:$8 sps:$4 sm:$0xff]  }
 0x154   :  { %1391 = vmatmul.mubr.bf16.gmra.mrb[12].mxu0 %v1001_v32 }
 0x155   :  { %1964 = vmatpush1.bf16.msra.mxu0 %v9116_v5  ;;  %1983 = vmatprep.mubr.bf16.mxu0 %v1498_v7  ;;  %v9142_v7 = vld [vmem:[#allocation8 + $0xe4] ss:$8 sps:$4 sm:$0xff]  }
 0x156   :  { %1965 = vmatprep.subr.bf16.mxu0 %v9121_v6  ;;  %v220_v5 = vld [vmem:[#allocation2 + $0x48] sm:$0x33] }
 0x157   :  { %v9202_v6 = vld [vmem:[#allocation11 + $0xa0] ss:$8 sps:$4 sm:$0xff]   ;;  %v221_v32 = vsel %vm216_vm6, 0, %v220_v5  ;;  %vm224_vm6 = vsmask.f32 256 }
 0x158   :  { %222 = vst [vmem:[#allocation2 + $0x48] sm:$0x33] %v221_v32 }
 0x159   :  { %1966 = vmatpush1.bf16.msra.mxu0 %v9119_v4  ;;  %v9203_v4 = vld [vmem:[#allocation11 + $0xb4] ss:$8 sps:$4 sm:$0xff]  }
 0x15a   :  { %1967 = vmatprep.subr.bf16.mxu0 %v9124_v37  ;;  %v9205_v37 = vld [vmem:[#allocation11 + $0xb0] ss:$8 sps:$4 sm:$0xff]  }
 0x15d   :  { %1968 = vmatpush1.bf16.msra.mxu0 %v9122_v28  ;;  %v9206_v28 = vld [vmem:[#allocation11 + $0xc4] ss:$8 sps:$4 sm:$0xff]  }
 0x15e   :  { %1969 = vmatprep.subr.bf16.mxu0 %v9127_v49  ;;  %v9208_v49 = vld [vmem:[#allocation11 + $0xc0] ss:$8 sps:$4 sm:$0xff]  }
 0x161   :  { %1970 = vmatpush1.bf16.msra.mxu0 %v9125_v61  ;;  %v9209_v61 = vld [vmem:[#allocation11 + $0xd4] ss:$8 sps:$4 sm:$0xff]  }
 0x162   :  { %1971 = vmatprep.subr.bf16.mxu0 %v9130_v38  ;;  %v9211_v38 = vld [vmem:[#allocation11 + $0xd0] ss:$8 sps:$4 sm:$0xff]  }
 0x165   :  { %1972 = vmatpush1.bf16.msra.mxu0 %v9128_v43  ;;  %v9212_v43 = vld [vmem:[#allocation11 + $0xe4] ss:$8 sps:$4 sm:$0xff]  }
 0x166   :  { %1973 = vmatprep.subr.bf16.mxu0 %v9133_v53  ;;  %v9214_v53 = vld [vmem:[#allocation11 + $0xe0] ss:$8 sps:$4 sm:$0xff]  }
 0x169   :  { %1974 = vmatpush1.bf16.msra.mxu0 %v9131_v33  ;;  %v9215_v33 = vld [vmem:[#allocation11 + $0xf4] ss:$8 sps:$4 sm:$0xff]  }
 0x16a   :  { %1975 = vmatprep.subr.bf16.mxu0 %v9136_v3  ;;  %v9217_v3 = vld [vmem:[#allocation11 + $0xf0] ss:$8 sps:$4 sm:$0xff]  }
 0x16d   :  { %1976 = vmatpush1.bf16.msra.mxu0 %v9134_v26  ;;  %v9220_v26 = vld [vmem:[#allocation11 + $0x104] ss:$8 sps:$4 sm:$0xff]  }
 0x16e   :  { %1977 = vmatprep.subr.bf16.mxu0 %v9139_v58 }
 0x171   :  { %1978 = vmatpush1.bf16.msra.mxu0 %v9137_v41  ;;  %v10006_v41 = vmov 1983009808  }
 0x172   :  { %1979 = vmatprep.subr.bf16.mxu0 %v9142_v7  ;;  %v3466_v7 = vunpack.c.l.s4 %v10006_v41 }
 0x175   :  { %1980 = vmatpush1.bf16.msra.mxu0 %v9140_v35 }
 0x176   :  { %1981 = vmatprep.subr.bf16.mxu0 %v9145_v50 }
 0x179   :  { %1982 = vmatpush1.bf16.msra.mxu0 %v9143_v36 }
 0x17a   :  { %2024 = vmatprep.subr.bf16.mxu0 %v9148_v44 }
 0x17c   :  { %1984 = vmatmul.mubr.bf16.vlgmr.msra.gmra.mrb[0].mxu0 %v12322_v54 }
 0x17d   :  { %2025 = vmatpush1.bf16.msra.mxu0 %v9146_v22  ;;  %1993 = vmatprep.mubr.bf16.mxu0 %v1565_v12  ;;  %v9166_v12 = vld [vmem:[#allocation8 + $0x164] ss:$8 sps:$4 sm:$0xff]  }
 0x17e   :  { %2026 = vmatprep.subr.bf16.mxu0 %v9151_v51 }
 0x181   :  { %2027 = vmatpush1.bf16.msra.mxu0 %v9149_v52 }
 0x182   :  { %2028 = vmatprep.subr.bf16.mxu0 %v9154_v8 }
 0x184   :  { %1994 = vmatmul.mubr.bf16.gmra.mrb[4].mxu0 %v1563_v47  ;;  %v9164_v47 = vld [vmem:[#allocation8 + $0x160] ss:$8 sps:$4 sm:$0xff]  }
 0x185   :  { %2029 = vmatpush1.bf16.msra.mxu0 %v9152_v9  ;;  %2003 = vmatprep.mubr.bf16.mxu0 %v1632_v17  ;;  %v9175_v17 = vld [vmem:[#allocation11 + $0x10] ss:$8 sps:$4 sm:$0xff]   ;;  %v3467_v9 = vunpack.c.0.s8 %v3466_v7 }
 0x186   :  { %2030 = vmatprep.subr.bf16.mxu0 %v9157_v1 }
 0x189   :  { %2031 = vmatpush1.bf16.msra.mxu0 %v9155_v46 }
 0x18a   :  { %2032 = vmatprep.subr.bf16.mxu0 %v9160_v62 }
 0x18c   :  { %2004 = vmatmul.mubr.bf16.gmra.mrb[8].mxu0 %v1630_v25 }
 0x18d   :  { %2033 = vmatpush1.bf16.msra.mxu0 %v9158_v63  ;;  %2013 = vmatprep.mubr.bf16.mxu0 %v1698_v42  ;;  %v9188_v42 = vld [vmem:[#allocation11 + $0x64] ss:$8 sps:$4 sm:$0xff]  }
 0x18e   :  { %2034 = vmatprep.subr.bf16.mxu0 %v9163_v10 }
 0x191   :  { %2035 = vmatpush1.bf16.msra.mxu0 %v9161_v27 }
 0x192   :  { %2036 = vmatprep.subr.bf16.mxu0 %v9166_v12 }
 0x194   :  { %2014 = vmatmul.mubr.bf16.gmra.mrb[12].mxu0 %v1696_v55  ;;  %v9190_v55 = vld [vmem:[#allocation11 + $0x60] ss:$8 sps:$4 sm:$0xff]  }
 0x195   :  { %2037 = vmatpush1.bf16.msra.mxu0 %v9164_v47  ;;  %2056 = vmatprep.mubr.bf16.mxu0 %v10004_v0 }
 0x196   :  { %2038 = vmatprep.subr.bf16.mxu0 %v9169_v59 }
 0x199   :  { %2039 = vmatpush1.bf16.msra.mxu0 %v9167_v30  ;;  %v10730_v30 = vsub.s32 %v3467_v9, %v10273_v16 }
 0x19c   :  { %2057 = vmatmul.mubr.bf16.vlgmr.msra.gmra.mrb[0].mxu0 %v1497_v56  ;;  %v9173_v56 = vld [vmem:[#allocation11 + $0x14] ss:$8 sps:$4 sm:$0xff]  }
 0x19d   :  { %2066 = vmatprep.mubr.bf16.mxu0 %v10004_v0  ;;  %3863 = vmatprep.subr.bf16.mxu1 %v9173_v56 }
 0x19e   :  { %3864 = vmatpush1.bf16.msra.mxu1 %v9175_v17 }
 0x19f   :  { %3865 = vmatprep.subr.bf16.mxu1 %v9176_v15 }
 0x1a2   :  { %3866 = vmatpush1.bf16.msra.mxu1 %v9178_v48 }
 0x1a3   :  { %3867 = vmatprep.subr.bf16.mxu1 %v9179_v2 }
 0x1a4   :  { %2067 = vmatmul.mubr.bf16.gmra.mrb[4].mxu0 %v1564_v60 }
 0x1a5   :  { %2076 = vmatprep.mubr.bf16.mxu0 %v10004_v0 }
 0x1a6   :  { %3868 = vmatpush1.bf16.msra.mxu1 %v9181_v14 }
 0x1ac   :  { %2077 = vmatmul.mubr.bf16.gmra.mrb[8].mxu0 %v1631_v39  ;;  %v9184_v39 = vld [vmem:[#allocation11 + $0x40] ss:$8 sps:$4 sm:$0xff]  }
 0x1ad   :  { %2086 = vmatprep.mubr.bf16.mxu0 %v10004_v0  ;;  %v9182_v0 = vld [vmem:[#allocation11 + $0x44] ss:$8 sps:$4 sm:$0xff]  }
 0x1ae   :  { %3869 = vmatprep.subr.bf16.mxu1 %v9182_v0 }
 0x1af   :  { %3870 = vmatpush1.bf16.msra.mxu1 %v9184_v39 }
 0x1b0   :  { %3871 = vmatprep.subr.bf16.mxu1 %v9185_v29 }
 0x1b3   :  { %3872 = vmatpush1.bf16.msra.mxu1 %v9187_v20 }
 0x1b4   :  { %2087 = vmatmul.mubr.bf16.gmra.mrb[12].mxu0 %v1697_v57  ;;  %3873 = vmatprep.subr.bf16.mxu1 %v9188_v42  ;;  %v9191_v57 = vld [vmem:[#allocation11 + $0x74] ss:$8 sps:$4 sm:$0xff]  }
 0x1b7   :  { %3874 = vmatpush1.bf16.msra.mxu1 %v9190_v55 }
 0x1b8   :  { %3875 = vmatprep.subr.bf16.mxu1 %v9191_v57 }
 0x1bb   :  { %3876 = vmatpush1.bf16.msra.mxu1 %v9193_v11 }
 0x1bc   :  { %3877 = vmatprep.subr.bf16.mxu1 %v9194_v34 }
 0x1bf   :  { %3878 = vmatpush1.bf16.msra.mxu1 %v9196_v18 }
 0x1c0   :  { %3879 = vmatprep.subr.bf16.mxu1 %v9197_v19 }
 0x1c3   :  { %3880 = vmatpush1.bf16.msra.mxu1 %v9199_v24 }
 0x1c4   :  { %3881 = vmatprep.subr.bf16.mxu1 %v9200_v40 }
 0x1c7   :  { %3882 = vmatpush1.bf16.msra.mxu1 %v9202_v6 }
 0x1c8   :  { %3883 = vmatprep.subr.bf16.mxu1 %v9203_v4 }
 0x1cb   :  { %3884 = vmatpush1.bf16.msra.mxu1 %v9205_v37 }
 0x1cc   :  { %3885 = vmatprep.subr.bf16.mxu1 %v9206_v28 }
 0x1cf   :  { %3886 = vmatpush1.bf16.msra.mxu1 %v9208_v49 }
 0x1d0   :  { %3887 = vmatprep.subr.bf16.mxu1 %v9209_v61 }
 0x1d3   :  { %3888 = vmatpush1.bf16.msra.mxu1 %v9211_v38 }
 0x1d4   :  { %3889 = vmatprep.subr.bf16.mxu1 %v9212_v43 }
 0x1d7   :  { %3890 = vmatpush1.bf16.msra.mxu1 %v9214_v53 }
 0x1d8   :  { %3891 = vmatprep.subr.bf16.mxu1 %v9215_v33 }
 0x1db   :  { %3892 = vmatpush1.bf16.msra.mxu1 %v9217_v3 }
 0x1dc   :  { %3914 = vmatprep.subr.bf16.mxu1 %v9220_v26 }
 0x26f   :  { %v2058_v58 = vpop.f32.mrb[0].mxu0 }
 0x270   :  { %vm2097_vm7 = vcmp.ge.f32.partialorder %v2058_v58, 0.0  ;;  %v2113_v35 = vmul.f32 0.2, %v2058_v58  ;;  %v2060_v50 = vpop.f32.mrb[1].mxu0 }
 0x271   :  { %vm2098_vm8 = vcmp.ge.f32.partialorder %v2060_v50, 0.0  ;;  %v2114_v36 = vmul.f32 0.2, %v2060_v50  ;;  %v2062_v44 = vpop.f32.mrb[2].mxu0 }
 0x272   :  { %v2129_v22 = vsel %vm2097_vm7, %v2058_v58, %v2113_v35  ;;  %vm2099_vm9 = vcmp.ge.f32.partialorder %v2062_v44, 0.0  ;;  %v2115_v51 = vmul.f32 0.2, %v2062_v44  ;;  %v2064_v52 = vpop.f32.mrb[3].mxu0  ;;  %vm227_vm7 = vsmask.f32 4352 }
 0x273   :  { %v2130_v54 = vsel %vm2098_vm8, %v2060_v50, %v2114_v36  ;;  %vm2100_vm10 = vcmp.ge.f32.partialorder %v2064_v52, 0.0  ;;  %v2116_v8 = vmul.f32 0.2, %v2064_v52 }
 0x274   :  { %v2161_v1 = vcombine.low %v2129_v22, %v2130_v54  ;;  %v2162_v46 = vcombine.high %v2129_v22, %v2130_v54  ;;  %v2131_v62 = vsel %vm2099_vm9, %v2062_v44, %v2115_v51  ;;  %vm10851_vm9 = vmand %vm12306_vm13, %vm224_vm6 }
 0x275   :  { %v2132_v63 = vsel %vm2100_vm10, %v2064_v52, %v2116_v8 }
 0x276   :  { %v2169_v10 = vrot.slane %v2161_v1, %v10276_v21  ;;  %v2176_v27 = vrot.slane %v2162_v46, %v10276_v21  ;;  %v2211_v12 = vcombine.low %v2131_v62, %v2132_v63  ;;  %v2212_v47 = vcombine.high %v2131_v62, %v2132_v63 }
 0x277   :  { %v2068_v59 = vpop.f32.mrb[4].mxu0 }
 0x278   :  { %v2177_v31 = vcombine.high %v2169_v10, %v2169_v10  ;;  %v2178_v45 = vcombine.high %v2176_v27, %v2176_v27  ;;  %v2185_v56 = vrot.slane %v2169_v10, %v10276_v21  ;;  %v2192_v17 = vrot.slane %v2176_v27, %v10276_v21  ;;  %v2070_v15 = vpop.f32.mrb[5].mxu0 }
 0x279   :  { %v2219_v48 = vrot.slane %v2211_v12, %v10276_v21  ;;  %v2226_v2 = vrot.slane %v2212_v47, %v10276_v21  ;;  %vm2101_vm11 = vcmp.ge.f32.partialorder %v2068_v59, 0.0  ;;  %v2117_v14 = vmul.f32 0.2, %v2068_v59  ;;  %v10736_v0 = vpop.f32.mrb[6].mxu0 }
 0x27a   :  { %v2199_v60 = vrot.slane %v2177_v31, %v10276_v21  ;;  %v2206_v25 = vrot.slane %v2178_v45, %v10276_v21  ;;  %vm2102_vm12 = vcmp.ge.f32.partialorder %v2070_v15, 0.0  ;;  %v2118_v39 = vmul.f32 0.2, %v2070_v15  ;;  %v10740_v23 = vpop.f32.mrb[7].mxu0 }
 0x27b   :  { %v2227_v13 = vcombine.high %v2219_v48, %v2219_v48  ;;  %v2228_v29 = vcombine.high %v2226_v2, %v2226_v2  ;;  %v2235_v20 = vrot.slane %v2219_v48, %v10276_v21  ;;  %v2242_v42 = vrot.slane %v2226_v2, %v10276_v21 }
 0x27c   :  { %v2559_v55 = vcombine.low %v2185_v56, %v2199_v60  ;;  %v8014_v57 = vcombine.high %v2185_v56, %v2199_v60  ;;  %v2561_v11 = vcombine.low %v2192_v17, %v2206_v25  ;;  %v8015_v34 = vcombine.high %v2192_v17, %v2206_v25 }
 0x27d   :  { %v2249_v18 = vrot.slane %v2227_v13, %v10276_v21  ;;  %v2256_v19 = vrot.slane %v2228_v29, %v10276_v21  ;;  %v2133_v24 = vsel %vm2101_vm11, %v2068_v59, %v2117_v14  ;;  %v2134_v40 = vsel %vm2102_vm12, %v2070_v15, %v2118_v39  ;;  %vm228_vm11 = vmand %vm226_vm14, %vm227_vm7 }
 0x27e   :  { %v2569_v5 = vrot.slane %v2559_v55, %v10276_v21  ;;  %v2576_v6 = vrot.slane %v8014_v57, %v10276_v21  ;;  %v2583_v32 = vrot.slane %v2561_v11, %v10276_v21  ;;  %v2590_v4 = vrot.slane %v8015_v34, %v10276_v21 }
 0x27f   :  { %v2625_v37 = vcombine.low %v2235_v20, %v2249_v18  ;;  %v8016_v28 = vcombine.high %v2235_v20, %v2249_v18  ;;  %v2627_v49 = vcombine.low %v2242_v42, %v2256_v19  ;;  %v8017_v61 = vcombine.high %v2242_v42, %v2256_v19  ;;  %v10751_v38 = vpop.f32.mrb[8].mxu0 }
 0x280   :  { %v2591_v43 = vcombine.low %v2569_v5, %v2576_v6  ;;  %v2592_v53 = vcombine.high %v2569_v5, %v2576_v6  ;;  %v2593_v33 = vcombine.low %v2583_v32, %v2590_v4  ;;  %v2594_v3 = vcombine.high %v2583_v32, %v2590_v4  ;;  %v10753_v26 = vpop.f32.mrb[9].mxu0 }
 0x281   :  { %v2635_v58 = vrot.slane %v2625_v37, %v10276_v21  ;;  %v2642_v41 = vrot.slane %v8016_v28, %v10276_v21  ;;  %v2649_v7 = vrot.slane %v2627_v49, %v10276_v21  ;;  %v2656_v35 = vrot.slane %v8017_v61, %v10276_v21  ;;  %v10759_v50 = vpop.f32.mrb[10].mxu0 }
 0x282   :  { %v2601_v36 = vrot.slane %v2591_v43, %v10276_v21  ;;  %v2608_v44 = vrot.slane %v2592_v53, %v10276_v21  ;;  %v2615_v22 = vrot.slane %v2593_v33, %v10276_v21  ;;  %v2622_v51 = vrot.slane %v2594_v3, %v10276_v21  ;;  %v10765_v52 = vpop.f32.mrb[11].mxu0 }
 0x283   :  { %v2657_v54 = vcombine.low %v2635_v58, %v2642_v41  ;;  %v2658_v8 = vcombine.high %v2635_v58, %v2642_v41  ;;  %v2659_v9 = vcombine.low %v2649_v7, %v2656_v35  ;;  %v2660_v1 = vcombine.high %v2649_v7, %v2656_v35 }
 0x284   :  { %v2623_v46 = vcombine.low %v2601_v36, %v2615_v22  ;;  %v2624_v62 = vcombine.low %v2608_v44, %v2622_v51  ;;  %v2261_v63 = vcombine.low %v2133_v24, %v2134_v40  ;;  %v2262_v10 = vcombine.high %v2133_v24, %v2134_v40 }
 0x285   :  { %v2667_v27 = vrot.slane %v2657_v54, %v10276_v21  ;;  %v2674_v12 = vrot.slane %v2658_v8, %v10276_v21  ;;  %v2681_v47 = vrot.slane %v2659_v9, %v10276_v21  ;;  %v2688_v59 = vrot.slane %v2660_v1, %v10276_v21 }
 0x286   :  { %v8462_v31 = vpack.c.bf16 %v2624_v62, %v2623_v46  ;;  %v2269_v45 = vrot.slane %v2261_v63, %v10276_v21  ;;  %v2276_v56 = vrot.slane %v2262_v10, %v10276_v21  ;;  %vm2103_vm15 = vcmp.ge.f32.partialorder %v10736_v0, 0.0 }
 0x287   :  { %v2689_v17 = vcombine.low %v2667_v27, %v2681_v47  ;;  %v2690_v15 = vcombine.low %v2674_v12, %v2688_v59  ;;  %v2119_v48 = vmul.f32 0.2, %v10736_v0  ;;  %vm2104_vm0 = vcmp.ge.f32.partialorder %v10740_v23, 0.0  ;;  %v10776_v2 = vpop.f32.mrb[12].mxu0 }
 0x288   :  { %v3142_v14 = vrot.slane %v8462_v31, 7  ;;  %v2277_v60 = vcombine.high %v2269_v45, %v2269_v45  ;;  %v2278_v25 = vcombine.high %v2276_v56, %v2276_v56  ;;  %v2285_v39 = vrot.slane %v2269_v45, %v10276_v21  ;;  %v10779_v13 = vpop.f32.mrb[13].mxu0 }
 0x289   :  { %v8463_v29 = vpack.c.bf16 %v2690_v15, %v2689_v17  ;;  %v2292_v20 = vrot.slane %v2276_v56, %v10276_v21  ;;  %v2135_v42 = vsel %vm2103_vm15, %v10736_v0, %v2119_v48  ;;  %v2120_v55 = vmul.f32 0.2, %v10740_v23  ;;  %v10784_v57 = vpop.f32.mrb[14].mxu0  ;;  %vm10874_vm15 = vmor %vm228_vm11, %vm10851_vm9 }
 0x28a   :  { %v3143_v11 = vrot.slane %v3142_v14, 4  ;;  %3174 = vst [vmem:[#allocation2] sm:$0xee] %v3142_v14  ;;  %v2299_v18 = vrot.slane %v2277_v60, %v10276_v21  ;;  %v2306_v19 = vrot.slane %v2278_v25, %v10276_v21  ;;  %vm2105_vm4 = vcmp.ge.f32.partialorder %v10751_v38, 0.0  ;;  %v10795_v24 = vpop.f32.mrb[15].mxu0 }
 0x28b   :  { %v3144_v0 = vrot.slane %v8463_v29, 7  ;;  %v2136_v40 = vsel %vm2104_vm0, %v10740_v23, %v2120_v55  ;;  %v2121_v5 = vmul.f32 0.2, %v10751_v38  ;;  %vm2106_vm5 = vcmp.ge.f32.partialorder %v10753_v26, 0.0 }
 0x28c   :  { %v2691_v6 = vcombine.low %v2285_v39, %v2299_v18  ;;  %v8018_v32 = vcombine.high %v2285_v39, %v2299_v18  ;;  %v2693_v4 = vcombine.low %v2292_v20, %v2306_v19  ;;  %v8019_v37 = vcombine.high %v2292_v20, %v2306_v19 }
 0x28d   :  { %v10804_v28 = vsel %vm10788_vm3, %v3143_v11, %v3144_v0  ;;  %v3146_v49 = vrot.slane %v3144_v0, 4  ;;  %v2311_v61 = vcombine.low %v2135_v42, %v2136_v40  ;;  %v2312_v43 = vcombine.high %v2135_v42, %v2136_v40 }
 0x28e   :  { %v2701_v53 = vrot.slane %v2691_v6, %v10276_v21  ;;  %v2708_v33 = vrot.slane %v8018_v32, %v10276_v21  ;;  %v2715_v23 = vrot.slane %v2693_v4, %v10276_v21  ;;  %v2722_v3 = vrot.slane %v8019_v37, %v10276_v21 }
 0x28f   :  { %v2319_v58 = vrot.slane %v2311_v61, %v10276_v21  ;;  %v2326_v41 = vrot.slane %v2312_v43, %v10276_v21  ;;  %v2137_v7 = vsel %vm2105_vm4, %v10751_v38, %v2121_v5  ;;  %v2122_v35 = vmul.f32 0.2, %v10753_v26 }
 0x290   :  { %v2723_v36 = vcombine.low %v2701_v53, %v2708_v33  ;;  %v2724_v44 = vcombine.high %v2701_v53, %v2708_v33  ;;  %v2725_v22 = vcombine.low %v2715_v23, %v2722_v3  ;;  %v2726_v51 = vcombine.high %v2715_v23, %v2722_v3 }
 0x291   :  { %v2327_v54 = vcombine.high %v2319_v58, %v2319_v58  ;;  %v2328_v8 = vcombine.high %v2326_v41, %v2326_v41  ;;  %v2335_v9 = vrot.slane %v2319_v58, %v10276_v21  ;;  %v2342_v1 = vrot.slane %v2326_v41, %v10276_v21 }
 0x292   :  { %v2733_v46 = vrot.slane %v2723_v36, %v10276_v21  ;;  %v2740_v62 = vrot.slane %v2724_v44, %v10276_v21  ;;  %v2747_v63 = vrot.slane %v2725_v22, %v10276_v21  ;;  %v2754_v38 = vrot.slane %v2726_v51, %v10276_v21 }
 0x293   :  { %v2349_v10 = vrot.slane %v2327_v54, %v10276_v21  ;;  %v2356_v27 = vrot.slane %v2328_v8, %v10276_v21  ;;  %v2358_v12 = vcombine.high %v2342_v1, %v2342_v1  ;;  %v2138_v47 = vsel %vm2106_vm5, %v10753_v26, %v2122_v35 }
 0x294   :  { %v2755_v59 = vcombine.low %v2733_v46, %v2747_v63  ;;  %v2756_v31 = vcombine.low %v2740_v62, %v2754_v38  ;;  %v2361_v45 = vcombine.low %v2137_v7, %v2138_v47  ;;  %v2362_v56 = vcombine.high %v2137_v7, %v2138_v47 }
 0x295   :  { %v2757_v17 = vcombine.low %v2335_v9, %v2349_v10  ;;  %v8020_v15 = vcombine.high %v2335_v9, %v2349_v10  ;;  %v2759_v48 = vcombine.low %v2342_v1, %v2356_v27  ;;  %v2787_v14 = vrot.slane %v2358_v12, %v10276_v21 }
 0x296   :  { %v8464_v60 = vpack.c.bf16 %v2756_v31, %v2755_v59  ;;  %v2360_v25 = vcombine.high %v2356_v27, %v2356_v27  ;;  %v2369_v39 = vrot.slane %v2361_v45, %v10276_v21  ;;  %v2376_v29 = vrot.slane %v2362_v56, %v10276_v21  ;;  %v3178_v31 = vld [vmem:[#allocation2 + $0x20] sm:$0x11] }
 0x297   :  { %v2766_v20 = vrot.slane %v2757_v17, %v10276_v21  ;;  %v2773_v26 = vrot.slane %v8020_v15, %v10276_v21  ;;  %v2780_v42 = vrot.slane %v2759_v48, %v10276_v21  ;;  %vm2107_vm8 = vcmp.ge.f32.partialorder %v10759_v50, 0.0 }
 0x298   :  { %v3147_v55 = vrot.slane %v8464_v60, 7  ;;  %v2377_v11 = vcombine.high %v2369_v39, %v2369_v39  ;;  %v2378_v18 = vcombine.high %v2376_v29, %v2376_v29  ;;  %v2385_v19 = vrot.slane %v2369_v39, %v10276_v21 }
 0x299   :  { %v2788_v0 = vcombine.low %v2766_v20, %v2773_v26  ;;  %v2789_v40 = vcombine.high %v2766_v20, %v2773_v26  ;;  %v2790_v5 = vcombine.low %v2780_v42, %v2787_v14  ;;  %v2791_v6 = vcombine.high %v2780_v42, %v2787_v14 }
 0x29a   :  { %v10837_v32 = vsel %vm10788_vm3, %v3146_v49, %v3147_v55  ;;  %v3149_v4 = vrot.slane %v3147_v55, 4  ;;  %v2392_v37 = vrot.slane %v2376_v29, %v10276_v21  ;;  %v2399_v61 = vrot.slane %v2377_v11, %v10276_v21 }
 0x29b   :  { %v2798_v43 = vrot.slane %v2788_v0, %v10276_v21  ;;  %v2805_v53 = vrot.slane %v2789_v40, %v10276_v21  ;;  %v2812_v33 = vrot.slane %v2790_v5, %v10276_v21  ;;  %v2819_v23 = vrot.slane %v2791_v6, %v10276_v21 }
 0x29c   :  { %v10846_v3 = vrot.slane %v2378_v18, %v10276_v21  ;;  %v2407_v58 = vcombine.high %v2385_v19, %v2385_v19  ;;  %v2408_v41 = vcombine.high %v2392_v37, %v2392_v37  ;;  %v2409_v49 = vcombine.high %v2399_v61, %v2399_v61 }
 0x29d   :  { %v2820_v7 = vcombine.low %v2798_v43, %v2812_v33  ;;  %v2821_v35 = vcombine.low %v2805_v53, %v2819_v23  ;;  %v2822_v36 = vcombine.low %v2360_v25, %v2385_v19  ;;  %v2123_v44 = vmul.f32 0.2, %v10759_v50 }
 0x29e   :  { %v2823_v51 = vcombine.low %v2399_v61, %v2407_v58  ;;  %v2824_v54 = vcombine.low %v2409_v49, %v2392_v37  ;;  %v2825_v8 = vcombine.low %v10846_v3, %v2408_v41  ;;  %vm2108_vm10 = vcmp.ge.f32.partialorder %v10765_v52, 0.0 }
 0x29f   :  { %v8465_v9 = vpack.c.bf16 %v2821_v35, %v2820_v7  ;;  %v2832_v1 = vrot.slane %v2822_v36, %v10276_v21  ;;  %v2139_v46 = vsel %vm2107_vm8, %v10759_v50, %v2123_v44  ;;  %v2124_v62 = vmul.f32 0.2, %v10765_v52 }
 0x2a0   :  { %v2839_v63 = vrot.slane %v2823_v51, %v10276_v21  ;;  %v2846_v38 = vrot.slane %v2824_v54, %v10276_v21  ;;  %v2853_v10 = vrot.slane %v2825_v8, %v10276_v21  ;;  %v2410_v27 = vcombine.high %v10846_v3, %v10846_v3 }
 0x2a1   :  { %v3150_v12 = vrot.slane %v8465_v9, 7  ;;  %v2140_v47 = vsel %vm2108_vm10, %v10765_v52, %v2124_v62  ;;  %vm2109_vm12 = vcmp.ge.f32.partialorder %v10776_v2, 0.0  ;;  %v2125_v59 = vmul.f32 0.2, %v10776_v2 }
 0x2a2   :  { %v2854_v45 = vcombine.low %v2832_v1, %v2839_v63  ;;  %v2855_v56 = vcombine.high %v2832_v1, %v2839_v63  ;;  %v2856_v17 = vcombine.low %v2846_v38, %v2853_v10  ;;  %v2857_v15 = vcombine.high %v2846_v38, %v2853_v10 }
 0x2a3   :  { %v10880_v48 = vsel %vm10788_vm3, %v3149_v4, %v3150_v12  ;;  %v3152_v52 = vrot.slane %v3150_v12, 4  ;;  %v2411_v14 = vcombine.low %v2139_v46, %v2140_v47  ;;  %v2412_v60 = vcombine.high %v2139_v46, %v2140_v47 }
 0x2a4   :  { %v2864_v25 = vrot.slane %v2854_v45, %v10276_v21  ;;  %v2871_v39 = vrot.slane %v2855_v56, %v10276_v21  ;;  %v2878_v29 = vrot.slane %v2856_v17, %v10276_v21  ;;  %v2885_v20 = vrot.slane %v2857_v15, %v10276_v21 }
 0x2a5   :  { %v3179_v26 = vsel %vm10874_vm15, %v3152_v52, %v3178_v31  ;;  %v2419_v42 = vrot.slane %v2411_v14, %v10276_v21  ;;  %v2426_v55 = vrot.slane %v2412_v60, %v10276_v21  ;;  %v2141_v11 = vsel %vm2109_vm12, %v10776_v2, %v2125_v59 }
 0x2a6   :  { %3180 = vst [vmem:[#allocation2 + $0x20] sm:$0x11] %v3179_v26  ;;  %v2886_v18 = vcombine.low %v2864_v25, %v2878_v29  ;;  %v2887_v19 = vcombine.low %v2871_v39, %v2885_v20  ;;  %vm2110_vm0 = vcmp.ge.f32.partialorder %v10779_v13, 0.0  ;;  %v2126_v0 = vmul.f32 0.2, %v10779_v13  ;;  %v10923_v29 = vld [vmem:[#allocation2] sm:$0xff] }
 0x2a7   :  { %v2427_v40 = vcombine.high %v2419_v42, %v2419_v42  ;;  %v2428_v5 = vcombine.high %v2426_v55, %v2426_v55  ;;  %v2435_v6 = vrot.slane %v2419_v42, %v10276_v21  ;;  %v2442_v4 = vrot.slane %v2426_v55, %v10276_v21 }
 0x2a8   :  { %v8466_v37 = vpack.c.bf16 %v2887_v19, %v2886_v18  ;;  %v2142_v61 = vsel %vm2110_vm0, %v10779_v13, %v2126_v0  ;;  %vm2111_vm4 = vcmp.ge.f32.partialorder %v10784_v57, 0.0  ;;  %v2127_v2 = vmul.f32 0.2, %v10784_v57 }
 0x2a9   :  { %v2449_v43 = vrot.slane %v2427_v40, %v10276_v21  ;;  %v2456_v53 = vrot.slane %v2428_v5, %v10276_v21  ;;  %v2457_v33 = vcombine.high %v2435_v6, %v2435_v6  ;;  %v2458_v23 = vcombine.high %v2442_v4, %v2442_v4 }
 0x2aa   :  { %v3153_v3 = vrot.slane %v8466_v37, 7  ;;  %v2888_v58 = vcombine.low %v2410_v27, %v2435_v6  ;;  %v2461_v41 = vcombine.low %v2141_v11, %v2142_v61  ;;  %v2462_v49 = vcombine.high %v2141_v11, %v2142_v61 }
 0x2ab   :  { %v2459_v7 = vcombine.high %v2449_v43, %v2449_v43  ;;  %v2889_v35 = vcombine.low %v2449_v43, %v2457_v33  ;;  %v2891_v36 = vcombine.low %v2456_v53, %v2458_v23  ;;  %v2460_v44 = vcombine.high %v2456_v53, %v2456_v53 }
 0x2ac   :  { %v10902_v22 = vrot.slane %v3153_v3, 4  ;;  %3181 = vst [vmem:[#allocation2 + $0x28] sm:$0xee] %v3153_v3  ;;  %v2898_v13 = vrot.slane %v2888_v58, %v10276_v21  ;;  %v2469_v51 = vrot.slane %v2461_v41, %v10276_v21  ;;  %v2476_v54 = vrot.slane %v2462_v49, %v10276_v21 }
 0x2ad   :  { %v2890_v8 = vcombine.low %v2459_v7, %v2442_v4  ;;  %v2905_v9 = vrot.slane %v2889_v35, %v10276_v21  ;;  %v2919_v1 = vrot.slane %v2891_v36, %v10276_v21  ;;  %v2143_v46 = vsel %vm2111_vm4, %v10784_v57, %v2127_v2  ;;  %vm236_vm4 = vmand %vm12306_vm13, %vm211_vm2 }
 0x2ae   :  { %v2477_v62 = vcombine.high %v2469_v51, %v2469_v51  ;;  %v2478_v63 = vcombine.high %v2476_v54, %v2476_v54  ;;  %v2485_v38 = vrot.slane %v2469_v51, %v10276_v21  ;;  %v2492_v10 = vrot.slane %v2476_v54, %v10276_v21 }
 0x2af   :  { %v2912_v27 = vrot.slane %v2890_v8, %v10276_v21  ;;  %v2920_v12 = vcombine.low %v2898_v13, %v2905_v9  ;;  %v2921_v47 = vcombine.high %v2898_v13, %v2905_v9  ;;  %vm2112_vm5 = vcmp.ge.f32.partialorder %v10795_v24, 0.0 }
 0x2b0   :  { %v2499_v59 = vrot.slane %v2477_v62, %v10276_v21  ;;  %v10918_v31 = vrot.slane %v2478_v63, %v10276_v21  ;;  %v2507_v45 = vcombine.high %v2485_v38, %v2485_v38  ;;  %v2508_v56 = vcombine.high %v2492_v10, %v2492_v10  ;;  %v3320_v63 = vld [vmem:[#allocation2 + $0x20] sm:$0x33] }
 0x2b1   :  { %v2922_v57 = vcombine.low %v2912_v27, %v2919_v1  ;;  %v2923_v17 = vcombine.high %v2912_v27, %v2919_v1  ;;  %v2930_v15 = vrot.slane %v2920_v12, %v10276_v21  ;;  %v2937_v52 = vrot.slane %v2921_v47, %v10276_v21 }
 0x2b2   :  { %v2509_v14 = vcombine.high %v2499_v59, %v2499_v59  ;;  %v2954_v60 = vcombine.low %v2460_v44, %v2485_v38  ;;  %v2955_v25 = vcombine.low %v2499_v59, %v2507_v45  ;;  %v2957_v39 = vcombine.low %v10918_v31, %v2508_v56 }
 0x2b3   :  { %v2944_v20 = vrot.slane %v2922_v57, %v10276_v21  ;;  %v2951_v26 = vrot.slane %v2923_v17, %v10276_v21  ;;  %v2128_v42 = vmul.f32 0.2, %v10795_v24  ;;  %v2510_v55 = vcombine.high %v10918_v31, %v10918_v31 }
 0x2b4   :  { %v2956_v11 = vcombine.low %v2509_v14, %v2492_v10  ;;  %v2964_v18 = vrot.slane %v2954_v60, %v10276_v21  ;;  %v2971_v19 = vrot.slane %v2955_v25, %v10276_v21  ;;  %v2985_v0 = vrot.slane %v2957_v39, %v10276_v21 }
 0x2b5   :  { %v2952_v40 = vcombine.low %v2930_v15, %v2944_v20  ;;  %v2953_v5 = vcombine.low %v2937_v52, %v2951_v26  ;;  %v2144_v6 = vsel %vm2112_vm5, %v10795_v24, %v2128_v42  ;;  %v3328_v4 = vunpack.i.h.s16 %v10923_v29  ;;  %vm237_vm5 = vmand %vm226_vm14, %vm214_vm1 }
 0x2b6   :  { %vm3366_vm7 = vsmask.f32 1280  ;;  %vm3367_vm8 = vsmask.f32 3336  ;;  %v2978_v37 = vrot.slane %v2956_v11, %v10276_v21  ;;  %v2986_v61 = vcombine.low %v2964_v18, %v2971_v19 }
 0x2b7   :  { %v2987_v2 = vcombine.high %v2964_v18, %v2971_v19  ;;  %v2511_v43 = vcombine.low %v2143_v46, %v2144_v6  ;;  %v8467_v53 = vpack.c.bf16 %v2953_v5, %v2952_v40  ;;  %v2512_v33 = vcombine.high %v2143_v46, %v2144_v6  ;;  %vm3368_vm11 = vmor %vm3366_vm7, %vm3367_vm8 }
 0x2b8   :  { %v8029_v23 = vpack.c.b16 %v3328_v4, %v10923_v29  ;;  %v3332_v3 = vunpack.i.h.s16 %v10804_v28  ;;  %v2988_v58 = vcombine.low %v2978_v37, %v2985_v0  ;;  %v2989_v41 = vcombine.high %v2978_v37, %v2985_v0  ;;  %vm11558_vm7 = vmor %vm237_vm5, %vm236_vm4 }
 0x2b9   :  { %v2996_v24 = vrot.slane %v2986_v61, %v10276_v21  ;;  %v3003_v49 = vrot.slane %v2987_v2, %v10276_v21  ;;  %vm3369_vm9 = vsmask.f32 5392  ;;  %v3155_v7 = vrot.slane %v8467_v53, 7 }
 0x2ba   :  { %v2519_v35 = vrot.slane %v2511_v43, %v10276_v21  ;;  %v2526_v36 = vrot.slane %v2512_v33, %v10276_v21  ;;  %v8030_v44 = vpack.c.b16 %v3332_v3, %v10804_v28  ;;  %v3010_v13 = vrot.slane %v2988_v58, %v10276_v21  ;;  %vm3370_vm12 = vmor %vm3368_vm11, %vm3369_vm9 }
 0x2bb   :  { %v3017_v51 = vrot.slane %v2989_v41, %v10276_v21  ;;  %v3336_v54 = vunpack.i.h.s16 %v10837_v32  ;;  %v3340_v8 = vunpack.i.h.s16 %v10880_v48  ;;  %v10956_v9 = vsel %vm10788_vm3, %v10902_v22, %v3155_v7 }
 0x2bc   :  { %v3157_v1 = vrot.slane %v3155_v7, 4  ;;  %v2527_v46 = vcombine.high %v2519_v35, %v2519_v35  ;;  %v2528_v62 = vcombine.high %v2526_v36, %v2526_v36  ;;  %vm3371_vm10 = vsmask.f32 7448 }
 0x2bd   :  { %v3018_v38 = vcombine.low %v2996_v24, %v3010_v13  ;;  %v3019_v10 = vcombine.low %v3003_v49, %v3017_v51  ;;  %v2535_v27 = vrot.slane %v2519_v35, %v10276_v21  ;;  %v2542_v12 = vrot.slane %v2526_v36, %v10276_v21  ;;  %vm10982_vm0 = vmor %vm3370_vm12, %vm3371_vm10  ;;  %v10986_v51 = vld [vmem:[#allocation2 + $0x28] sm:$0xff] }
 0x2be   :  { %v2549_v47 = vrot.slane %v2527_v46, %v10276_v21  ;;  %v2556_v59 = vrot.slane %v2528_v62, %v10276_v21  ;;  %v8031_v22 = vpack.c.b16 %v3336_v54, %v10837_v32  ;;  %v8032_v31 = vpack.c.b16 %v3340_v8, %v10880_v48  ;;  %v9610_v36 = vld [vmem:[#allocation19 + $0x124] ss:$8 sps:$4 sm:$0xff]  }
 0x2bf   :  { %v8468_v45 = vpack.c.bf16 %v3019_v10, %v3018_v38  ;;  %v2557_v56 = vcombine.high %v2535_v27, %v2535_v27  ;;  %v3020_v57 = vcombine.low %v2510_v55, %v2535_v27  ;;  %v3344_v17 = vunpack.i.h.s16 %v3320_v63 }
 0x2c0   :  { %v2558_v15 = vcombine.high %v2549_v47, %v2549_v47  ;;  %v3050_v52 = vrot.slane %v2556_v59, %v10276_v21  ;;  %v3374_v14 = vshrl.u32 %v8029_v23, 16  ;;  %v3377_v60 = vshll.u32 %v8029_v23, 16 }
 0x2c1   :  { %v3158_v25 = vrot.slane %v8468_v45, 7  ;;  %v3021_v39 = vcombine.low %v2549_v47, %v2557_v56  ;;  %v3029_v20 = vrot.slane %v3020_v57, %v10276_v21  ;;  %v8033_v26 = vpack.c.b16 %v3344_v17, %v3320_v63 }
 0x2c2   :  { %v3022_v42 = vcombine.low %v2558_v15, %v2542_v12  ;;  %v3376_v11 = vrot.slane %v3374_v14, 6  ;;  %v3379_v18 = vrot.slane %v3377_v60, 7  ;;  %v3383_v19 = vshll.u32 %v8030_v44, 16 }
 0x2c3   :  { %v10974_v55 = vsel %vm10788_vm3, %v3157_v1, %v3158_v25  ;;  %v3160_v0 = vrot.slane %v3158_v25, 4  ;;  %v3036_v40 = vrot.slane %v3021_v39, %v10276_v21  ;;  %v3387_v5 = vshrl.u32 %v8030_v44, 16 }
 0x2c4   :  { %v3043_v6 = vrot.slane %v3022_v42, %v10276_v21  ;;  %v3380_v37 = vor.u32 %v3379_v18, %v3376_v11  ;;  %v3385_v61 = vrot.slane %v3383_v19, 7  ;;  %v3393_v2 = vshll.u32 %v8031_v22, 16  ;;  %v3185_v19 = vld [vmem:[#allocation2 + $0x48] sm:$0x11] }
 0x2c5   :  { %v3051_v43 = vcombine.low %v3029_v20, %v3036_v40  ;;  %v3052_v53 = vcombine.high %v3029_v20, %v3036_v40  ;;  %v3389_v33 = vrot.slane %v3387_v5, 6  ;;  %v3397_v23 = vshrl.u32 %v8031_v22, 16 }
 0x2c6   :  { %v3053_v58 = vcombine.low %v3043_v6, %v3050_v52  ;;  %v3054_v41 = vcombine.high %v3043_v6, %v3050_v52  ;;  %v3381_v24 = vrot.slane %v3380_v37, 2  ;;  %v3395_v49 = vrot.slane %v3393_v2, 7 }
 0x2c7   :  { %v3061_v7 = vrot.slane %v3051_v43, %v10276_v21  ;;  %v3068_v35 = vrot.slane %v3052_v53, %v10276_v21  ;;  %v3390_v44 = vor.u32 %v3389_v33, %v3385_v61  ;;  %v3399_v13 = vrot.slane %v3397_v23, 6 }
 0x2c8   :  { %v3075_v1 = vrot.slane %v3053_v58, %v10276_v21  ;;  %v3082_v46 = vrot.slane %v3054_v41, %v10276_v21  ;;  %v3386_v62 = vsel %vm10982_vm0, %v3381_v24, %v3385_v61  ;;  %v3403_v63 = vshll.u32 %v8032_v31, 16 }
 0x2c9   :  { %v3391_v38 = vrot.slane %v3390_v44, 2  ;;  %v3400_v10 = vor.u32 %v3399_v13, %v3395_v49  ;;  %v3407_v27 = vshrl.u32 %v8032_v31, 16  ;;  %v3413_v12 = vshll.u32 %v8033_v26, 16 }
 0x2ca   :  { %v3083_v47 = vcombine.low %v3061_v7, %v3075_v1  ;;  %v3084_v59 = vcombine.low %v3068_v35, %v3082_v46  ;;  %v3405_v22 = vrot.slane %v3403_v63, 7  ;;  %v3348_v45 = vunpack.i.h.s16 %v10986_v51 }
 0x2cb   :  { %v3396_v56 = vsel %vm10982_vm0, %v3391_v38, %v3395_v49  ;;  %v3401_v57 = vrot.slane %v3400_v10, 2  ;;  %v3409_v17 = vrot.slane %v3407_v27, 6  ;;  %v3415_v15 = vrot.slane %v3413_v12, 7 }
 0x2cc   :  { %v8469_v21 = vpack.c.bf16 %v3084_v59, %v3083_v47  ;;  %v3461_v52 = vcombine.low %v3386_v62, %v3396_v56  ;;  %v3462_v14 = vcombine.high %v3386_v62, %v3396_v56  ;;  %v8034_v60 = vpack.c.b16 %v3348_v45, %v10986_v51  ;;  %v9218_v59 = vld [vmem:[#allocation11 + $0x100] ss:$8 sps:$4 sm:$0xff]  }
 0x2cd   :  { %v3406_v31 = vsel %vm10982_vm0, %v3401_v57, %v3405_v22  ;;  %v3410_v25 = vor.u32 %v3409_v17, %v3405_v22  ;;  %v3352_v39 = vunpack.i.h.s16 %v10956_v9  ;;  %v3356_v20 = vunpack.i.h.s16 %v10974_v55  ;;  %v9223_v17 = vld [vmem:[#allocation11 + $0x114] ss:$8 sps:$4 sm:$0xff]  }
 0x2ce   :  { %v3161_v26 = vrot.slane %v8469_v21, 7  ;;  %v3471_v42 = vrot.slane %v3461_v52, %v10730_v30  ;;  %v3418_v11 = vshrl.u32 %v8034_v60, 16  ;;  %v3421_v18 = vshll.u32 %v8034_v60, 16 }
 0x2cf   :  { %v3411_v40 = vrot.slane %v3410_v25, 2  ;;  %v8035_v5 = vpack.c.b16 %v3352_v39, %v10956_v9  ;;  %v8036_v6 = vpack.c.b16 %v3356_v20, %v10974_v55  ;;  %v11010_v37 = vrot.slane %v3462_v14, %v10730_v30 }
 0x2d0   :  { %v11014_v61 = vsel %vm10788_vm3, %v3160_v0, %v3161_v26  ;;  %v3163_v2 = vrot.slane %v3161_v26, 4  ;;  %v3420_v43 = vrot.slane %v3418_v11, 6  ;;  %v3423_v53 = vrot.slane %v3421_v18, 7 }
 0x2d1   :  { %v3416_v33 = vsel %vm10982_vm0, %v3411_v40, %v3415_v15  ;;  %v3360_v23 = vunpack.i.h.s16 %v11014_v61  ;;  %v3427_v58 = vshll.u32 %v8035_v5, 16  ;;  %v3431_v41 = vshrl.u32 %v8035_v5, 16 }
 0x2d2   :  { %v3186_v24 = vsel %vm10874_vm15, %v3163_v2, %v3185_v19  ;;  %v3463_v49 = vcombine.low %v3406_v31, %v3416_v33  ;;  %v3464_v7 = vcombine.high %v3406_v31, %v3416_v33  ;;  %v3424_v35 = vor.u32 %v3423_v53, %v3420_v43  ;;  %v9221_v19 = vld [vmem:[#allocation11 + $0x110] ss:$8 sps:$4 sm:$0xff]   ;;  %v9226_v43 = vld [vmem:[#allocation11 + $0x124] ss:$8 sps:$4 sm:$0xff]  }
 0x2d3   :  { %3187 = vst [vmem:[#allocation2 + $0x48] sm:$0x11] %v3186_v24  ;;  %v8037_v34 = vpack.c.b16 %v3360_v23, %v11014_v61  ;;  %v3429_v0 = vrot.slane %v3427_v58, 7  ;;  %v3433_v44 = vrot.slane %v3431_v41, 6  ;;  %v3437_v13 = vshll.u32 %v8036_v6, 16 }
 0x2d4   :  { %v3485_v1 = vrot.slane %v3463_v49, %v10730_v30  ;;  %v3425_v46 = vrot.slane %v3424_v35, 2  ;;  %v3441_v62 = vshrl.u32 %v8036_v6, 16  ;;  %v11026_v63 = vrot.slane %v3464_v7, %v10730_v30 }
 0x2d5   :  { %v3434_v38 = vor.u32 %v3433_v44, %v3429_v0  ;;  %v3439_v10 = vrot.slane %v3437_v13, 7  ;;  %v3447_v27 = vshll.u32 %v8037_v34, 16  ;;  %v3451_v12 = vshrl.u32 %v8037_v34, 16  ;;  %v9224_v13 = vld [vmem:[#allocation11 + $0x120] ss:$8 sps:$4 sm:$0xff]  }
 0x2d6   :  { %v3494_v47 = vcombine.high %v3471_v42, %v3485_v1  ;;  %v3493_v22 = vcombine.low %v3471_v42, %v3485_v1  ;;  %v11030_v56 = vsel %vm10982_vm0, %v3425_v46, %v3429_v0  ;;  %v3443_v57 = vrot.slane %v3441_v62, 6 }
 0x2d7   :  { %v3435_v15 = vrot.slane %v3434_v38, 2  ;;  %v3449_v21 = vrot.slane %v3447_v27, 7  ;;  %v3453_v52 = vrot.slane %v3451_v12, 6  ;;  %v3495_v14 = vcombine.low %v11010_v37, %v11026_v63  ;;  %v9230_v12 = vld [vmem:[#allocation11 + $0x140] ss:$8 sps:$4 sm:$0xff]  }
 0x2d8   :  { %3893 = vmatprep.mubr.bf16.mxu1 %v3494_v47  ;;  %v3444_v60 = vor.u32 %v3443_v57, %v3439_v10  ;;  %v3496_v31 = vcombine.high %v11010_v37, %v11026_v63  ;;  %v8103_v25 = vpack.c.b16 %v10804_v28, %v10923_v29  ;;  %v8105_v26 = vpack.c.b16 %v10880_v48, %v10837_v32  ;;  %v9229_v28 = vld [vmem:[#allocation11 + $0x134] ss:$8 sps:$4 sm:$0xff]   ;;  %v9275_v63 = vld [vmem:[%s12335_s10 + $0x30] ss:$8 sps:$4 sm:$0xff]  }
 0x2d9   :  { %3894 = vmatmul.mubr.bf16.vlgmr.msra.gmra.mrb[0].mxu1 %v3493_v22  ;;  %v3440_v42 = vsel %vm10982_vm0, %v3435_v15, %v3439_v10  ;;  %v8107_v11 = vpack.c.b16 %v10956_v9, %v10986_v51  ;;  %v8109_v18 = vpack.c.b16 %v11014_v61, %v10974_v55  ;;  %v3454_v24 = vor.u32 %v3453_v52, %v3449_v21  ;;  %v9227_v51 = vld [vmem:[#allocation11 + $0x130] ss:$8 sps:$4 sm:$0xff]   ;;  %v9235_v57 = vld [vmem:[#allocation11 + $0x154] ss:$8 sps:$4 sm:$0xff]  }
 0x2da   :  { %3915 = vmatpush1.bf16.msra.mxu1 %v9218_v59  ;;  %v3325_v40 = vld [vmem:[#allocation2 + $0x48] sm:$0x33]  ;;  %v3445_v5 = vrot.slane %v3444_v60, 2  ;;  %v3497_v6 = vcombine.low %v11030_v56, %v3440_v42  ;;  %v3498_v2 = vcombine.high %v11030_v56, %v3440_v42  ;;  %v11049_v33 = vrot.slane %v8103_v25, %v10730_v30  ;;  %v9233_v60 = vld [vmem:[#allocation11 + $0x150] ss:$8 sps:$4 sm:$0xff]  }
 0x2db   :  { %3916 = vmatprep.subr.bf16.mxu1 %v9223_v17  ;;  %v3364_v53 = vunpack.i.h.s16 %v3325_v40  ;;  %v11052_v58 = vrot.slane %v8105_v26, %v10730_v30  ;;  %v11057_v49 = vrot.slane %v8107_v11, %v10730_v30  ;;  %v11060_v7 = vrot.slane %v8109_v18, %v10730_v30  ;;  %v9238_v25 = vld [vmem:[#allocation11 + $0x164] ss:$8 sps:$4 sm:$0xff]   ;;  %v9236_v26 = vld [vmem:[#allocation11 + $0x160] ss:$8 sps:$4 sm:$0xff]   ;;  %v9241_v42 = vld [vmem:[#allocation11 + $0x174] ss:$8 sps:$4 sm:$0xff]  }
 0x2dc   :  { %v3450_v41 = vsel %vm10982_vm0, %v3445_v5, %v3449_v21  ;;  %v8104_v44 = vpack.c.b16 %v3332_v3, %v3328_v4  ;;  %v8106_v62 = vpack.c.b16 %v3340_v8, %v3336_v54  ;;  %v8108_v29 = vpack.c.b16 %v3352_v39, %v3348_v45  ;;  %v9232_v39 = vld [vmem:[#allocation11 + $0x144] ss:$8 sps:$4 sm:$0xff]   ;;  %v9239_v11 = vld [vmem:[#allocation11 + $0x170] ss:$8 sps:$4 sm:$0xff]  }
 0x2dd   :  { %v8038_v35 = vpack.c.b16 %v3364_v53, %v3325_v40  ;;  %v3999_v34 = vcombine.low %v11049_v33, %v11052_v58  ;;  %v4000_v0 = vcombine.high %v11049_v33, %v11052_v58  ;;  %v4036_v1 = vcombine.high %v11057_v49, %v11060_v7  ;;  %v9244_v18 = vld [vmem:[#allocation11 + $0x184] ss:$8 sps:$4 sm:$0xff]   ;;  %v9247_v40 = vld [vmem:[#allocation11 + $0x194] ss:$8 sps:$4 sm:$0xff]   ;;  %v9245_v5 = vld [vmem:[#allocation11 + $0x190] ss:$8 sps:$4 sm:$0xff]  }
 0x2de   :  { %3917 = vmatpush1.bf16.msra.mxu1 %v9221_v19  ;;  %v4035_v46 = vcombine.low %v11057_v49, %v11060_v7  ;;  %v8110_v3 = vpack.c.b16 %v3360_v23, %v3356_v20  ;;  %v11087_v38 = vrot.slane %v8104_v44, %v10730_v30  ;;  %v11090_v32 = vrot.slane %v8106_v62, %v10730_v30  ;;  %v9242_v19 = vld [vmem:[#allocation11 + $0x180] ss:$8 sps:$4 sm:$0xff]   ;;  %v9256_v53 = vld [vmem:[#allocation11 + $0x1c4] ss:$8 sps:$4 sm:$0xff]   ;;  %v9265_v62 = vld [vmem:[#allocation11 + $0x1f4] ss:$8 sps:$4 sm:$0xff]  }
 0x2df   :  { %3918 = vmatprep.subr.bf16.mxu1 %v9226_v43  ;;  %v3457_v4 = vshll.u32 %v8038_v35, 16  ;;  %v3455_v48 = vrot.slane %v3454_v24, 2  ;;  %v11093_v8 = vrot.slane %v8108_v29, %v10730_v30  ;;  %v3507_v47 = vrot.slane %v3497_v6, %v10730_v30  ;;  %v9250_v6 = vld [vmem:[#allocation11 + $0x1a4] ss:$8 sps:$4 sm:$0xff]   ;;  %v9251_v43 = vld [vmem:[#allocation11 + $0x1b0] ss:$8 sps:$4 sm:$0xff]  }
 0x2e0   :  { %v11096_v9 = vrot.slane %v8110_v3, %v10730_v30  ;;  %v4001_v55 = vcombine.low %v11087_v38, %v11090_v32  ;;  %v4002_v45 = vcombine.high %v11087_v38, %v11090_v32  ;;  %v11111_v22 = vrot.slane %v3498_v2, %v10730_v30  ;;  %v9248_v2 = vld [vmem:[#allocation11 + $0x1a0] ss:$8 sps:$4 sm:$0xff]   ;;  %v9259_v24 = vld [vmem:[#allocation11 + $0x1d4] ss:$8 sps:$4 sm:$0xff]   ;;  %v9257_v35 = vld [vmem:[#allocation11 + $0x1d0] ss:$8 sps:$4 sm:$0xff]  }
 0x2e1   :  { %v3459_v54 = vrot.slane %v3457_v4, 7  ;;  %v9262_v44 = vld [vmem:[#allocation11 + $0x1e4] ss:$8 sps:$4 sm:$0xff]   ;;  %v9263_v29 = vld [vmem:[#allocation11 + $0x1f0] ss:$8 sps:$4 sm:$0xff]   ;;  %vm4713_vm3 = vcmask 130048  }
 0x2e2   :  { %3919 = vmatpush1.bf16.msra.mxu1 %v9224_v13  ;;  %v4038_v61 = vcombine.high %v11093_v8, %v11096_v9  ;;  %v4037_v23 = vcombine.low %v11093_v8, %v11096_v9  ;;  %v9260_v13 = vld [vmem:[#allocation11 + $0x1e0] ss:$8 sps:$4 sm:$0xff]   ;;  %v9271_v3 = vld [vmem:[%s12335_s10 + $0x14] ss:$8 sps:$4 sm:$0xff]   ;;  %v4477_v38 = vld [vmem:[%s12336_s21 + $0x20] sm:$0xff]  ;;  %vm4906_vm5 = vcmask 1043456  }
 0x2e3   :  { %3920 = vmatprep.subr.bf16.mxu1 %v9229_v28  ;;  %v3460_v20 = vsel %vm10982_vm0, %v3455_v48, %v3459_v54  ;;  %v9268_v28 = vld [vmem:[%s12335_s10 + $0x4] ss:$8 sps:$4 sm:$0xff]   ;;  %v9266_v4 = vld [vmem:[%s12335_s10] ss:$8 sps:$4 sm:$0xff]   ;;  %v9269_v48 = vld [vmem:[%s12335_s10 + $0x10] ss:$8 sps:$4 sm:$0xff]  }
 0x2e4   :  { %v3499_v10 = vcombine.low %v3450_v41, %v3460_v20  ;;  %v3500_v27 = vcombine.high %v3450_v41, %v3460_v20  ;;  %v9254_v41 = vld [vmem:[#allocation11 + $0x1c0] ss:$8 sps:$4 sm:$0xff]   ;;  %v9274_v54 = vld [vmem:[%s12335_s10 + $0x24] ss:$8 sps:$4 sm:$0xff]   ;;  %v9277_v37 = vld [vmem:[%s12335_s10 + $0x34] ss:$8 sps:$4 sm:$0xff]  }
 0x2e5   :  { %v4473_v20 = vld [vmem:[%s12336_s21] sm:$0xff]  ;;  %v9325_v58 = vld [vmem:[%s12335_s10 + $0x134] ss:$8 sps:$4 sm:$0xff]   ;;  %v4478_v32 = vld [vmem:[%s12336_s21 + $0x28] sm:$0xff] }
 0x2e6   :  { %3921 = vmatpush1.bf16.msra.mxu1 %v9227_v51  ;;  %v3521_v59 = vrot.slane %v3499_v10, %v10730_v30  ;;  %v11114_v56 = vrot.slane %v3500_v27, %v10730_v30  ;;  %v9272_v51 = vld [vmem:[%s12335_s10 + $0x20] ss:$8 sps:$4 sm:$0xff]   ;;  %v9331_v7 = vld [vmem:[%s12335_s10 + $0x154] ss:$8 sps:$4 sm:$0xff]   ;;  %v11395_v9 = vpack.c.bf16 %v4478_v32, %v4477_v38 }
 0x2e7   :  { %3922 = vmatprep.subr.bf16.mxu1 %v9232_v39  ;;  %v4490_v39 = vld [vmem:[%s12336_s21 + $0x88] sm:$0xff]  ;;  %v4495_v8 = vld [vmem:[%s12336_s21 + $0xb0] sm:$0xff] }
 0x2e8   :  { %v3530_v17 = vcombine.high %v3507_v47, %v3521_v59  ;;  %v3529_v15 = vcombine.low %v3507_v47, %v3521_v59  ;;  %v3532_v21 = vcombine.high %v11111_v22, %v11114_v56  ;;  %v3531_v52 = vcombine.low %v11111_v22, %v11114_v56  ;;  %v4474_v27 = vld [vmem:[%s12336_s21 + $0x8] sm:$0xff]  ;;  %v4492_v47 = vld [vmem:[%s12336_s21 + $0x98] sm:$0xff]  ;;  %v4475_v56 = vld [vmem:[%s12336_s21 + $0x10] sm:$0xff] }
 0x2e9   :  { %v9280_v59 = vld [vmem:[%s12335_s10 + $0x44] ss:$8 sps:$4 sm:$0xff]   ;;  %v9320_v33 = vld [vmem:[%s12335_s10 + $0x120] ss:$8 sps:$4 sm:$0xff]  }
 0x2ea   :  { %3923 = vmatpush1.bf16.msra.mxu1 %v9230_v12  ;;  %3903 = vmatprep.mubr.bf16.mxu1 %v3530_v17  ;;  %v4491_v12 = vld [vmem:[%s12336_s21 + $0x90] sm:$0xff]  ;;  %v9326_v49 = vld [vmem:[%s12335_s10 + $0x140] ss:$8 sps:$4 sm:$0xff]  }
 0x2eb   :  { %3904 = vmatmul.mubr.bf16.gmra.mrb[4].mxu1 %v3529_v15  ;;  %3924 = vmatprep.subr.bf16.mxu1 %v9235_v57  ;;  %v11178_v22 = vpack.c.bf16 %v4492_v47, %v4491_v12  ;;  %v4476_v57 = vld [vmem:[%s12336_s21 + $0x18] sm:$0xff]  ;;  %v9278_v15 = vld [vmem:[%s12335_s10 + $0x40] ss:$8 sps:$4 sm:$0xff]  }
 0x2ec   :  { %3946 = vmatprep.mubr.bf16.mxu1 %v3496_v31  ;;  %v9253_v31 = vld [vmem:[#allocation11 + $0x1b4] ss:$8 sps:$4 sm:$0xff]   ;;  %v11188_v17 = vpack.c.bf16 %v4476_v57, %v4475_v56  ;;  %v9344_v12 = vld [vmem:[%s12335_s10 + $0x1a0] ss:$8 sps:$4 sm:$0xff]  }
 0x2ed   :  { %v9349_v47 = vld [vmem:[%s12335_s10 + $0x1b4] ss:$8 sps:$4 sm:$0xff]   ;;  %v9352_v56 = vld [vmem:[%s12335_s10 + $0x1c4] ss:$8 sps:$4 sm:$0xff]   ;;  %v9350_v57 = vld [vmem:[%s12335_s10 + $0x1c0] ss:$8 sps:$4 sm:$0xff]  }
 0x2ee   :  { %3925 = vmatpush1.bf16.msra.mxu1 %v9233_v60  ;;  %v9286_v60 = vld [vmem:[%s12335_s10 + $0x64] ss:$8 sps:$4 sm:$0xff]  }
 0x2ef   :  { %3926 = vmatprep.subr.bf16.mxu1 %v9238_v25  ;;  %v9284_v25 = vld [vmem:[%s12335_s10 + $0x60] ss:$8 sps:$4 sm:$0xff]  }
 0x2f2   :  { %3927 = vmatpush1.bf16.msra.mxu1 %v9236_v26  ;;  %v9289_v26 = vld [vmem:[%s12335_s10 + $0x74] ss:$8 sps:$4 sm:$0xff]  }
 0x2f3   :  { %3928 = vmatprep.subr.bf16.mxu1 %v9241_v42  ;;  %v9287_v42 = vld [vmem:[%s12335_s10 + $0x70] ss:$8 sps:$4 sm:$0xff]  }
 0x2f6   :  { %3929 = vmatpush1.bf16.msra.mxu1 %v9239_v11  ;;  %v9292_v11 = vld [vmem:[%s12335_s10 + $0x84] ss:$8 sps:$4 sm:$0xff]  }
 0x2f7   :  { %3930 = vmatprep.subr.bf16.mxu1 %v9244_v18  ;;  %v9290_v18 = vld [vmem:[%s12335_s10 + $0x80] ss:$8 sps:$4 sm:$0xff]  }
 0x2fa   :  { %3931 = vmatpush1.bf16.msra.mxu1 %v9242_v19  ;;  %v9295_v19 = vld [vmem:[%s12335_s10 + $0x94] ss:$8 sps:$4 sm:$0xff]  }
 0x2fb   :  { %3932 = vmatprep.subr.bf16.mxu1 %v9247_v40  ;;  %v9293_v40 = vld [vmem:[%s12335_s10 + $0x90] ss:$8 sps:$4 sm:$0xff]  }
 0x2fe   :  { %3933 = vmatpush1.bf16.msra.mxu1 %v9245_v5  ;;  %v9298_v5 = vld [vmem:[%s12335_s10 + $0xa4] ss:$8 sps:$4 sm:$0xff]  }
 0x2ff   :  { %3934 = vmatprep.subr.bf16.mxu1 %v9250_v6  ;;  %v9296_v6 = vld [vmem:[%s12335_s10 + $0xa0] ss:$8 sps:$4 sm:$0xff]  }
 0x302   :  { %3935 = vmatpush1.bf16.msra.mxu1 %v9248_v2  ;;  %v9301_v2 = vld [vmem:[%s12335_s10 + $0xb4] ss:$8 sps:$4 sm:$0xff]  }
 0x303   :  { %3936 = vmatprep.subr.bf16.mxu1 %v9253_v31  ;;  %v9299_v31 = vld [vmem:[%s12335_s10 + $0xb0] ss:$8 sps:$4 sm:$0xff]  }
 0x306   :  { %3937 = vmatpush1.bf16.msra.mxu1 %v9251_v43  ;;  %v9304_v43 = vld [vmem:[%s12335_s10 + $0xc4] ss:$8 sps:$4 sm:$0xff]  }
 0x307   :  { %3938 = vmatprep.subr.bf16.mxu1 %v9256_v53  ;;  %v9302_v53 = vld [vmem:[%s12335_s10 + $0xc0] ss:$8 sps:$4 sm:$0xff]  }
 0x30a   :  { %3939 = vmatpush1.bf16.msra.mxu1 %v9254_v41  ;;  %v9307_v41 = vld [vmem:[%s12335_s10 + $0xd4] ss:$8 sps:$4 sm:$0xff]  }
 0x30b   :  { %3940 = vmatprep.subr.bf16.mxu1 %v9259_v24  ;;  %v9305_v24 = vld [vmem:[%s12335_s10 + $0xd0] ss:$8 sps:$4 sm:$0xff]  }
 0x30e   :  { %3941 = vmatpush1.bf16.msra.mxu1 %v9257_v35  ;;  %v9310_v35 = vld [vmem:[%s12335_s10 + $0xe4] ss:$8 sps:$4 sm:$0xff]  }
 0x30f   :  { %3942 = vmatprep.subr.bf16.mxu1 %v9262_v44  ;;  %v9308_v44 = vld [vmem:[%s12335_s10 + $0xe0] ss:$8 sps:$4 sm:$0xff]  }
 0x312   :  { %3943 = vmatpush1.bf16.msra.mxu1 %v9260_v13  ;;  %v9313_v13 = vld [vmem:[%s12335_s10 + $0xf4] ss:$8 sps:$4 sm:$0xff]  }
 0x313   :  { %3944 = vmatprep.subr.bf16.mxu1 %v9265_v62  ;;  %v9311_v62 = vld [vmem:[%s12335_s10 + $0xf0] ss:$8 sps:$4 sm:$0xff]  }
 0x316   :  { %3945 = vmatpush1.bf16.msra.mxu1 %v9263_v29  ;;  %v9316_v29 = vld [vmem:[%s12335_s10 + $0x104] ss:$8 sps:$4 sm:$0xff]  }
 0x317   :  { %4367 = vmatprep.subr.bf16.mxu1 %v9268_v28  ;;  %v9314_v28 = vld [vmem:[%s12335_s10 + $0x100] ss:$8 sps:$4 sm:$0xff]  }
 0x319   :  { %3947 = vmatmul.mubr.bf16.vlgmr.msra.gmra.mrb[0].mxu1 %v3495_v14  ;;  %v4489_v14 = vld [vmem:[%s12336_s21 + $0x80] sm:$0xff] }
 0x31a   :  { %3956 = vmatprep.mubr.bf16.mxu1 %v3532_v21  ;;  %4368 = vmatpush1.bf16.msra.mxu1 %v9266_v4  ;;  %v11162_v10 = vpack.c.bf16 %v4490_v39, %v4489_v14  ;;  %v9283_v21 = vld [vmem:[%s12335_s10 + $0x54] ss:$8 sps:$4 sm:$0xff]   ;;  %v9338_v14 = vld [vmem:[%s12335_s10 + $0x180] ss:$8 sps:$4 sm:$0xff]  }
 0x31b   :  { %4369 = vmatprep.subr.bf16.mxu1 %v9271_v3  ;;  %v9319_v4 = vld [vmem:[%s12335_s10 + $0x114] ss:$8 sps:$4 sm:$0xff]   ;;  %v9317_v3 = vld [vmem:[%s12335_s10 + $0x110] ss:$8 sps:$4 sm:$0xff]  }
 0x31c   :  { %8691 = vmatprep.subr.bf16.mxu0 %v11162_v10  ;;  %v9343_v39 = vld [vmem:[%s12335_s10 + $0x194] ss:$8 sps:$4 sm:$0xff]  }
 0x31e   :  { %4370 = vmatpush1.bf16.msra.mxu1 %v9269_v48  ;;  %v9322_v48 = vld [vmem:[%s12335_s10 + $0x124] ss:$8 sps:$4 sm:$0xff]  }
 0x31f   :  { %4371 = vmatprep.subr.bf16.mxu1 %v9274_v54  ;;  %v9332_v54 = vld [vmem:[%s12335_s10 + $0x160] ss:$8 sps:$4 sm:$0xff]  }
 0x321   :  { %3957 = vmatmul.mubr.bf16.gmra.mrb[4].mxu1 %v3531_v52  ;;  %v9281_v52 = vld [vmem:[%s12335_s10 + $0x50] ss:$8 sps:$4 sm:$0xff]  }
 0x322   :  { %4372 = vmatpush1.bf16.msra.mxu1 %v9272_v51  ;;  %4399 = vmatprep.mubr.bf16.mxu1 %v4000_v0  ;;  %v11176_v0 = vpack.c.bf16 %v4474_v27, %v4473_v20  ;;  %v9337_v51 = vld [vmem:[%s12335_s10 + $0x174] ss:$8 sps:$4 sm:$0xff]   ;;  %v9341_v20 = vld [vmem:[%s12335_s10 + $0x190] ss:$8 sps:$4 sm:$0xff]   ;;  %v9346_v27 = vld [vmem:[%s12335_s10 + $0x1a4] ss:$8 sps:$4 sm:$0xff]  }
 0x323   :  { %4373 = vmatprep.subr.bf16.mxu1 %v9277_v37  ;;  %v9335_v37 = vld [vmem:[%s12335_s10 + $0x170] ss:$8 sps:$4 sm:$0xff]  }
 0x324   :  { %8693 = vmatpush3.bf16.msra.mxu0 %v11176_v0 }
 0x325   :  { %8695 = vmatprep.subr.bf16.mxu0 %v11178_v22 }
 0x326   :  { %4374 = vmatpush1.bf16.msra.mxu1 %v9275_v63  ;;  %v9340_v63 = vld [vmem:[%s12335_s10 + $0x184] ss:$8 sps:$4 sm:$0xff]  }
 0x327   :  { %4375 = vmatprep.subr.bf16.mxu1 %v9280_v59  ;;  %v9347_v59 = vld [vmem:[%s12335_s10 + $0x1b0] ss:$8 sps:$4 sm:$0xff]  }
 0x328   :  { %8697 = vmatpush3.bf16.msra.mxu0 %v11188_v17 }
 0x32a   :  { %4376 = vmatpush1.bf16.msra.mxu1 %v9278_v15  ;;  %v9355_v15 = vld [vmem:[%s12335_s10 + $0x1d4] ss:$8 sps:$4 sm:$0xff]  }
 0x32b   :  { %4377 = vmatprep.subr.bf16.mxu1 %v9283_v21  ;;  %v9353_v21 = vld [vmem:[%s12335_s10 + $0x1d0] ss:$8 sps:$4 sm:$0xff]  }
 0x32e   :  { %4378 = vmatpush1.bf16.msra.mxu1 %v9281_v52  ;;  %v9358_v52 = vld [vmem:[%s12335_s10 + $0x1e4] ss:$8 sps:$4 sm:$0xff]  }
 0x32f   :  { %4379 = vmatprep.subr.bf16.mxu1 %v9286_v60  ;;  %v9356_v60 = vld [vmem:[%s12335_s10 + $0x1e0] ss:$8 sps:$4 sm:$0xff]  }
 0x332   :  { %4380 = vmatpush1.bf16.msra.mxu1 %v9284_v25  ;;  %v9361_v25 = vld [vmem:[%s12335_s10 + $0x1f4] ss:$8 sps:$4 sm:$0xff]  }
 0x333   :  { %4381 = vmatprep.subr.bf16.mxu1 %v9289_v26  ;;  %v9359_v26 = vld [vmem:[%s12335_s10 + $0x1f0] ss:$8 sps:$4 sm:$0xff]  }
 0x336   :  { %4382 = vmatpush1.bf16.msra.mxu1 %v9287_v42  ;;  %v4493_v42 = vld [vmem:[%s12336_s21 + $0xa0] sm:$0xff] }
 0x337   :  { %4383 = vmatprep.subr.bf16.mxu1 %v9292_v11  ;;  %v4494_v11 = vld [vmem:[%s12336_s21 + $0xa8] sm:$0xff] }
 0x33a   :  { %4384 = vmatpush1.bf16.msra.mxu1 %v9290_v18  ;;  %v11384_v18 = vpack.c.bf16 %v4494_v11, %v4493_v42 }
 0x33b   :  { %4385 = vmatprep.subr.bf16.mxu1 %v9295_v19 }
 0x33c   :  { %8699 = vmatprep.subr.bf16.mxu0 %v11384_v18 }
 0x33d   :  { %8701 = vmatpush3.bf16.msra.mxu0 %v11395_v9 }
 0x33e   :  { %4386 = vmatpush1.bf16.msra.mxu1 %v9293_v40 }
 0x33f   :  { %4387 = vmatprep.subr.bf16.mxu1 %v9298_v5  ;;  %v4497_v5 = vld [vmem:[%s12336_s21 + $0xc0] sm:$0xff] }
 0x342   :  { %4388 = vmatpush1.bf16.msra.mxu1 %v9296_v6  ;;  %v4498_v6 = vld [vmem:[%s12336_s21 + $0xc8] sm:$0xff] }
 0x343   :  { %4389 = vmatprep.subr.bf16.mxu1 %v9301_v2  ;;  %v4481_v2 = vld [vmem:[%s12336_s21 + $0x40] sm:$0xff] }
 0x346   :  { %4390 = vmatpush1.bf16.msra.mxu1 %v9299_v31  ;;  %v11423_v31 = vpack.c.bf16 %v4498_v6, %v4497_v5 }
 0x347   :  { %4391 = vmatprep.subr.bf16.mxu1 %v9304_v43  ;;  %v4482_v43 = vld [vmem:[%s12336_s21 + $0x48] sm:$0xff] }
 0x34a   :  { %4392 = vmatpush1.bf16.msra.mxu1 %v9302_v53  ;;  %v4499_v53 = vld [vmem:[%s12336_s21 + $0xd0] sm:$0xff] }
 0x34b   :  { %4393 = vmatprep.subr.bf16.mxu1 %v9307_v41  ;;  %v4500_v41 = vld [vmem:[%s12336_s21 + $0xd8] sm:$0xff] }
 0x34e   :  { %4394 = vmatpush1.bf16.msra.mxu1 %v9305_v24  ;;  %v11434_v24 = vpack.c.bf16 %v4482_v43, %v4481_v2 }
 0x34f   :  { %4395 = vmatprep.subr.bf16.mxu1 %v9310_v35  ;;  %v11436_v35 = vpack.c.bf16 %v4500_v41, %v4499_v53 }
 0x352   :  { %4396 = vmatpush1.bf16.msra.mxu1 %v9308_v44  ;;  %v4483_v44 = vld [vmem:[%s12336_s21 + $0x50] sm:$0xff] }
 0x353   :  { %4397 = vmatprep.subr.bf16.mxu1 %v9313_v13  ;;  %v4484_v13 = vld [vmem:[%s12336_s21 + $0x58] sm:$0xff] }
 0x356   :  { %4398 = vmatpush1.bf16.msra.mxu1 %v9311_v62  ;;  %v4501_v62 = vld [vmem:[%s12336_s21 + $0xe0] sm:$0xff] }
 0x357   :  { %4420 = vmatprep.subr.bf16.mxu1 %v9316_v29  ;;  %v4502_v29 = vld [vmem:[%s12336_s21 + $0xe8] sm:$0xff] }
 0x359   :  { %4400 = vmatmul.mubr.bf16.vlgmr.msra.gmra.mrb[0].mxu1 %v3999_v34  ;;  %v9323_v34 = vld [vmem:[%s12335_s10 + $0x130] ss:$8 sps:$4 sm:$0xff]  }
 0x35a   :  { %4409 = vmatprep.mubr.bf16.mxu1 %v4036_v1  ;;  %4421 = vmatpush1.bf16.msra.mxu1 %v9314_v28  ;;  %v9328_v1 = vld [vmem:[%s12335_s10 + $0x144] ss:$8 sps:$4 sm:$0xff]   ;;  %v11452_v28 = vpack.c.bf16 %v4484_v13, %v4483_v44 }
 0x35b   :  { %4422 = vmatprep.subr.bf16.mxu1 %v9319_v4  ;;  %v11455_v4 = vpack.c.bf16 %v4502_v29, %v4501_v62 }
 0x35e   :  { %4423 = vmatpush1.bf16.msra.mxu1 %v9317_v3  ;;  %v4485_v3 = vld [vmem:[%s12336_s21 + $0x60] sm:$0xff] }
 0x35f   :  { %4424 = vmatprep.subr.bf16.mxu1 %v9322_v48  ;;  %v4486_v48 = vld [vmem:[%s12336_s21 + $0x68] sm:$0xff] }
 0x361   :  { %4410 = vmatmul.mubr.bf16.gmra.mrb[4].mxu1 %v4035_v46  ;;  %v9329_v46 = vld [vmem:[%s12335_s10 + $0x150] ss:$8 sps:$4 sm:$0xff]  }
 0x362   :  { %4425 = vmatpush1.bf16.msra.mxu1 %v9320_v33  ;;  %4452 = vmatprep.mubr.bf16.mxu1 %v4002_v45  ;;  %v9334_v45 = vld [vmem:[%s12335_s10 + $0x164] ss:$8 sps:$4 sm:$0xff]   ;;  %v4503_v33 = vld [vmem:[%s12336_s21 + $0xf0] sm:$0xff] }
 0x363   :  { %4426 = vmatprep.subr.bf16.mxu1 %v9325_v58  ;;  %v4504_v58 = vld [vmem:[%s12336_s21 + $0xf8] sm:$0xff] }
 0x366   :  { %4427 = vmatpush1.bf16.msra.mxu1 %v9323_v34  ;;  %v11470_v34 = vpack.c.bf16 %v4486_v48, %v4485_v3 }
 0x367   :  { %4428 = vmatprep.subr.bf16.mxu1 %v9328_v1  ;;  %v11473_v1 = vpack.c.bf16 %v4504_v58, %v4503_v33 }
 0x36a   :  { %4429 = vmatpush1.bf16.msra.mxu1 %v9326_v49  ;;  %v4487_v49 = vld [vmem:[%s12336_s21 + $0x70] sm:$0xff] }
 0x36b   :  { %4430 = vmatprep.subr.bf16.mxu1 %v9331_v7  ;;  %v4488_v7 = vld [vmem:[%s12336_s21 + $0x78] sm:$0xff] }
 0x36e   :  { %4431 = vmatpush1.bf16.msra.mxu1 %v9329_v46  ;;  %v11482_v46 = vpack.c.bf16 %v4488_v7, %v4487_v49 }
 0x36f   :  { %4432 = vmatprep.subr.bf16.mxu1 %v9334_v45 }
 0x372   :  { %4433 = vmatpush1.bf16.msra.mxu1 %v9332_v54 }
 0x373   :  { %4434 = vmatprep.subr.bf16.mxu1 %v9337_v51 }
 0x376   :  { %4435 = vmatpush1.bf16.msra.mxu1 %v9335_v37 }
 0x377   :  { %4436 = vmatprep.subr.bf16.mxu1 %v9340_v63 }
 0x37a   :  { %4437 = vmatpush1.bf16.msra.mxu1 %v9338_v14 }
 0x37b   :  { %4438 = vmatprep.subr.bf16.mxu1 %v9343_v39 }
 0x37e   :  { %4439 = vmatpush1.bf16.msra.mxu1 %v9341_v20 }
 0x37f   :  { %4440 = vmatprep.subr.bf16.mxu1 %v9346_v27 }
 0x382   :  { %4441 = vmatpush1.bf16.msra.mxu1 %v9344_v12 }
 0x383   :  { %4442 = vmatprep.subr.bf16.mxu1 %v9349_v47 }
 0x386   :  { %4443 = vmatpush1.bf16.msra.mxu1 %v9347_v59 }
 0x387   :  { %4444 = vmatprep.subr.bf16.mxu1 %v9352_v56 }
 0x38a   :  { %4445 = vmatpush1.bf16.msra.mxu1 %v9350_v57 }
 0x38b   :  { %4446 = vmatprep.subr.bf16.mxu1 %v9355_v15 }
 0x38e   :  { %4447 = vmatpush1.bf16.msra.mxu1 %v9353_v21 }
 0x38f   :  { %4448 = vmatprep.subr.bf16.mxu1 %v9358_v52 }
 0x392   :  { %4449 = vmatpush1.bf16.msra.mxu1 %v9356_v60 }
 0x393   :  { %4450 = vmatprep.subr.bf16.mxu1 %v9361_v25 }
 0x396   :  { %4451 = vmatpush1.bf16.msra.mxu1 %v9359_v26 }
 0x399   :  { %4453 = vmatmul.mubr.bf16.vlgmr.msra.gmra.mrb[0].mxu1 %v4001_v55  ;;  %v4496_v55 = vld [vmem:[%s12336_s21 + $0xb8] sm:$0xff] }
 0x39a   :  { %4462 = vmatprep.mubr.bf16.mxu1 %v4038_v61  ;;  %v4479_v61 = vld [vmem:[%s12336_s21 + $0x30] sm:$0xff]  ;;  %v11407_v19 = vpack.c.bf16 %v4496_v55, %v4495_v8 }
 0x39c   :  { %8703 = vmatprep.subr.bf16.mxu0 %v11407_v19 }
 0x3a1   :  { %4463 = vmatmul.mubr.bf16.gmra.mrb[4].mxu1 %v4037_v23  ;;  %v4480_v23 = vld [vmem:[%s12336_s21 + $0x38] sm:$0xff] }
 0x3a2   :  { %v11410_v40 = vpack.c.bf16 %v4480_v23, %v4479_v61 }
 0x3a4   :  { %8705 = vmatpush3.bf16.msra.mxu0 %v11410_v40 }
 0x3a5   :  { %8707 = vmatprep.subr.bf16.mxu0 %v11423_v31 }
 0x3a8   :  { %8709 = vmatpush3.bf16.msra.mxu0 %v11434_v24 }
 0x3a9   :  { %8711 = vmatprep.subr.bf16.mxu0 %v11436_v35 }
 0x3ac   :  { %8713 = vmatpush3.bf16.msra.mxu0 %v11452_v28 }
 0x3ad   :  { %8715 = vmatprep.subr.bf16.mxu0 %v11455_v4 }
 0x3b0   :  { %8717 = vmatpush3.bf16.msra.mxu0 %v11470_v34 }
 0x3b1   :  { %8719 = vmatprep.subr.bf16.mxu0 %v11473_v1 }
 0x3b4   :  { %8721 = vmatpush3.bf16.msra.mxu0 %v11482_v46 }
 0x3b5   :  { %8723 = vmatprep.subr.bf16.mxu0 %v11162_v10 }
 0x46c   :  { %v11487_v45 = vpop.f32.mrb[0].mxu1 }
 0x46d   :  { %v11489_v54 = vpop.f32.mrb[1].mxu1  ;;  %v4529_v37 = vmul.f32 %v11487_v45, %v11487_v45 }
 0x46e   :  { %v11491_v51 = vpop.f32.mrb[2].mxu1  ;;  %v4530_v10 = vmul.f32 %v11489_v54, %v11489_v54 }
 0x46f   :  { %v4511_v63 = vadd.f32 %v11491_v51, %v11487_v45  ;;  %v4531_v14 = vmul.f32 %v11491_v51, %v11491_v51  ;;  %v11499_v39 = vpop.f32.mrb[3].mxu1 }
 0x470   :  { %v4520_v20 = vadd.f32 %v11499_v39, %v11489_v54  ;;  %v4532_v27 = vmul.f32 %v11499_v39, %v11499_v39 }
 0x471   :  { %v4537_v12 = vadd.f32 %v4531_v14, %v4529_v37 }
 0x472   :  { %v4546_v47 = vadd.f32 %v4532_v27, %v4530_v10  ;;  %v9367_v10 = vld [vmem:[#allocation14 + $0x14] ss:$8 sps:$4 sm:$0xff]  }
 0x473   :  { %v9373_v27 = vld [vmem:[#allocation14 + $0x34] ss:$8 sps:$4 sm:$0xff]  }
 0x474   :  { %v11507_v59 = vpop.f32.mrb[4].mxu1 }
 0x475   :  { %v4512_v56 = vadd.f32 %v4511_v63, %v11507_v59  ;;  %v4533_v57 = vmul.f32 %v11507_v59, %v11507_v59  ;;  %v11512_v15 = vpop.f32.mrb[5].mxu1 }
 0x476   :  { %v4521_v21 = vadd.f32 %v4520_v20, %v11512_v15  ;;  %v4534_v52 = vmul.f32 %v11512_v15, %v11512_v15  ;;  %v11517_v60 = vpop.f32.mrb[6].mxu1  ;;  %v9368_v20 = vld [vmem:[#allocation14 + $0x20] ss:$8 sps:$4 sm:$0xff]  }
 0x477   :  { %v4538_v25 = vadd.f32 %v4537_v12, %v4533_v57  ;;  %v4513_v26 = vadd.f32 %v4512_v56, %v11517_v60  ;;  %v4535_v42 = vmul.f32 %v11517_v60, %v11517_v60  ;;  %v11522_v11 = vpop.f32.mrb[7].mxu1  ;;  %v9371_v12 = vld [vmem:[#allocation14 + $0x30] ss:$8 sps:$4 sm:$0xff]   ;;  %v9374_v56 = vld [vmem:[#allocation14 + $0x40] ss:$8 sps:$4 sm:$0xff]  }
 0x478   :  { %v4547_v38 = vadd.f32 %v4546_v47, %v4534_v52  ;;  %v4522_v32 = vadd.f32 %v4521_v21, %v11522_v11  ;;  %v4536_v8 = vmul.f32 %v11522_v11, %v11522_v11  ;;  %v9376_v47 = vld [vmem:[#allocation14 + $0x44] ss:$8 sps:$4 sm:$0xff]  }
 0x479   :  { %v4514_v55 = vrot.slane %v4513_v26, 4  ;;  %v4539_v61 = vadd.f32 %v4538_v25, %v4535_v42 }
 0x47a   :  { %v4523_v23 = vrot.slane %v4522_v32, 4  ;;  %v4548_v5 = vadd.f32 %v4547_v38, %v4536_v8 }
 0x47b   :  { %v4515_v6 = vadd.f32 %v4514_v55, %v4513_v26  ;;  %v4540_v63 = vrot.slane %v4539_v61, 4 }
 0x47c   :  { %v4524_v2 = vadd.f32 %v4523_v23, %v4522_v32  ;;  %v4549_v43 = vrot.slane %v4548_v5, 4  ;;  %v4509_v23 = vld [vmem:[%s12282_s7] sm:$0x1]  ;;  %s12346_s7 = sld [smem:[#allocation35_spill]] }
 0x47d   :  { %v4516_v53 = vrot.slane %v4515_v6, 2  ;;  %v4541_v14 = vadd.f32 %v4540_v63, %v4539_v61  ;;  %v9377_v63 = vld [vmem:[#allocation14 + $0x50] ss:$8 sps:$4 sm:$0xff]  }
 0x47e   :  { %v4525_v41 = vrot.slane %v4524_v2, 2  ;;  %v4550_v44 = vadd.f32 %v4549_v43, %v4548_v5 }
 0x47f   :  { %v4517_v13 = vadd.f32 %v4516_v53, %v4515_v6  ;;  %v11550_v53 = vsub.s32 0, %v10273_v16 }
 0x480   :  { %v4526_v62 = vadd.f32 %v4525_v41, %v4524_v2  ;;  %v4551_v29 = vrot.slane %v4550_v44, 2  ;;  %v4510_v2 = vld [vmem:[%s12283_s8] sm:$0x1] }
 0x481   :  { %v4518_v3 = vrot.slane %v4517_v13, 1 }
 0x482   :  { %v4527_v48 = vrot.slane %v4526_v62, 1  ;;  %v4552_v33 = vadd.f32 %v4551_v29, %v4550_v44  ;;  %v230_v29 = vld [vmem:[#allocation3] sm:$0x11] }
 0x483   :  { %v4519_v7 = vadd.f32 %v4518_v3, %v4517_v13  ;;  %v233_v3 = vld [vmem:[#allocation3 + $0x18] sm:$0x11] }
 0x484   :  { %v4528_v58 = vadd.f32 %v4527_v48, %v4526_v62  ;;  %v4553_v49 = vrot.slane %v4552_v33, 1  ;;  %v239_v48 = vld [vmem:[#allocation3 + $0x10] sm:$0x11] }
 0x485   :  { %v9581_v62 = vld [vmem:[#allocation19 + $0x90] ss:$8 sps:$4 sm:$0xff]  }
 0x486   :  { %4619 = vmatprep.mubr.f32.mxu0 %v4528_v58  ;;  %v4554_v37 = vadd.f32 %v4553_v49, %v4552_v33  ;;  %v231_v33 = vsel %vm10874_vm15, 0, %v230_v29  ;;  %v234_v58 = vsel %vm10874_vm15, 0, %v233_v3  ;;  %v240_v49 = vsel %vm11558_vm7, 0, %v239_v48 }
 0x487   :  { %4620 = vmatmul.mubr.f32.vlgmr.msra.gmra.mrb[16].mxu0 %v4519_v7  ;;  %v242_v7 = vld [vmem:[#allocation3 + $0x28] sm:$0x11]  ;;  %232 = vst [vmem:[#allocation3] sm:$0x11] %v231_v33  ;;  %235 = vst [vmem:[#allocation3 + $0x18] sm:$0x11] %v234_v58 }
 0x488   :  { %8725 = vmatpush3.bf16.msra.mxu0 %v11176_v0  ;;  %4691 = vmatprep.mubr.f32.mxu0 %v4554_v37  ;;  %v4542_v0 = vrot.slane %v4541_v14, 2  ;;  %241 = vst [vmem:[#allocation3 + $0x10] sm:$0x11] %v240_v49  ;;  %v243_v37 = vsel %vm11558_vm7, 0, %v242_v7 }
 0x489   :  { %8727 = vmatprep.subr.bf16.mxu0 %v11178_v22  ;;  %244 = vst [vmem:[#allocation3 + $0x28] sm:$0x11] %v243_v37 }
 0x48a   :  { %v4543_v22 = vadd.f32 %v4542_v0, %v4541_v14  ;;  %v9379_v14 = vld [vmem:[#allocation14 + $0x54] ss:$8 sps:$4 sm:$0xff]   ;;  %v9382_v0 = vld [vmem:[#allocation14 + $0x64] ss:$8 sps:$4 sm:$0xff]  }
 0x48c   :  { %8729 = vmatpush3.bf16.msra.mxu0 %v11188_v17  ;;  %v4544_v17 = vrot.slane %v4543_v22, 1 }
 0x48d   :  { %8731 = vmatprep.subr.bf16.mxu0 %v11384_v18 }
 0x48e   :  { %v4545_v18 = vadd.f32 %v4544_v17, %v4543_v22  ;;  %v9380_v22 = vld [vmem:[#allocation14 + $0x60] ss:$8 sps:$4 sm:$0xff]   ;;  %v9385_v17 = vld [vmem:[#allocation14 + $0x74] ss:$8 sps:$4 sm:$0xff]  }
 0x490   :  { %8733 = vmatpush3.bf16.msra.mxu0 %v11395_v9  ;;  %v4506_v9 = vld [vmem:[#allocation13 + $0x8] sm:$0xff] }
 0x491   :  { %8735 = vmatprep.subr.bf16.mxu0 %v11407_v19  ;;  %v4508_v19 = vld [vmem:[#allocation13 + $0x18] sm:$0xff] }
 0x494   :  { %8737 = vmatpush3.bf16.msra.mxu0 %v11410_v40  ;;  %v4505_v40 = vld [vmem:[#allocation13] sm:$0xff] }
 0x495   :  { %8739 = vmatprep.subr.bf16.mxu0 %v11423_v31  ;;  %v8754_v31 = vpack.c.bf16 %v4508_v19, %v4506_v9  ;;  %v9388_v9 = vld [vmem:[#allocation14 + $0x84] ss:$8 sps:$4 sm:$0xff]   ;;  %v9386_v19 = vld [vmem:[#allocation14 + $0x80] ss:$8 sps:$4 sm:$0xff]  }
 0x498   :  { %8741 = vmatpush3.bf16.msra.mxu0 %v11434_v24  ;;  %v4507_v24 = vld [vmem:[#allocation13 + $0x10] sm:$0xff] }
 0x499   :  { %8743 = vmatprep.subr.bf16.mxu0 %v11436_v35  ;;  %v10007_v35 = vmov 0.0  }
 0x49c   :  { %8745 = vmatpush3.bf16.msra.mxu0 %v11452_v28  ;;  %v8756_v28 = vpack.c.bf16 %v4507_v24, %v4505_v40  ;;  %v9391_v40 = vld [vmem:[#allocation14 + $0x94] ss:$8 sps:$4 sm:$0xff]   ;;  %v9394_v24 = vld [vmem:[#allocation14 + $0xa4] ss:$8 sps:$4 sm:$0xff]  }
 0x49d   :  { %8747 = vmatprep.subr.bf16.mxu0 %v11455_v4  ;;  %v9362_v4 = vld [vmem:[#allocation14] ss:$8 sps:$4 sm:$0xff]  }
 0x4a0   :  { %8749 = vmatpush3.bf16.msra.mxu0 %v11470_v34  ;;  %v9364_v34 = vld [vmem:[#allocation14 + $0x4] ss:$8 sps:$4 sm:$0xff]  }
 0x4a1   :  { %8751 = vmatprep.subr.bf16.mxu0 %v11473_v1  ;;  %5491 = vmatprep.subr.bf16.mxu1 %v9364_v34  ;;  %v9365_v1 = vld [vmem:[#allocation14 + $0x10] ss:$8 sps:$4 sm:$0xff]  }
 0x4a2   :  { %5492 = vmatpush1.bf16.msra.mxu1 %v9362_v4  ;;  %v9397_v4 = vld [vmem:[#allocation14 + $0xb4] ss:$8 sps:$4 sm:$0xff]   ;;  %v9395_v34 = vld [vmem:[#allocation14 + $0xb0] ss:$8 sps:$4 sm:$0xff]  }
 0x4a3   :  { %5493 = vmatprep.subr.bf16.mxu1 %v9367_v10  ;;  %v9400_v10 = vld [vmem:[#allocation14 + $0xc4] ss:$8 sps:$4 sm:$0xff]  }
 0x4a4   :  { %8753 = vmatpush3.bf16.msra.mxu0 %v11482_v46  ;;  %v9370_v46 = vld [vmem:[#allocation14 + $0x24] ss:$8 sps:$4 sm:$0xff]  }
 0x4a5   :  { %8755 = vmatprep.subr.bf16.mxu0 %v8754_v31  ;;  %v9389_v31 = vld [vmem:[#allocation14 + $0x90] ss:$8 sps:$4 sm:$0xff]  }
 0x4a6   :  { %5494 = vmatpush1.bf16.msra.mxu1 %v9365_v1  ;;  %v9398_v1 = vld [vmem:[#allocation14 + $0xc0] ss:$8 sps:$4 sm:$0xff]  }
 0x4a7   :  { %4692 = vmatmul.mubr.f32.vlgmr.msra.gmra.mrb[18].mxu0 %v4545_v18  ;;  %5495 = vmatprep.subr.bf16.mxu1 %v9370_v46  ;;  %v9383_v18 = vld [vmem:[#allocation14 + $0x70] ss:$8 sps:$4 sm:$0xff]   ;;  %v9403_v46 = vld [vmem:[#allocation14 + $0xd4] ss:$8 sps:$4 sm:$0xff]  }
 0x4a8   :  { %4781 = vmatprep.mubr.f32.mxu0 %v10007_v35  ;;  %8757 = vmatpush1.bf16.msra.mxu0 %v8756_v28  ;;  %v9392_v28 = vld [vmem:[#allocation14 + $0xa0] ss:$8 sps:$4 sm:$0xff]  }
 0x4aa   :  { %5496 = vmatpush1.bf16.msra.mxu1 %v9368_v20  ;;  %v9401_v20 = vld [vmem:[#allocation14 + $0xd0] ss:$8 sps:$4 sm:$0xff]  }
 0x4ab   :  { %5497 = vmatprep.subr.bf16.mxu1 %v9373_v27  ;;  %v9406_v27 = vld [vmem:[#allocation14 + $0xe4] ss:$8 sps:$4 sm:$0xff]  }
 0x4ae   :  { %5498 = vmatpush1.bf16.msra.mxu1 %v9371_v12  ;;  %v9404_v12 = vld [vmem:[#allocation14 + $0xe0] ss:$8 sps:$4 sm:$0xff]  }
 0x4af   :  { %5499 = vmatprep.subr.bf16.mxu1 %v9376_v47  ;;  %v9409_v47 = vld [vmem:[#allocation14 + $0xf4] ss:$8 sps:$4 sm:$0xff]  }
 0x4b2   :  { %5500 = vmatpush1.bf16.msra.mxu1 %v9374_v56  ;;  %v9407_v56 = vld [vmem:[#allocation14 + $0xf0] ss:$8 sps:$4 sm:$0xff]  }
 0x4b3   :  { %5501 = vmatprep.subr.bf16.mxu1 %v9379_v14 }
 0x4b6   :  { %5502 = vmatpush1.bf16.msra.mxu1 %v9377_v63 }
 0x4b7   :  { %5503 = vmatprep.subr.bf16.mxu1 %v9382_v0 }
 0x4ba   :  { %5504 = vmatpush1.bf16.msra.mxu1 %v9380_v22 }
 0x4bb   :  { %5505 = vmatprep.subr.bf16.mxu1 %v9385_v17 }
 0x4be   :  { %5506 = vmatpush1.bf16.msra.mxu1 %v9383_v18 }
 0x4bf   :  { %5507 = vmatprep.subr.bf16.mxu1 %v9388_v9 }
 0x4c2   :  { %5508 = vmatpush1.bf16.msra.mxu1 %v9386_v19 }
 0x4c3   :  { %5509 = vmatprep.subr.bf16.mxu1 %v9391_v40 }
 0x4c6   :  { %5510 = vmatpush1.bf16.msra.mxu1 %v9389_v31 }
 0x4c7   :  { %5511 = vmatprep.subr.bf16.mxu1 %v9394_v24 }
 0x4ca   :  { %5512 = vmatpush1.bf16.msra.mxu1 %v9392_v28 }
 0x4cb   :  { %5513 = vmatprep.subr.bf16.mxu1 %v9397_v4 }
 0x4ce   :  { %5514 = vmatpush1.bf16.msra.mxu1 %v9395_v34 }
 0x4cf   :  { %5515 = vmatprep.subr.bf16.mxu1 %v9400_v10 }
 0x4d2   :  { %5516 = vmatpush1.bf16.msra.mxu1 %v9398_v1 }
 0x4d3   :  { %5517 = vmatprep.subr.bf16.mxu1 %v9403_v46 }
 0x4d6   :  { %5518 = vmatpush1.bf16.msra.mxu1 %v9401_v20 }
 0x4d7   :  { %5519 = vmatprep.subr.bf16.mxu1 %v9406_v27 }
 0x4da   :  { %5520 = vmatpush1.bf16.msra.mxu1 %v9404_v12  ;;  %v4911_v12 = vld [vmem:[#allocation3] sm:$0xff] }
 0x4db   :  { %5521 = vmatprep.subr.bf16.mxu1 %v9409_v47 }
 0x4de   :  { %5522 = vmatpush1.bf16.msra.mxu1 %v9407_v56 }
 0x55a   :  { %v8512_v57 = vpop.f32.mrb[16].mxu0 }
 0x55b   :  { %v8513_v21 = vpop.f32.mrb[17].mxu0 }
 0x55c   :  { %v8514_v52 = vadd.f32 %v8513_v21, %v8512_v57  ;;  %v9412_v57 = vld [vmem:[#allocation14 + $0x104] ss:$8 sps:$4 sm:$0xff]   ;;  %v11571_v21 = vsub.s32 1, %v10273_v16 }
 0x55d   :  { %5534 = vmatprep.subr.bf16.mxu1 %v9412_v57 }
 0x55e   :  { %v4626_v25 = vmul.f32 0.001953125, %v8514_v52 }
 0x560   :  { %v4698_v32 = vmul.f32 %v4626_v25, %v4626_v25 }
 0x57a   :  { %v8547_v26 = vpop.f32.mrb[18].mxu0 }
 0x57b   :  { %v8548_v42 = vpop.f32.mrb[19].mxu0 }
 0x57c   :  { %v8549_v38 = vadd.f32 %v8548_v42, %v8547_v26 }
 0x57e   :  { %v4697_v8 = vmul.f32 0.001953125, %v8549_v38 }
 0x580   :  { %v4699_v55 = vsub.f32 %v4697_v8, %v4698_v32 }
 0x582   :  { %v4700_v61 = vadd.f32 1e-05, %v4699_v55 }
 0x584   :  { %9746 = vrsqrt.f32 %v4700_v61 }
 0x58e   :  { %v9747_v5 = vpop.eup %9746 }
 0x58f   :  { %v4702_v6 = vmul.f32 %v9747_v5, %v4509_v23 }
 0x591   :  { %v4703_v43 = vmul.f32 %v4702_v6, %v4626_v25 }
 0x593   :  { %v4704_v41 = vsub.f32 %v4510_v2, %v4703_v43 }
 0x595   :  { %v4709_v44 = vrot.slane %v4704_v41, %v11550_v53 }
 0x597   :  { %v4712_v13 = vsel %vm12306_vm13, %v4702_v6, %v4709_v44  ;;  %vm4908_vm13 = vcmask 1047556  }
 0x598   :  { %8175 = vmatmul.mubr.msk.f32.vlgmr.msra.gmra.mrb[20].mxu0 %vm4713_vm3, %v4712_v13 }
 0x66b   :  { %v4783_v52 = vpop.f32.mrb[20].mxu0 }
 0x66c   :  { %v4791_v25 = vrot.slane %v4783_v52, %v11550_v53  ;;  %v4785_v26 = vpop.f32.mrb[21].mxu0  ;;  %v4807_v42 = vrot.slane %v4783_v52, %v11571_v21 }
 0x66d   :  { %v4795_v38 = vrot.slane %v4785_v26, %v11550_v53  ;;  %v4811_v32 = vrot.slane %v4785_v26, %v11571_v21  ;;  %v4915_v26 = vld [vmem:[#allocation3 + $0x10] sm:$0x11] }
 0x66e   :  { %v4796_v8 = vmul.f32 %v4791_v25, %v11487_v45  ;;  %v4798_v55 = vmul.f32 %v4791_v25, %v11491_v51  ;;  %v4800_v61 = vmul.f32 %v4791_v25, %v11507_v59  ;;  %v4802_v23 = vmul.f32 %v4791_v25, %v11517_v60 }
 0x66f   :  { %v4797_v5 = vmul.f32 %v4795_v38, %v11489_v54  ;;  %v4799_v6 = vmul.f32 %v4795_v38, %v11499_v39  ;;  %v4801_v2 = vmul.f32 %v4795_v38, %v11512_v15  ;;  %v4803_v43 = vmul.f32 %v4795_v38, %v11522_v11 }
 0x670   :  { %v4812_v41 = vadd.f32 %v4807_v42, %v4796_v8  ;;  %v4814_v44 = vadd.f32 %v4807_v42, %v4798_v55  ;;  %v4816_v13 = vadd.f32 %v4807_v42, %v4800_v61  ;;  %v4818_v29 = vadd.f32 %v4807_v42, %v4802_v23  ;;  %v4918_v55 = vld [vmem:[#allocation3 + $0x18] sm:$0xff]  ;;  %v4922_v61 = vld [vmem:[#allocation3 + $0x28] sm:$0x11] }
 0x671   :  { %v4813_v3 = vadd.f32 %v4811_v32, %v4797_v5  ;;  %v4815_v45 = vadd.f32 %v4811_v32, %v4799_v6  ;;  %v4817_v48 = vadd.f32 %v4811_v32, %v4801_v2  ;;  %v4819_v51 = vadd.f32 %v4811_v32, %v4803_v43 }
 0x672   :  { %vm4820_vm14 = vcmp.ge.f32.partialorder %v4812_v41, 0.0  ;;  %vm4822_vm8 = vcmp.ge.f32.partialorder %v4814_v44, 0.0  ;;  %vm4824_vm9 = vcmp.ge.f32.partialorder %v4816_v13, 0.0  ;;  %v4828_v59 = vmul.f32 0.2, %v4812_v41 }
 0x673   :  { %v4830_v60 = vmul.f32 0.2, %v4814_v44  ;;  %v4832_v54 = vmul.f32 0.2, %v4816_v13  ;;  %vm4826_vm10 = vcmp.ge.f32.partialorder %v4818_v29, 0.0  ;;  %vm4821_vm11 = vcmp.ge.f32.partialorder %v4813_v3, 0.0 }
 0x674   :  { %v4834_v39 = vmul.f32 0.2, %v4818_v29  ;;  %vm4823_vm12 = vcmp.ge.f32.partialorder %v4815_v45, 0.0  ;;  %v4836_v15 = vsel %vm4820_vm14, %v4812_v41, %v4828_v59  ;;  %vm4825_vm3 = vcmp.ge.f32.partialorder %v4817_v48, 0.0 }
 0x675   :  { %v4838_v11 = vsel %vm4822_vm8, %v4814_v44, %v4830_v60  ;;  %vm4827_vm4 = vcmp.ge.f32.partialorder %v4819_v51, 0.0  ;;  %v4840_v33 = vsel %vm4824_vm9, %v4816_v13, %v4832_v54  ;;  %v4829_v58 = vmul.f32 0.2, %v4813_v3  ;;  %vm11587_vm8 = vmand %vm4906_vm5, %vm211_vm2 }
 0x676   :  { %v4831_v49 = vmul.f32 0.2, %v4815_v45  ;;  %v4833_v7 = vmul.f32 0.2, %v4817_v48  ;;  %v4842_v37 = vsel %vm4826_vm10, %v4818_v29, %v4834_v39  ;;  %v4835_v63 = vmul.f32 0.2, %v4819_v51  ;;  %vm4909_vm9 = vmand %vm4908_vm13, %vm214_vm1 }
 0x677   :  { %v4837_v14 = vsel %vm4821_vm11, %v4813_v3, %v4829_v58  ;;  %vm4864_vm14 = vsmask.f32 4368  ;;  %vm11599_vm2 = vmor %vm4909_vm9, %vm11587_vm8  ;;  %vm6254_vm1 = vcmask 261120   ;;  %vm12345_vm13 = vcmask 1040384  }
 0x678   :  { %v4839_v0 = vsel %vm4823_vm12, %v4815_v45, %v4831_v49  ;;  %v4841_v22 = vsel %vm4825_vm3, %v4817_v48, %v4833_v7  ;;  %v4843_v17 = vsel %vm4827_vm4, %v4819_v51, %v4835_v63  ;;  %v8470_v18 = vpack.c.bf16 %v4837_v14, %v4836_v15  ;;  %vm11593_vm10 = vmor %vm224_vm6, %vm4864_vm14 }
 0x679   :  { %v8471_v9 = vpack.c.bf16 %v4839_v0, %v4838_v11  ;;  %v8472_v19 = vpack.c.bf16 %v4841_v22, %v4840_v33  ;;  %v8473_v40 = vpack.c.bf16 %v4843_v17, %v4842_v37  ;;  %vm7843_vm14 = vcmask 1041409  }
 0x67a   :  { %v4867_v24 = vshrl.u32 %v8470_v18, 16  ;;  %v4870_v46 = vshll.u32 %v8470_v18, 16  ;;  %vm7846_vm8 = vcmask 25600  }
 0x67b   :  { %v4875_v28 = vshrl.u32 %v8471_v9, 16  ;;  %v4884_v4 = vshrl.u32 %v8472_v19, 16  ;;  %v4892_v34 = vshrl.u32 %v8473_v40, 16  ;;  %v4878_v27 = vshll.u32 %v8471_v9, 16 }
 0x67c   :  { %v4869_v1 = vrot.slane %v4867_v24, 7  ;;  %v4887_v56 = vshll.u32 %v8472_v19, 16  ;;  %v4895_v52 = vshll.u32 %v8473_v40, 16 }
 0x67d   :  { %v4877_v20 = vrot.slane %v4875_v28, 7  ;;  %v4886_v47 = vrot.slane %v4884_v4, 7  ;;  %v4894_v57 = vrot.slane %v4892_v34, 7 }
 0x67e   :  { %v4872_v42 = vor.u32 %v4870_v46, %v4869_v1  ;;  %v4873_v38 = vrot.slane %v4869_v1, 4 }
 0x67f   :  { %v4880_v32 = vor.u32 %v4878_v27, %v4877_v20  ;;  %v4882_v8 = vrot.slane %v4877_v20, 4  ;;  %v4889_v23 = vor.u32 %v4887_v56, %v4886_v47  ;;  %v4890_v5 = vrot.slane %v4886_v47, 4 }
 0x680   :  { %v4897_v6 = vor.u32 %v4895_v52, %v4894_v57  ;;  %v4899_v2 = vrot.slane %v4894_v57, 4  ;;  %v4912_v41 = vsel %vm11599_vm2, %v4872_v42, %v4911_v12 }
 0x681   :  { %v4881_v43 = vsel %vm11593_vm10, %v4873_v38, %v4880_v32  ;;  %v4916_v44 = vsel %vm10874_vm15, %v4882_v8, %v4915_v26  ;;  %4913 = vst [vmem:[#allocation3] sm:$0xff] %v4912_v41  ;;  %v4919_v29 = vsel %vm11599_vm2, %v4889_v23, %v4918_v55  ;;  %v5061_v45 = vunpack.i.h.s16 %v4912_v41 }
 0x682   :  { %v4898_v13 = vsel %vm11593_vm10, %v4890_v5, %v4897_v6  ;;  %4917 = vst [vmem:[#allocation3 + $0x10] sm:$0x11] %v4916_v44  ;;  %v4923_v3 = vsel %vm10874_vm15, %v4899_v2, %v4922_v61  ;;  %4920 = vst [vmem:[#allocation3 + $0x18] sm:$0xff] %v4919_v29  ;;  %v5065_v48 = vunpack.i.h.s16 %v4881_v43  ;;  %v5073_v51 = vunpack.i.h.s16 %v4919_v29 }
 0x683   :  { %4924 = vst [vmem:[#allocation3 + $0x28] sm:$0x11] %v4923_v3  ;;  %v5077_v59 = vunpack.i.h.s16 %v4898_v13  ;;  %v8250_v60 = vpack.c.b16 %v4881_v43, %v4912_v41  ;;  %v8180_v54 = vpack.c.b16 %v5061_v45, %v4912_v41  ;;  %v8252_v39 = vpack.c.b16 %v4898_v13, %v4919_v29 }
 0x684   :  { %v8181_v15 = vpack.c.b16 %v5065_v48, %v4881_v43  ;;  %v8183_v11 = vpack.c.b16 %v5073_v51, %v4919_v29  ;;  %v8251_v63 = vpack.c.b16 %v5065_v48, %v5061_v45 }
 0x685   :  { %v8184_v33 = vpack.c.b16 %v5077_v59, %v4898_v13  ;;  %v11616_v58 = vrot.slane %v8250_v60, %v10730_v30  ;;  %v5084_v49 = vshrl.u32 %v8180_v54, 16  ;;  %v5087_v7 = vshll.u32 %v8180_v54, 16 }
 0x686   :  { %v11619_v37 = vrot.slane %v8252_v39, %v10730_v30  ;;  %v5093_v14 = vshll.u32 %v8181_v15, 16  ;;  %v5097_v0 = vshrl.u32 %v8181_v15, 16  ;;  %v5108_v22 = vshrl.u32 %v8183_v11, 16 }
 0x687   :  { %v5111_v17 = vshll.u32 %v8183_v11, 16  ;;  %v5086_v18 = vrot.slane %v5084_v49, 6  ;;  %v5089_v9 = vrot.slane %v5087_v7, 7  ;;  %v5117_v19 = vshll.u32 %v8184_v33, 16 }
 0x688   :  { %v5121_v40 = vshrl.u32 %v8184_v33, 16  ;;  %v5095_v24 = vrot.slane %v5093_v14, 7  ;;  %v5099_v28 = vrot.slane %v5097_v0, 6  ;;  %v5110_v4 = vrot.slane %v5108_v22, 6  ;;  %v9410_v14 = vld [vmem:[#allocation14 + $0x100] ss:$8 sps:$4 sm:$0xff]  }
 0x689   :  { %v5055_v31 = vld [vmem:[#allocation3 + $0x10] sm:$0x11]  ;;  %v5113_v34 = vrot.slane %v5111_v17, 7  ;;  %v5090_v46 = vor.u32 %v5089_v9, %v5086_v18  ;;  %v5119_v20 = vrot.slane %v5117_v19, 7  ;;  %v5610_v56 = vcombine.high %v11616_v58, %v11619_v37  ;;  %v9418_v9 = vld [vmem:[#allocation14 + $0x124] ss:$8 sps:$4 sm:$0xff]  }
 0x68a   :  { %v5058_v10 = vld [vmem:[#allocation3 + $0x28] sm:$0x11]  ;;  %v5069_v1 = vunpack.i.h.s16 %v5055_v31  ;;  %v5123_v27 = vrot.slane %v5121_v40, 6  ;;  %v5100_v26 = vor.u32 %v5099_v28, %v5095_v24  ;;  %v5609_v42 = vcombine.low %v11616_v58, %v11619_v37  ;;  %v9416_v19 = vld [vmem:[#allocation14 + $0x120] ss:$8 sps:$4 sm:$0xff]  }
 0x68b   :  { %v5081_v12 = vunpack.i.h.s16 %v5058_v10  ;;  %v5114_v47 = vor.u32 %v5113_v34, %v5110_v4  ;;  %v5091_v52 = vrot.slane %v5090_v46, 2  ;;  %v8253_v55 = vpack.c.b16 %v5077_v59, %v5073_v51  ;;  %v9415_v17 = vld [vmem:[#allocation14 + $0x114] ss:$8 sps:$4 sm:$0xff]   ;;  %v9413_v18 = vld [vmem:[#allocation14 + $0x110] ss:$8 sps:$4 sm:$0xff]  }
 0x68c   :  { %v8182_v57 = vpack.c.b16 %v5069_v1, %v5055_v31  ;;  %v5124_v8 = vor.u32 %v5123_v27, %v5119_v20  ;;  %v11628_v5 = vrot.slane %v8251_v63, %v10730_v30  ;;  %v5101_v41 = vrot.slane %v5100_v26, 2  ;;  %v9421_v40 = vld [vmem:[#allocation14 + $0x134] ss:$8 sps:$4 sm:$0xff]   ;;  %v9419_v31 = vld [vmem:[#allocation14 + $0x130] ss:$8 sps:$4 sm:$0xff]  }
 0x68d   :  { %v8185_v38 = vpack.c.b16 %v5081_v12, %v5058_v10  ;;  %v5115_v32 = vrot.slane %v5114_v47, 2  ;;  %v5096_v61 = vsel %vm10982_vm0, %v5091_v52, %v5095_v24  ;;  %v11633_v43 = vrot.slane %v8253_v55, %v10730_v30  ;;  %v9424_v24 = vld [vmem:[#allocation14 + $0x144] ss:$8 sps:$4 sm:$0xff]   ;;  %v9422_v28 = vld [vmem:[#allocation14 + $0x140] ss:$8 sps:$4 sm:$0xff]  }
 0x68e   :  { %v5103_v23 = vshll.u32 %v8182_v57, 16  ;;  %v5125_v13 = vrot.slane %v5124_v8, 2  ;;  %v9427_v4 = vld [vmem:[#allocation14 + $0x154] ss:$8 sps:$4 sm:$0xff]   ;;  %v9425_v34 = vld [vmem:[#allocation14 + $0x150] ss:$8 sps:$4 sm:$0xff]  }
 0x68f   :  { %v5120_v6 = vsel %vm10982_vm0, %v5115_v32, %v5119_v20  ;;  %v5127_v2 = vshll.u32 %v8185_v38, 16  ;;  %v5612_v3 = vcombine.high %v11628_v5, %v11633_v43  ;;  %v5611_v45 = vcombine.low %v11628_v5, %v11633_v43  ;;  %v9430_v10 = vld [vmem:[#allocation14 + $0x164] ss:$8 sps:$4 sm:$0xff]   ;;  %v9428_v1 = vld [vmem:[#allocation14 + $0x160] ss:$8 sps:$4 sm:$0xff]   ;;  %v6050_v43 = vld [vmem:[%s12286_s11 + $0xd8] sm:$0xff] }
 0x690   :  { %v5105_v44 = vrot.slane %v5103_v23, 7  ;;  %v9433_v46 = vld [vmem:[#allocation14 + $0x174] ss:$8 sps:$4 sm:$0xff]   ;;  %v9431_v20 = vld [vmem:[#allocation14 + $0x170] ss:$8 sps:$4 sm:$0xff]   ;;  %v6049_v5 = vld [vmem:[%s12286_s11 + $0xd0] sm:$0xff] }
 0x691   :  { %v5129_v29 = vrot.slane %v5127_v2, 7  ;;  %v9436_v27 = vld [vmem:[#allocation14 + $0x184] ss:$8 sps:$4 sm:$0xff]   ;;  %v9434_v12 = vld [vmem:[#allocation14 + $0x180] ss:$8 sps:$4 sm:$0xff]  }
 0x692   :  { %v5106_v48 = vsel %vm10982_vm0, %v5101_v41, %v5105_v44  ;;  %v9439_v47 = vld [vmem:[#allocation14 + $0x194] ss:$8 sps:$4 sm:$0xff]   ;;  %v9437_v57 = vld [vmem:[#allocation14 + $0x190] ss:$8 sps:$4 sm:$0xff]   ;;  %v9442_v52 = vld [vmem:[#allocation14 + $0x1a4] ss:$8 sps:$4 sm:$0xff]  }
 0x693   :  { %v5130_v51 = vsel %vm10982_vm0, %v5125_v13, %v5129_v29  ;;  %v5131_v59 = vcombine.low %v5096_v61, %v5106_v48  ;;  %v5132_v60 = vcombine.high %v5096_v61, %v5106_v48  ;;  %v9440_v26 = vld [vmem:[#allocation14 + $0x1a0] ss:$8 sps:$4 sm:$0xff]   ;;  %v9445_v38 = vld [vmem:[#allocation14 + $0x1b4] ss:$8 sps:$4 sm:$0xff]   ;;  %v9443_v32 = vld [vmem:[#allocation14 + $0x1b0] ss:$8 sps:$4 sm:$0xff]  }
 0x694   :  { %v5133_v54 = vcombine.low %v5120_v6, %v5130_v51  ;;  %v5134_v39 = vcombine.high %v5120_v6, %v5130_v51  ;;  %v9448_v8 = vld [vmem:[#allocation14 + $0x1c4] ss:$8 sps:$4 sm:$0xff]   ;;  %v9446_v55 = vld [vmem:[#allocation14 + $0x1c0] ss:$8 sps:$4 sm:$0xff]   ;;  %v9451_v61 = vld [vmem:[#allocation14 + $0x1d4] ss:$8 sps:$4 sm:$0xff]  }
 0x695   :  { %v5141_v15 = vrot.slane %v5131_v59, %v10730_v30  ;;  %v11645_v11 = vrot.slane %v5132_v60, %v10730_v30  ;;  %v9449_v23 = vld [vmem:[#allocation14 + $0x1d0] ss:$8 sps:$4 sm:$0xff]   ;;  %v9454_v6 = vld [vmem:[#allocation14 + $0x1e4] ss:$8 sps:$4 sm:$0xff]   ;;  %v9452_v2 = vld [vmem:[#allocation14 + $0x1e0] ss:$8 sps:$4 sm:$0xff]  }
 0x696   :  { %v5155_v33 = vrot.slane %v5133_v54, %v10730_v30  ;;  %v11649_v49 = vrot.slane %v5134_v39, %v10730_v30  ;;  %v9457_v41 = vld [vmem:[#allocation14 + $0x1f4] ss:$8 sps:$4 sm:$0xff]   ;;  %v9455_v44 = vld [vmem:[#allocation14 + $0x1f0] ss:$8 sps:$4 sm:$0xff]   ;;  %v6040_v54 = vld [vmem:[%s12286_s11 + $0x88] sm:$0xff] }
 0x697   :  { %v9460_v13 = vld [vmem:[%s12284_s9 + $0x4] ss:$8 sps:$4 sm:$0xff]   ;;  %v9458_v29 = vld [vmem:[%s12284_s9] ss:$8 sps:$4 sm:$0xff]   ;;  %v9463_v48 = vld [vmem:[%s12284_s9 + $0x14] ss:$8 sps:$4 sm:$0xff]  }
 0x698   :  { %v5163_v7 = vcombine.low %v5141_v15, %v5155_v33  ;;  %v5164_v63 = vcombine.high %v5141_v15, %v5155_v33  ;;  %v5166_v0 = vcombine.high %v11645_v11, %v11649_v49  ;;  %v5165_v22 = vcombine.low %v11645_v11, %v11649_v49  ;;  %v9461_v51 = vld [vmem:[%s12284_s9 + $0x10] ss:$8 sps:$4 sm:$0xff]   ;;  %v9466_v59 = vld [vmem:[%s12284_s9 + $0x24] ss:$8 sps:$4 sm:$0xff]   ;;  %v9512_v58 = vld [vmem:[%s12284_s9 + $0x120] ss:$8 sps:$4 sm:$0xff]  }
 0x699   :  { %v6039_v60 = vld [vmem:[%s12286_s11 + $0x80] sm:$0xff]  ;;  %v6024_v11 = vld [vmem:[%s12286_s11 + $0x8] sm:$0xff]  ;;  %v6041_v33 = vld [vmem:[%s12286_s11 + $0x90] sm:$0xff] }
 0x69a   :  { %5523 = vmatprep.mubr.bf16.mxu1 %v5164_v63  ;;  %v6023_v39 = vld [vmem:[%s12286_s11] sm:$0xff]  ;;  %v11685_v15 = vpack.c.bf16 %v6040_v54, %v6039_v60  ;;  %v6042_v49 = vld [vmem:[%s12286_s11 + $0x98] sm:$0xff] }
 0x69b   :  { %5524 = vmatmul.mubr.bf16.vlgmr.msra.gmra.mrb[8].mxu1 %v5163_v7  ;;  %v11696_v7 = vpack.c.bf16 %v6024_v11, %v6023_v39  ;;  %v11698_v63 = vpack.c.bf16 %v6042_v49, %v6041_v33  ;;  %v9500_v60 = vld [vmem:[%s12284_s9 + $0xe0] ss:$8 sps:$4 sm:$0xff]   ;;  %v9505_v54 = vld [vmem:[%s12284_s9 + $0xf4] ss:$8 sps:$4 sm:$0xff]   ;;  %v9503_v39 = vld [vmem:[%s12284_s9 + $0xf0] ss:$8 sps:$4 sm:$0xff]  }
 0x69c   :  { %5535 = vmatpush1.bf16.msra.mxu1 %v9410_v14  ;;  %5566 = vmatprep.mubr.bf16.mxu1 %v5166_v0  ;;  %v6026_v14 = vld [vmem:[%s12286_s11 + $0x18] sm:$0xff]  ;;  %v6043_v0 = vld [vmem:[%s12286_s11 + $0xa0] sm:$0xff] }
 0x69d   :  { %5536 = vmatprep.subr.bf16.mxu1 %v9415_v17  ;;  %8759 = vmatprep.subr.bf16.mxu0 %v11685_v15  ;;  %v9508_v11 = vld [vmem:[%s12284_s9 + $0x104] ss:$8 sps:$4 sm:$0xff]   ;;  %v9506_v33 = vld [vmem:[%s12284_s9 + $0x100] ss:$8 sps:$4 sm:$0xff]   ;;  %v9511_v49 = vld [vmem:[%s12284_s9 + $0x114] ss:$8 sps:$4 sm:$0xff]  }
 0x69e   :  { %8761 = vmatpush3.bf16.msra.mxu0 %v11696_v7  ;;  %v9517_v37 = vld [vmem:[%s12284_s9 + $0x134] ss:$8 sps:$4 sm:$0xff]  }
 0x69f   :  { %8763 = vmatprep.subr.bf16.mxu0 %v11698_v63 }
 0x6a0   :  { %5537 = vmatpush1.bf16.msra.mxu1 %v9413_v18  ;;  %v9464_v18 = vld [vmem:[%s12284_s9 + $0x20] ss:$8 sps:$4 sm:$0xff]  }
 0x6a1   :  { %5538 = vmatprep.subr.bf16.mxu1 %v9418_v9 }
 0x6a4   :  { %5539 = vmatpush1.bf16.msra.mxu1 %v9416_v19  ;;  %v6027_v19 = vld [vmem:[%s12286_s11 + $0x20] sm:$0xff] }
 0x6a5   :  { %5540 = vmatprep.subr.bf16.mxu1 %v9421_v40  ;;  %v6028_v40 = vld [vmem:[%s12286_s11 + $0x28] sm:$0xff] }
 0x6a8   :  { %5541 = vmatpush1.bf16.msra.mxu1 %v9419_v31  ;;  %v9469_v31 = vld [vmem:[%s12284_s9 + $0x34] ss:$8 sps:$4 sm:$0xff]  }
 0x6a9   :  { %5542 = vmatprep.subr.bf16.mxu1 %v9424_v24  ;;  %v6045_v24 = vld [vmem:[%s12286_s11 + $0xb0] sm:$0xff] }
 0x6ac   :  { %5543 = vmatpush1.bf16.msra.mxu1 %v9422_v28  ;;  %v6046_v28 = vld [vmem:[%s12286_s11 + $0xb8] sm:$0xff] }
 0x6ad   :  { %5544 = vmatprep.subr.bf16.mxu1 %v9427_v4  ;;  %v11738_v4 = vpack.c.bf16 %v6028_v40, %v6027_v19  ;;  %v9526_v19 = vld [vmem:[%s12284_s9 + $0x164] ss:$8 sps:$4 sm:$0xff]   ;;  %v9524_v40 = vld [vmem:[%s12284_s9 + $0x160] ss:$8 sps:$4 sm:$0xff]  }
 0x6b0   :  { %5545 = vmatpush1.bf16.msra.mxu1 %v9425_v34  ;;  %v9467_v34 = vld [vmem:[%s12284_s9 + $0x30] ss:$8 sps:$4 sm:$0xff]  }
 0x6b1   :  { %5546 = vmatprep.subr.bf16.mxu1 %v9430_v10  ;;  %v11744_v10 = vpack.c.bf16 %v6046_v28, %v6045_v24  ;;  %v9527_v24 = vld [vmem:[%s12284_s9 + $0x170] ss:$8 sps:$4 sm:$0xff]   ;;  %v9532_v28 = vld [vmem:[%s12284_s9 + $0x184] ss:$8 sps:$4 sm:$0xff]  }
 0x6b4   :  { %5547 = vmatpush1.bf16.msra.mxu1 %v9428_v1  ;;  %v6029_v1 = vld [vmem:[%s12286_s11 + $0x30] sm:$0xff] }
 0x6b5   :  { %5548 = vmatprep.subr.bf16.mxu1 %v9433_v46  ;;  %v6030_v46 = vld [vmem:[%s12286_s11 + $0x38] sm:$0xff] }
 0x6b8   :  { %5549 = vmatpush1.bf16.msra.mxu1 %v9431_v20  ;;  %v9472_v20 = vld [vmem:[%s12284_s9 + $0x44] ss:$8 sps:$4 sm:$0xff]  }
 0x6b9   :  { %5550 = vmatprep.subr.bf16.mxu1 %v9436_v27  ;;  %v11756_v27 = vpack.c.bf16 %v6030_v46, %v6029_v1  ;;  %v9535_v1 = vld [vmem:[%s12284_s9 + $0x194] ss:$8 sps:$4 sm:$0xff]   ;;  %v9533_v46 = vld [vmem:[%s12284_s9 + $0x190] ss:$8 sps:$4 sm:$0xff]  }
 0x6bc   :  { %5551 = vmatpush1.bf16.msra.mxu1 %v9434_v12  ;;  %v9470_v12 = vld [vmem:[%s12284_s9 + $0x40] ss:$8 sps:$4 sm:$0xff]  }
 0x6bd   :  { %5552 = vmatprep.subr.bf16.mxu1 %v9439_v47  ;;  %v9475_v47 = vld [vmem:[%s12284_s9 + $0x54] ss:$8 sps:$4 sm:$0xff]  }
 0x6c0   :  { %5553 = vmatpush1.bf16.msra.mxu1 %v9437_v57  ;;  %v9473_v57 = vld [vmem:[%s12284_s9 + $0x50] ss:$8 sps:$4 sm:$0xff]  }
 0x6c1   :  { %5554 = vmatprep.subr.bf16.mxu1 %v9442_v52  ;;  %v9478_v52 = vld [vmem:[%s12284_s9 + $0x64] ss:$8 sps:$4 sm:$0xff]  }
 0x6c4   :  { %5555 = vmatpush1.bf16.msra.mxu1 %v9440_v26  ;;  %v9476_v26 = vld [vmem:[%s12284_s9 + $0x60] ss:$8 sps:$4 sm:$0xff]  }
 0x6c5   :  { %5556 = vmatprep.subr.bf16.mxu1 %v9445_v38  ;;  %v9481_v38 = vld [vmem:[%s12284_s9 + $0x74] ss:$8 sps:$4 sm:$0xff]  }
 0x6c8   :  { %5557 = vmatpush1.bf16.msra.mxu1 %v9443_v32  ;;  %v9479_v32 = vld [vmem:[%s12284_s9 + $0x70] ss:$8 sps:$4 sm:$0xff]  }
 0x6c9   :  { %5558 = vmatprep.subr.bf16.mxu1 %v9448_v8  ;;  %v9484_v8 = vld [vmem:[%s12284_s9 + $0x84] ss:$8 sps:$4 sm:$0xff]  }
 0x6cc   :  { %5559 = vmatpush1.bf16.msra.mxu1 %v9446_v55  ;;  %v9482_v55 = vld [vmem:[%s12284_s9 + $0x80] ss:$8 sps:$4 sm:$0xff]  }
 0x6cd   :  { %5560 = vmatprep.subr.bf16.mxu1 %v9451_v61  ;;  %v9487_v61 = vld [vmem:[%s12284_s9 + $0x94] ss:$8 sps:$4 sm:$0xff]  }
 0x6d0   :  { %5561 = vmatpush1.bf16.msra.mxu1 %v9449_v23  ;;  %v9485_v23 = vld [vmem:[%s12284_s9 + $0x90] ss:$8 sps:$4 sm:$0xff]  }
 0x6d1   :  { %5562 = vmatprep.subr.bf16.mxu1 %v9454_v6  ;;  %v9490_v6 = vld [vmem:[%s12284_s9 + $0xa4] ss:$8 sps:$4 sm:$0xff]  }
 0x6d4   :  { %5563 = vmatpush1.bf16.msra.mxu1 %v9452_v2  ;;  %v9488_v2 = vld [vmem:[%s12284_s9 + $0xa0] ss:$8 sps:$4 sm:$0xff]  }
 0x6d5   :  { %5564 = vmatprep.subr.bf16.mxu1 %v9457_v41  ;;  %v9493_v41 = vld [vmem:[%s12284_s9 + $0xb4] ss:$8 sps:$4 sm:$0xff]  }
 0x6d8   :  { %5565 = vmatpush1.bf16.msra.mxu1 %v9455_v44  ;;  %v9491_v44 = vld [vmem:[%s12284_s9 + $0xb0] ss:$8 sps:$4 sm:$0xff]  }
 0x6d9   :  { %5937 = vmatprep.subr.bf16.mxu1 %v9460_v13  ;;  %v9496_v13 = vld [vmem:[%s12284_s9 + $0xc4] ss:$8 sps:$4 sm:$0xff]  }
 0x6db   :  { %5567 = vmatmul.mubr.bf16.vlgmr.msra.gmra.mrb[8].mxu1 %v5165_v22  ;;  %v6044_v22 = vld [vmem:[%s12286_s11 + $0xa8] sm:$0xff] }
 0x6dc   :  { %5938 = vmatpush1.bf16.msra.mxu1 %v9458_v29  ;;  %5969 = vmatprep.mubr.bf16.mxu1 %v5610_v56  ;;  %v6025_v56 = vld [vmem:[%s12286_s11 + $0x10] sm:$0xff]  ;;  %v11720_v9 = vpack.c.bf16 %v6044_v22, %v6043_v0  ;;  %v9494_v29 = vld [vmem:[%s12284_s9 + $0xc0] ss:$8 sps:$4 sm:$0xff]  }
 0x6dd   :  { %5939 = vmatprep.subr.bf16.mxu1 %v9463_v48  ;;  %v11714_v17 = vpack.c.bf16 %v6026_v14, %v6025_v56  ;;  %v9499_v48 = vld [vmem:[%s12284_s9 + $0xd4] ss:$8 sps:$4 sm:$0xff]   ;;  %v9509_v56 = vld [vmem:[%s12284_s9 + $0x110] ss:$8 sps:$4 sm:$0xff]   ;;  %v9514_v14 = vld [vmem:[%s12284_s9 + $0x124] ss:$8 sps:$4 sm:$0xff]  }
 0x6de   :  { %v9518_v0 = vld [vmem:[%s12284_s9 + $0x140] ss:$8 sps:$4 sm:$0xff]   ;;  %v9523_v22 = vld [vmem:[%s12284_s9 + $0x154] ss:$8 sps:$4 sm:$0xff]  }
 0x6df   :  { %8765 = vmatpush3.bf16.msra.mxu0 %v11714_v17 }
 0x6e0   :  { %5940 = vmatpush1.bf16.msra.mxu1 %v9461_v51  ;;  %8767 = vmatprep.subr.bf16.mxu0 %v11720_v9  ;;  %v9497_v51 = vld [vmem:[%s12284_s9 + $0xd0] ss:$8 sps:$4 sm:$0xff]  }
 0x6e1   :  { %5941 = vmatprep.subr.bf16.mxu1 %v9466_v59  ;;  %v9502_v59 = vld [vmem:[%s12284_s9 + $0xe4] ss:$8 sps:$4 sm:$0xff]  }
 0x6e3   :  { %8769 = vmatpush3.bf16.msra.mxu0 %v11738_v4 }
 0x6e4   :  { %5942 = vmatpush1.bf16.msra.mxu1 %v9464_v18  ;;  %8771 = vmatprep.subr.bf16.mxu0 %v11744_v10  ;;  %v9521_v18 = vld [vmem:[%s12284_s9 + $0x150] ss:$8 sps:$4 sm:$0xff]  }
 0x6e5   :  { %5943 = vmatprep.subr.bf16.mxu1 %v9469_v31  ;;  %v9529_v31 = vld [vmem:[%s12284_s9 + $0x174] ss:$8 sps:$4 sm:$0xff]  }
 0x6e7   :  { %8773 = vmatpush3.bf16.msra.mxu0 %v11756_v27 }
 0x6e8   :  { %5944 = vmatpush1.bf16.msra.mxu1 %v9467_v34  ;;  %v9530_v34 = vld [vmem:[%s12284_s9 + $0x180] ss:$8 sps:$4 sm:$0xff]  }
 0x6e9   :  { %5945 = vmatprep.subr.bf16.mxu1 %v9472_v20  ;;  %v9538_v20 = vld [vmem:[%s12284_s9 + $0x1a4] ss:$8 sps:$4 sm:$0xff]  }
 0x6ec   :  { %5946 = vmatpush1.bf16.msra.mxu1 %v9470_v12  ;;  %v9536_v12 = vld [vmem:[%s12284_s9 + $0x1a0] ss:$8 sps:$4 sm:$0xff]  }
 0x6ed   :  { %5947 = vmatprep.subr.bf16.mxu1 %v9475_v47  ;;  %v9541_v47 = vld [vmem:[%s12284_s9 + $0x1b4] ss:$8 sps:$4 sm:$0xff]  }
 0x6f0   :  { %5948 = vmatpush1.bf16.msra.mxu1 %v9473_v57  ;;  %v9539_v57 = vld [vmem:[%s12284_s9 + $0x1b0] ss:$8 sps:$4 sm:$0xff]  }
 0x6f1   :  { %5949 = vmatprep.subr.bf16.mxu1 %v9478_v52  ;;  %v9544_v52 = vld [vmem:[%s12284_s9 + $0x1c4] ss:$8 sps:$4 sm:$0xff]  }
 0x6f4   :  { %5950 = vmatpush1.bf16.msra.mxu1 %v9476_v26  ;;  %v9542_v26 = vld [vmem:[%s12284_s9 + $0x1c0] ss:$8 sps:$4 sm:$0xff]  }
 0x6f5   :  { %5951 = vmatprep.subr.bf16.mxu1 %v9481_v38  ;;  %v9547_v38 = vld [vmem:[%s12284_s9 + $0x1d4] ss:$8 sps:$4 sm:$0xff]  }
 0x6f8   :  { %5952 = vmatpush1.bf16.msra.mxu1 %v9479_v32  ;;  %v9545_v32 = vld [vmem:[%s12284_s9 + $0x1d0] ss:$8 sps:$4 sm:$0xff]  }
 0x6f9   :  { %5953 = vmatprep.subr.bf16.mxu1 %v9484_v8  ;;  %v9550_v8 = vld [vmem:[%s12284_s9 + $0x1e4] ss:$8 sps:$4 sm:$0xff]  }
 0x6fc   :  { %5954 = vmatpush1.bf16.msra.mxu1 %v9482_v55  ;;  %v9548_v55 = vld [vmem:[%s12284_s9 + $0x1e0] ss:$8 sps:$4 sm:$0xff]  }
 0x6fd   :  { %5955 = vmatprep.subr.bf16.mxu1 %v9487_v61  ;;  %v9553_v61 = vld [vmem:[%s12284_s9 + $0x1f4] ss:$8 sps:$4 sm:$0xff]  }
 0x700   :  { %5956 = vmatpush1.bf16.msra.mxu1 %v9485_v23  ;;  %v9551_v23 = vld [vmem:[%s12284_s9 + $0x1f0] ss:$8 sps:$4 sm:$0xff]  }
 0x701   :  { %5957 = vmatprep.subr.bf16.mxu1 %v9490_v6  ;;  %v6047_v6 = vld [vmem:[%s12286_s11 + $0xc0] sm:$0xff] }
 0x704   :  { %5958 = vmatpush1.bf16.msra.mxu1 %v9488_v2  ;;  %v6048_v2 = vld [vmem:[%s12286_s11 + $0xc8] sm:$0xff] }
 0x705   :  { %5959 = vmatprep.subr.bf16.mxu1 %v9493_v41  ;;  %v6031_v41 = vld [vmem:[%s12286_s11 + $0x40] sm:$0xff] }
 0x708   :  { %5960 = vmatpush1.bf16.msra.mxu1 %v9491_v44  ;;  %v11943_v44 = vpack.c.bf16 %v6048_v2, %v6047_v6 }
 0x709   :  { %5961 = vmatprep.subr.bf16.mxu1 %v9496_v13  ;;  %v6032_v13 = vld [vmem:[%s12286_s11 + $0x48] sm:$0xff] }
 0x70a   :  { %8775 = vmatprep.subr.bf16.mxu0 %v11943_v44 }
 0x70c   :  { %5962 = vmatpush1.bf16.msra.mxu1 %v9494_v29  ;;  %v11956_v29 = vpack.c.bf16 %v6050_v43, %v6049_v5 }
 0x70d   :  { %5963 = vmatprep.subr.bf16.mxu1 %v9499_v48  ;;  %v6033_v48 = vld [vmem:[%s12286_s11 + $0x50] sm:$0xff] }
 0x710   :  { %5964 = vmatpush1.bf16.msra.mxu1 %v9497_v51  ;;  %v6034_v51 = vld [vmem:[%s12286_s11 + $0x58] sm:$0xff] }
 0x711   :  { %5965 = vmatprep.subr.bf16.mxu1 %v9502_v59  ;;  %v6051_v59 = vld [vmem:[%s12286_s11 + $0xe0] sm:$0xff] }
 0x714   :  { %5966 = vmatpush1.bf16.msra.mxu1 %v9500_v60  ;;  %v6052_v60 = vld [vmem:[%s12286_s11 + $0xe8] sm:$0xff] }
 0x715   :  { %5967 = vmatprep.subr.bf16.mxu1 %v9505_v54  ;;  %v11972_v54 = vpack.c.bf16 %v6034_v51, %v6033_v48 }
 0x718   :  { %5968 = vmatpush1.bf16.msra.mxu1 %v9503_v39  ;;  %v8782_v39 = vpack.c.bf16 %v6052_v60, %v6051_v59  ;;  %v6060_v59 = vld [vmem:[#allocation16 + $0x28] sm:$0xff]  ;;  %v6062_v60 = vld [vmem:[#allocation16 + $0x38] sm:$0xff] }
 0x719   :  { %5980 = vmatprep.subr.bf16.mxu1 %v9508_v11  ;;  %v6035_v11 = vld [vmem:[%s12286_s11 + $0x60] sm:$0xff] }
 0x71b   :  { %5970 = vmatmul.mubr.bf16.vlgmr.msra.gmra.mrb[8].mxu1 %v5609_v42  ;;  %v9515_v42 = vld [vmem:[%s12284_s9 + $0x130] ss:$8 sps:$4 sm:$0xff]  }
 0x71c   :  { %5981 = vmatpush1.bf16.msra.mxu1 %v9506_v33  ;;  %6012 = vmatprep.mubr.bf16.mxu1 %v5612_v3  ;;  %v9520_v3 = vld [vmem:[%s12284_s9 + $0x144] ss:$8 sps:$4 sm:$0xff]  }
 0x71d   :  { %5982 = vmatprep.subr.bf16.mxu1 %v9511_v49  ;;  %v6036_v33 = vld [vmem:[%s12286_s11 + $0x68] sm:$0xff]  ;;  %v6053_v49 = vld [vmem:[%s12286_s11 + $0xf0] sm:$0xff] }
 0x720   :  { %5983 = vmatpush1.bf16.msra.mxu1 %v9509_v56  ;;  %v6054_v56 = vld [vmem:[%s12286_s11 + $0xf8] sm:$0xff] }
 0x721   :  { %5984 = vmatprep.subr.bf16.mxu1 %v9514_v14  ;;  %v8784_v14 = vpack.c.bf16 %v6036_v33, %v6035_v11  ;;  %v8826_v11 = vpack.c.bf16 %v6062_v60, %v6060_v59  ;;  %v9578_v59 = vld [vmem:[#allocation19 + $0x80] ss:$8 sps:$4 sm:$0xff]   ;;  %v9583_v60 = vld [vmem:[#allocation19 + $0x94] ss:$8 sps:$4 sm:$0xff]  }
 0x724   :  { %5985 = vmatpush1.bf16.msra.mxu1 %v9512_v58  ;;  %v8786_v58 = vpack.c.bf16 %v6054_v56, %v6053_v49  ;;  %v9556_v49 = vld [vmem:[#allocation19 + $0x4] ss:$8 sps:$4 sm:$0xff]  }
 0x725   :  { %5986 = vmatprep.subr.bf16.mxu1 %v9517_v37  ;;  %v6037_v37 = vld [vmem:[%s12286_s11 + $0x70] sm:$0xff] }
 0x728   :  { %5987 = vmatpush1.bf16.msra.mxu1 %v9515_v42  ;;  %v6038_v42 = vld [vmem:[%s12286_s11 + $0x78] sm:$0xff] }
 0x729   :  { %5988 = vmatprep.subr.bf16.mxu1 %v9520_v3  ;;  %v8788_v3 = vpack.c.bf16 %v6038_v42, %v6037_v37 }
 0x72c   :  { %5989 = vmatpush1.bf16.msra.mxu1 %v9518_v0 }
 0x72d   :  { %5990 = vmatprep.subr.bf16.mxu1 %v9523_v22 }
 0x730   :  { %5991 = vmatpush1.bf16.msra.mxu1 %v9521_v18 }
 0x731   :  { %5992 = vmatprep.subr.bf16.mxu1 %v9526_v19 }
 0x734   :  { %5993 = vmatpush1.bf16.msra.mxu1 %v9524_v40 }
 0x735   :  { %5994 = vmatprep.subr.bf16.mxu1 %v9529_v31 }
 0x738   :  { %5995 = vmatpush1.bf16.msra.mxu1 %v9527_v24 }
 0x739   :  { %5996 = vmatprep.subr.bf16.mxu1 %v9532_v28 }
 0x73c   :  { %5997 = vmatpush1.bf16.msra.mxu1 %v9530_v34 }
 0x73d   :  { %5998 = vmatprep.subr.bf16.mxu1 %v9535_v1 }
 0x740   :  { %5999 = vmatpush1.bf16.msra.mxu1 %v9533_v46 }
 0x741   :  { %6000 = vmatprep.subr.bf16.mxu1 %v9538_v20 }
 0x744   :  { %6001 = vmatpush1.bf16.msra.mxu1 %v9536_v12 }
 0x745   :  { %6002 = vmatprep.subr.bf16.mxu1 %v9541_v47 }
 0x748   :  { %6003 = vmatpush1.bf16.msra.mxu1 %v9539_v57 }
 0x749   :  { %6004 = vmatprep.subr.bf16.mxu1 %v9544_v52 }
 0x74c   :  { %6005 = vmatpush1.bf16.msra.mxu1 %v9542_v26 }
 0x74d   :  { %6006 = vmatprep.subr.bf16.mxu1 %v9547_v38 }
 0x750   :  { %6007 = vmatpush1.bf16.msra.mxu1 %v9545_v32 }
 0x751   :  { %6008 = vmatprep.subr.bf16.mxu1 %v9550_v8 }
 0x754   :  { %6009 = vmatpush1.bf16.msra.mxu1 %v9548_v55 }
 0x755   :  { %6010 = vmatprep.subr.bf16.mxu1 %v9553_v61 }
 0x758   :  { %6011 = vmatpush1.bf16.msra.mxu1 %v9551_v23 }
 0x75b   :  { %6013 = vmatmul.mubr.bf16.vlgmr.msra.gmra.mrb[8].mxu1 %v5611_v45  ;;  %v11954_v45 = vpack.c.bf16 %v6032_v13, %v6031_v41 }
 0x75d   :  { %8777 = vmatpush3.bf16.msra.mxu0 %v11954_v45 }
 0x75e   :  { %8779 = vmatprep.subr.bf16.mxu0 %v11956_v29 }
 0x761   :  { %8781 = vmatpush3.bf16.msra.mxu0 %v11972_v54 }
 0x762   :  { %8783 = vmatprep.subr.bf16.mxu0 %v8782_v39 }
 0x765   :  { %8785 = vmatpush3.bf16.msra.mxu0 %v8784_v14 }
 0x766   :  { %8787 = vmatprep.subr.bf16.mxu0 %v8786_v58 }
 0x769   :  { %8789 = vmatpush3.bf16.msra.mxu0 %v8788_v3 }
 0x76a   :  { %8791 = vmatprep.subr.bf16.mxu0 %v11685_v15 }
 0x82e   :  { %v11995_v0 = vpop.f32.mrb[8].mxu1 }
 0x82f   :  { %v11997_v22 = vpop.f32.mrb[9].mxu1  ;;  %v6079_v19 = vmul.f32 %v11995_v0, %v11995_v0 }
 0x830   :  { %v11999_v18 = vpop.f32.mrb[10].mxu1  ;;  %v6080_v15 = vmul.f32 %v11997_v22, %v11997_v22 }
 0x831   :  { %v6065_v40 = vadd.f32 %v11999_v18, %v11995_v0  ;;  %v6081_v31 = vmul.f32 %v11999_v18, %v11999_v18  ;;  %v12007_v24 = vpop.f32.mrb[11].mxu1 }
 0x832   :  { %v6072_v28 = vadd.f32 %v12007_v24, %v11997_v22  ;;  %v6082_v34 = vmul.f32 %v12007_v24, %v12007_v24 }
 0x833   :  { %v6066_v1 = vrot.slane %v6065_v40, 4  ;;  %v6083_v46 = vadd.f32 %v6081_v31, %v6079_v19 }
 0x834   :  { %v6073_v20 = vrot.slane %v6072_v28, 4  ;;  %v6090_v12 = vadd.f32 %v6082_v34, %v6080_v15  ;;  %v6063_v34 = vld [vmem:[%s12288_s13] sm:$0x1] }
 0x835   :  { %v6067_v47 = vadd.f32 %v6066_v1, %v6065_v40  ;;  %v6084_v48 = vrot.slane %v6083_v46, 4 }
 0x836   :  { %v6074_v57 = vadd.f32 %v6073_v20, %v6072_v28  ;;  %v6091_v52 = vrot.slane %v6090_v12, 4  ;;  %v6064_v20 = vld [vmem:[%s12289_s14] sm:$0x1] }
 0x837   :  { %v6068_v26 = vrot.slane %v6067_v47, 2  ;;  %v6085_v51 = vadd.f32 %v6084_v48, %v6083_v46 }
 0x838   :  { %v6075_v38 = vrot.slane %v6074_v57, 2  ;;  %v6092_v32 = vadd.f32 %v6091_v52, %v6090_v12  ;;  %v9554_v52 = vld [vmem:[#allocation19] ss:$8 sps:$4 sm:$0xff]  }
 0x839   :  { %v6069_v8 = vadd.f32 %v6068_v26, %v6067_v47  ;;  %v9559_v26 = vld [vmem:[#allocation19 + $0x14] ss:$8 sps:$4 sm:$0xff]  }
 0x83a   :  { %v6076_v55 = vadd.f32 %v6075_v38, %v6074_v57  ;;  %v6093_v61 = vrot.slane %v6092_v32, 2 }
 0x83b   :  { %v6070_v23 = vrot.slane %v6069_v8, 1 }
 0x83c   :  { %v6077_v6 = vrot.slane %v6076_v55, 1  ;;  %v6094_v2 = vadd.f32 %v6093_v61, %v6092_v32  ;;  %v9557_v32 = vld [vmem:[#allocation19 + $0x10] ss:$8 sps:$4 sm:$0xff]   ;;  %v9565_v61 = vld [vmem:[#allocation19 + $0x34] ss:$8 sps:$4 sm:$0xff]  }
 0x83d   :  { %v6071_v5 = vadd.f32 %v6070_v23, %v6069_v8  ;;  %v9562_v8 = vld [vmem:[#allocation19 + $0x24] ss:$8 sps:$4 sm:$0xff]   ;;  %v9563_v23 = vld [vmem:[#allocation19 + $0x30] ss:$8 sps:$4 sm:$0xff]  }
 0x83e   :  { %v6078_v41 = vadd.f32 %v6077_v6, %v6076_v55  ;;  %v6095_v13 = vrot.slane %v6094_v2, 1  ;;  %v9560_v55 = vld [vmem:[#allocation19 + $0x20] ss:$8 sps:$4 sm:$0xff]   ;;  %v9568_v6 = vld [vmem:[#allocation19 + $0x44] ss:$8 sps:$4 sm:$0xff]  }
 0x840   :  { %6161 = vmatprep.mubr.f32.mxu0 %v6078_v41  ;;  %v6096_v43 = vadd.f32 %v6095_v13, %v6094_v2  ;;  %v9566_v2 = vld [vmem:[#allocation19 + $0x40] ss:$8 sps:$4 sm:$0xff]   ;;  %v245_v41 = vld [vmem:[#allocation4] sm:$0x11] }
 0x841   :  { %6162 = vmatmul.mubr.f32.vlgmr.msra.gmra.mrb[22].mxu0 %v6071_v5  ;;  %v248_v13 = vld [vmem:[#allocation4 + $0x10] sm:$0x11]  ;;  %v251_v5 = vld [vmem:[#allocation4 + $0x8] sm:$0x11] }
 0x842   :  { %8793 = vmatpush3.bf16.msra.mxu0 %v11696_v7  ;;  %6233 = vmatprep.mubr.f32.mxu0 %v6096_v43  ;;  %v6086_v7 = vrot.slane %v6085_v51, 2  ;;  %v246_v43 = vsel %vm10874_vm15, 0, %v245_v41  ;;  %v249_v48 = vsel %vm10874_vm15, 0, %v248_v13 }
 0x843   :  { %8795 = vmatprep.subr.bf16.mxu0 %v11698_v63  ;;  %247 = vst [vmem:[#allocation4] sm:$0x11] %v246_v43  ;;  %250 = vst [vmem:[#allocation4 + $0x10] sm:$0x11] %v249_v48 }
 0x844   :  { %v6087_v63 = vadd.f32 %v6086_v7, %v6085_v51  ;;  %v252_v51 = vsel %vm11558_vm7, 0, %v251_v5  ;;  %v254_v7 = vld [vmem:[#allocation4 + $0x18] sm:$0x11] }
 0x845   :  { %253 = vst [vmem:[#allocation4 + $0x8] sm:$0x11] %v252_v51 }
 0x846   :  { %8797 = vmatpush3.bf16.msra.mxu0 %v11714_v17  ;;  %v6088_v17 = vrot.slane %v6087_v63, 1 }
 0x847   :  { %8799 = vmatprep.subr.bf16.mxu0 %v11720_v9 }
 0x848   :  { %v6089_v9 = vadd.f32 %v6088_v17, %v6087_v63  ;;  %v255_v63 = vsel %vm11558_vm7, 0, %v254_v7  ;;  %v9569_v17 = vld [vmem:[#allocation19 + $0x50] ss:$8 sps:$4 sm:$0xff]  }
 0x849   :  { %256 = vst [vmem:[#allocation4 + $0x18] sm:$0x11] %v255_v63 }
 0x84a   :  { %8801 = vmatpush3.bf16.msra.mxu0 %v11738_v4  ;;  %v6056_v4 = vld [vmem:[#allocation16 + $0x8] sm:$0xff]  ;;  %v6399_v51 = vld [vmem:[#allocation4] sm:$0xff] }
 0x84b   :  { %8803 = vmatprep.subr.bf16.mxu0 %v11744_v10  ;;  %v6058_v10 = vld [vmem:[#allocation16 + $0x18] sm:$0xff]  ;;  %v6405_v63 = vld [vmem:[#allocation4 + $0x10] sm:$0xff] }
 0x84c   :  { %v6402_v7 = vld [vmem:[#allocation4 + $0x8] sm:$0x11] }
 0x84e   :  { %8805 = vmatpush3.bf16.msra.mxu0 %v11756_v27  ;;  %v6055_v27 = vld [vmem:[#allocation16] sm:$0xff] }
 0x84f   :  { %8807 = vmatprep.subr.bf16.mxu0 %v11943_v44  ;;  %v8822_v44 = vpack.c.bf16 %v6058_v10, %v6056_v4  ;;  %v9574_v4 = vld [vmem:[#allocation19 + $0x64] ss:$8 sps:$4 sm:$0xff]   ;;  %v9572_v10 = vld [vmem:[#allocation19 + $0x60] ss:$8 sps:$4 sm:$0xff]  }
 0x852   :  { %8809 = vmatpush3.bf16.msra.mxu0 %v11954_v45  ;;  %v6057_v45 = vld [vmem:[#allocation16 + $0x10] sm:$0xff] }
 0x853   :  { %8811 = vmatprep.subr.bf16.mxu0 %v11956_v29  ;;  %v8824_v29 = vpack.c.bf16 %v6057_v45, %v6055_v27  ;;  %v9577_v27 = vld [vmem:[#allocation19 + $0x74] ss:$8 sps:$4 sm:$0xff]   ;;  %v9580_v45 = vld [vmem:[#allocation19 + $0x84] ss:$8 sps:$4 sm:$0xff]  }
 0x856   :  { %8813 = vmatpush3.bf16.msra.mxu0 %v11972_v54  ;;  %v6059_v54 = vld [vmem:[#allocation16 + $0x20] sm:$0xff] }
 0x857   :  { %8815 = vmatprep.subr.bf16.mxu0 %v8782_v39  ;;  %v6061_v39 = vld [vmem:[#allocation16 + $0x30] sm:$0xff] }
 0x858   :  { %v8828_v33 = vpack.c.bf16 %v6061_v39, %v6059_v54  ;;  %v9589_v54 = vld [vmem:[#allocation19 + $0xb4] ss:$8 sps:$4 sm:$0xff]   ;;  %v9587_v39 = vld [vmem:[#allocation19 + $0xb0] ss:$8 sps:$4 sm:$0xff]  }
 0x85a   :  { %8817 = vmatpush3.bf16.msra.mxu0 %v8784_v14 }
 0x85b   :  { %8819 = vmatprep.subr.bf16.mxu0 %v8786_v58 }
 0x85e   :  { %8821 = vmatpush3.bf16.msra.mxu0 %v8788_v3 }
 0x85f   :  { %8823 = vmatprep.subr.bf16.mxu0 %v8822_v44  ;;  %v9575_v44 = vld [vmem:[#allocation19 + $0x70] ss:$8 sps:$4 sm:$0xff]  }
 0x861   :  { %6234 = vmatmul.mubr.f32.vlgmr.msra.gmra.mrb[24].mxu0 %v6089_v9  ;;  %v9571_v9 = vld [vmem:[#allocation19 + $0x54] ss:$8 sps:$4 sm:$0xff]  }
 0x862   :  { %6322 = vmatprep.mubr.f32.mxu0 %v10007_v35  ;;  %8825 = vmatpush1.bf16.msra.mxu0 %v8824_v29  ;;  %v9586_v29 = vld [vmem:[#allocation19 + $0xa4] ss:$8 sps:$4 sm:$0xff]  }
 0x863   :  { %8827 = vmatprep.subr.bf16.mxu0 %v8826_v11  ;;  %v9584_v11 = vld [vmem:[#allocation19 + $0xa0] ss:$8 sps:$4 sm:$0xff]  }
 0x866   :  { %8829 = vmatpush1.bf16.msra.mxu0 %v8828_v33  ;;  %v9592_v33 = vld [vmem:[#allocation19 + $0xc4] ss:$8 sps:$4 sm:$0xff]  }
 0x867   :  { %6929 = vmatprep.subr.bf16.mxu0 %v9556_v49  ;;  %v9590_v49 = vld [vmem:[#allocation19 + $0xc0] ss:$8 sps:$4 sm:$0xff]  }
 0x914   :  { %v8582_v56 = vpop.f32.mrb[22].mxu0 }
 0x915   :  { %v8583_v14 = vpop.f32.mrb[23].mxu0 }
 0x916   :  { %v8584_v58 = vadd.f32 %v8583_v14, %v8582_v56  ;;  %v9595_v56 = vld [vmem:[#allocation19 + $0xd4] ss:$8 sps:$4 sm:$0xff]   ;;  %v9593_v14 = vld [vmem:[#allocation19 + $0xd0] ss:$8 sps:$4 sm:$0xff]  }
 0x918   :  { %v6168_v37 = vmul.f32 0.0078125, %v8584_v58  ;;  %v9598_v58 = vld [vmem:[#allocation19 + $0xe4] ss:$8 sps:$4 sm:$0xff]  }
 0x91a   :  { %v6240_v40 = vmul.f32 %v6168_v37, %v6168_v37 }
 0x934   :  { %v8617_v42 = vpop.f32.mrb[24].mxu0 }
 0x935   :  { %v8618_v3 = vpop.f32.mrb[25].mxu0 }
 0x936   :  { %v8619_v19 = vadd.f32 %v8618_v3, %v8617_v42  ;;  %v9601_v42 = vld [vmem:[#allocation19 + $0xf4] ss:$8 sps:$4 sm:$0xff]   ;;  %v9599_v3 = vld [vmem:[#allocation19 + $0xf0] ss:$8 sps:$4 sm:$0xff]  }
 0x938   :  { %v6239_v31 = vmul.f32 0.0078125, %v8619_v19  ;;  %v9604_v19 = vld [vmem:[#allocation19 + $0x104] ss:$8 sps:$4 sm:$0xff]  }
 0x93a   :  { %v6241_v15 = vsub.f32 %v6239_v31, %v6240_v40 }
 0x93c   :  { %v6242_v28 = vadd.f32 1e-05, %v6241_v15 }
 0x93e   :  { %9748 = vrsqrt.f32 %v6242_v28 }
 0x948   :  { %v9749_v1 = vpop.eup %9748 }
 0x949   :  { %v6244_v46 = vmul.f32 %v9749_v1, %v6063_v34 }
 0x94b   :  { %v6245_v12 = vmul.f32 %v6244_v46, %v6168_v37  ;;  %v9596_v37 = vld [vmem:[#allocation19 + $0xe0] ss:$8 sps:$4 sm:$0xff]  }
 0x94d   :  { %v6246_v47 = vsub.f32 %v6064_v20, %v6245_v12 }
 0x94f   :  { %v6251_v57 = vrot.slane %v6246_v47, %v11550_v53 }
 0x951   :  { %v6253_v38 = vsel %vm12345_vm13, %v6244_v46, %v6251_v57 }
 0x952   :  { %8318 = vmatmul.mubr.msk.f32.vlgmr.msra.gmra.mrb[26].mxu0 %vm6254_vm1, %v6253_v38 }
 0x953   :  { %6930 = vmatpush1.bf16.msra.mxu0 %v9554_v52 }
 0x954   :  { %6931 = vmatprep.subr.bf16.mxu0 %v9559_v26 }
 0x957   :  { %6932 = vmatpush1.bf16.msra.mxu0 %v9557_v32 }
 0x958   :  { %6933 = vmatprep.subr.bf16.mxu0 %v9562_v8 }
 0x95b   :  { %6934 = vmatpush1.bf16.msra.mxu0 %v9560_v55 }
 0x95c   :  { %6935 = vmatprep.subr.bf16.mxu0 %v9565_v61 }
 0x95f   :  { %6936 = vmatpush1.bf16.msra.mxu0 %v9563_v23 }
 0x960   :  { %6937 = vmatprep.subr.bf16.mxu0 %v9568_v6 }
 0x963   :  { %6938 = vmatpush1.bf16.msra.mxu0 %v9566_v2 }
 0x964   :  { %6939 = vmatprep.subr.bf16.mxu0 %v9571_v9 }
 0x967   :  { %6940 = vmatpush1.bf16.msra.mxu0 %v9569_v17  ;;  %v6408_v17 = vld [vmem:[#allocation4 + $0x18] sm:$0x11] }
 0x968   :  { %6941 = vmatprep.subr.bf16.mxu0 %v9574_v4 }
 0x96b   :  { %6942 = vmatpush1.bf16.msra.mxu0 %v9572_v10 }
 0x96c   :  { %6943 = vmatprep.subr.bf16.mxu0 %v9577_v27 }
 0x96f   :  { %6944 = vmatpush1.bf16.msra.mxu0 %v9575_v44 }
 0x970   :  { %6945 = vmatprep.subr.bf16.mxu0 %v9580_v45 }
 0x973   :  { %6946 = vmatpush1.bf16.msra.mxu0 %v9578_v59 }
 0x974   :  { %6947 = vmatprep.subr.bf16.mxu0 %v9583_v60 }
 0x977   :  { %6948 = vmatpush1.bf16.msra.mxu0 %v9581_v62 }
 0x978   :  { %6949 = vmatprep.subr.bf16.mxu0 %v9586_v29 }
 0x97b   :  { %6950 = vmatpush1.bf16.msra.mxu0 %v9584_v11 }
 0x97c   :  { %6951 = vmatprep.subr.bf16.mxu0 %v9589_v54 }
 0x97f   :  { %6952 = vmatpush1.bf16.msra.mxu0 %v9587_v39 }
 0x980   :  { %6953 = vmatprep.subr.bf16.mxu0 %v9592_v33 }
 0x983   :  { %6954 = vmatpush1.bf16.msra.mxu0 %v9590_v49 }
 0x984   :  { %6955 = vmatprep.subr.bf16.mxu0 %v9595_v56 }
 0x987   :  { %6956 = vmatpush1.bf16.msra.mxu0 %v9593_v14 }
 0x988   :  { %6957 = vmatprep.subr.bf16.mxu0 %v9598_v58 }
 0x98b   :  { %6958 = vmatpush1.bf16.msra.mxu0 %v9596_v37 }
 0x98c   :  { %6959 = vmatprep.subr.bf16.mxu0 %v9601_v42 }
 0x98f   :  { %6960 = vmatpush1.bf16.msra.mxu0 %v9599_v3 }
 0x990   :  { %6970 = vmatprep.subr.bf16.mxu0 %v9604_v19 }
 0xa25   :  { %v6324_v40 = vpop.f32.mrb[26].mxu0 }
 0xa26   :  { %v6332_v31 = vrot.slane %v6324_v40, %v11550_v53  ;;  %v6326_v15 = vpop.f32.mrb[27].mxu0  ;;  %v6344_v46 = vrot.slane %v6324_v40, %v11571_v21 }
 0xa27   :  { %v6336_v28 = vrot.slane %v6326_v15, %v11550_v53  ;;  %v6348_v47 = vrot.slane %v6326_v15, %v11571_v21 }
 0xa28   :  { %v6337_v34 = vmul.f32 %v6332_v31, %v11995_v0  ;;  %v6339_v1 = vmul.f32 %v6332_v31, %v11999_v18 }
 0xa29   :  { %v6338_v20 = vmul.f32 %v6336_v28, %v11997_v22  ;;  %v6340_v12 = vmul.f32 %v6336_v28, %v12007_v24 }
 0xa2a   :  { %v6349_v57 = vadd.f32 %v6344_v46, %v6337_v34  ;;  %v6351_v52 = vadd.f32 %v6344_v46, %v6339_v1 }
 0xa2b   :  { %v6350_v26 = vadd.f32 %v6348_v47, %v6338_v20  ;;  %v6352_v38 = vadd.f32 %v6348_v47, %v6340_v12 }
 0xa2c   :  { %vm6353_vm6 = vcmp.ge.f32.partialorder %v6349_v57, 0.0  ;;  %vm6355_vm7 = vcmp.ge.f32.partialorder %v6351_v52, 0.0  ;;  %v6357_v32 = vmul.f32 0.2, %v6349_v57  ;;  %v6359_v8 = vmul.f32 0.2, %v6351_v52 }
 0xa2d   :  { %vm6354_vm11 = vcmp.ge.f32.partialorder %v6350_v26, 0.0  ;;  %vm6356_vm12 = vcmp.ge.f32.partialorder %v6352_v38, 0.0  ;;  %v6358_v0 = vmul.f32 0.2, %v6350_v26  ;;  %v6360_v18 = vmul.f32 0.2, %v6352_v38 }
 0xa2e   :  { %v6361_v55 = vsel %vm6353_vm6, %v6349_v57, %v6357_v32  ;;  %v6363_v61 = vsel %vm6355_vm7, %v6351_v52, %v6359_v8 }
 0xa2f   :  { %v6362_v23 = vsel %vm6354_vm11, %v6350_v26, %v6358_v0  ;;  %v6364_v22 = vsel %vm6356_vm12, %v6352_v38, %v6360_v18 }
 0xa30   :  { %v8474_v6 = vpack.c.bf16 %v6362_v23, %v6361_v55  ;;  %v8475_v24 = vpack.c.bf16 %v6364_v22, %v6363_v61  ;;  %v9602_v61 = vld [vmem:[#allocation19 + $0x100] ss:$8 sps:$4 sm:$0xff]   ;;  %v9607_v23 = vld [vmem:[#allocation19 + $0x114] ss:$8 sps:$4 sm:$0xff]  }
 0xa32   :  { %v6380_v2 = vshrl.u32 %v8474_v6, 16  ;;  %v6388_v41 = vshrl.u32 %v8475_v24, 16  ;;  %v6383_v5 = vshll.u32 %v8474_v6, 16  ;;  %v6391_v48 = vshll.u32 %v8475_v24, 16  ;;  %v9605_v6 = vld [vmem:[#allocation19 + $0x110] ss:$8 sps:$4 sm:$0xff]  }
 0xa33   :  { %v9608_v24 = vld [vmem:[#allocation19 + $0x120] ss:$8 sps:$4 sm:$0xff]  }
 0xa34   :  { %v6382_v13 = vrot.slane %v6380_v2, 7  ;;  %v6390_v43 = vrot.slane %v6388_v41, 7  ;;  %v9613_v2 = vld [vmem:[#allocation19 + $0x134] ss:$8 sps:$4 sm:$0xff]   ;;  %v9611_v41 = vld [vmem:[#allocation19 + $0x130] ss:$8 sps:$4 sm:$0xff]  }
 0xa36   :  { %v6385_v9 = vor.u32 %v6383_v5, %v6382_v13  ;;  %v6386_v4 = vrot.slane %v6382_v13, 4  ;;  %v6393_v10 = vor.u32 %v6391_v48, %v6390_v43  ;;  %v6394_v27 = vrot.slane %v6390_v43, 4  ;;  %v9616_v13 = vld [vmem:[#allocation19 + $0x144] ss:$8 sps:$4 sm:$0xff]   ;;  %v9614_v5 = vld [vmem:[#allocation19 + $0x140] ss:$8 sps:$4 sm:$0xff]  }
 0xa37   :  { %v9619_v43 = vld [vmem:[#allocation19 + $0x154] ss:$8 sps:$4 sm:$0xff]   ;;  %v9617_v48 = vld [vmem:[#allocation19 + $0x150] ss:$8 sps:$4 sm:$0xff]  }
 0xa38   :  { %v12053_v44 = vsel %vm11599_vm2, %v6385_v9, %v6399_v51  ;;  %v6403_v45 = vsel %vm10874_vm15, %v6386_v4, %v6402_v7  ;;  %v12059_v59 = vsel %vm11599_vm2, %v6393_v10, %v6405_v63  ;;  %v6409_v60 = vsel %vm10874_vm15, %v6394_v27, %v6408_v17  ;;  %v9622_v51 = vld [vmem:[#allocation19 + $0x164] ss:$8 sps:$4 sm:$0xff]   ;;  %v9620_v7 = vld [vmem:[#allocation19 + $0x160] ss:$8 sps:$4 sm:$0xff]   ;;  %v9625_v63 = vld [vmem:[#allocation19 + $0x174] ss:$8 sps:$4 sm:$0xff]  }
 0xa39   :  { %6401 = vst [vmem:[#allocation4] sm:$0xff] %v12053_v44  ;;  %6404 = vst [vmem:[#allocation4 + $0x8] sm:$0x11] %v6403_v45  ;;  %v6545_v62 = vunpack.i.h.s16 %v12053_v44  ;;  %v6553_v29 = vunpack.i.h.s16 %v12059_v59  ;;  %v8389_v11 = vpack.c.b16 %v12059_v59, %v12053_v44  ;;  %v9623_v17 = vld [vmem:[#allocation19 + $0x170] ss:$8 sps:$4 sm:$0xff]   ;;  %vm7668_vm15 = vcmask 523264  }
 0xa3a   :  { %6407 = vst [vmem:[#allocation4 + $0x10] sm:$0xff] %v12059_v59  ;;  %6410 = vst [vmem:[#allocation4 + $0x18] sm:$0x11] %v6409_v60  ;;  %v9628_v9 = vld [vmem:[#allocation19 + $0x184] ss:$8 sps:$4 sm:$0xff]  }
 0xa3b   :  { %v8321_v25 = vpack.c.b16 %v6545_v62, %v12053_v44  ;;  %v8323_v54 = vpack.c.b16 %v6553_v29, %v12059_v59  ;;  %v12071_v39 = vpack.c.b16 %v6553_v29, %v6545_v62  ;;  %v9626_v4 = vld [vmem:[#allocation19 + $0x180] ss:$8 sps:$4 sm:$0xff]   ;;  %v9631_v10 = vld [vmem:[#allocation19 + $0x194] ss:$8 sps:$4 sm:$0xff]   ;;  %v9629_v27 = vld [vmem:[#allocation19 + $0x190] ss:$8 sps:$4 sm:$0xff]  }
 0xa3c   :  { %v9634_v45 = vld [vmem:[#allocation19 + $0x1a4] ss:$8 sps:$4 sm:$0xff]   ;;  %v9632_v60 = vld [vmem:[#allocation19 + $0x1a0] ss:$8 sps:$4 sm:$0xff]   ;;  %v9637_v62 = vld [vmem:[#allocation19 + $0x1b4] ss:$8 sps:$4 sm:$0xff]  }
 0xa3d   :  { %v6560_v50 = vshrl.u32 %v8321_v25, 16  ;;  %v6563_v33 = vshll.u32 %v8321_v25, 16  ;;  %v6574_v49 = vshrl.u32 %v8323_v54, 16  ;;  %v6577_v56 = vshll.u32 %v8323_v54, 16  ;;  %v9635_v29 = vld [vmem:[#allocation19 + $0x1b0] ss:$8 sps:$4 sm:$0xff]  }
 0xa3e   :  { %v9640_v25 = vld [vmem:[#allocation19 + $0x1c4] ss:$8 sps:$4 sm:$0xff]   ;;  %v9638_v54 = vld [vmem:[#allocation19 + $0x1c0] ss:$8 sps:$4 sm:$0xff]   ;;  %v7435_v59 = vld [vmem:[%s12292_s17] sm:$0xff] }
 0xa3f   :  { %v6562_v14 = vrot.slane %v6560_v50, 6  ;;  %v6565_v58 = vrot.slane %v6563_v33, 7  ;;  %v6576_v37 = vrot.slane %v6574_v49, 6  ;;  %v6579_v42 = vrot.slane %v6577_v56, 7  ;;  %v9643_v50 = vld [vmem:[#allocation19 + $0x1d4] ss:$8 sps:$4 sm:$0xff]  }
 0xa40   :  { %v6540_v3 = vld [vmem:[#allocation4 + $0x8] sm:$0x11]  ;;  %v9641_v33 = vld [vmem:[#allocation19 + $0x1d0] ss:$8 sps:$4 sm:$0xff]  }
 0xa41   :  { %v6542_v19 = vld [vmem:[#allocation4 + $0x18] sm:$0x11]  ;;  %v6549_v40 = vunpack.i.h.s16 %v6540_v3  ;;  %v6566_v34 = vor.u32 %v6565_v58, %v6562_v14  ;;  %v6580_v1 = vor.u32 %v6579_v42, %v6576_v37  ;;  %v9646_v49 = vld [vmem:[#allocation19 + $0x1e4] ss:$8 sps:$4 sm:$0xff]   ;;  %v9644_v56 = vld [vmem:[#allocation19 + $0x1e0] ss:$8 sps:$4 sm:$0xff]   ;;  %v12087_v42 = vrot.slane %v8389_v11, %v10730_v30 }
 0xa42   :  { %v6557_v31 = vunpack.i.h.s16 %v6542_v19  ;;  %v9649_v14 = vld [vmem:[#allocation19 + $0x1f4] ss:$8 sps:$4 sm:$0xff]   ;;  %v9647_v58 = vld [vmem:[#allocation19 + $0x1f0] ss:$8 sps:$4 sm:$0xff]   ;;  %v9652_v37 = vld [vmem:[#allocation17 + $0x4] ss:$8 sps:$4 sm:$0xff]  }
 0xa43   :  { %v8322_v15 = vpack.c.b16 %v6549_v40, %v6540_v3  ;;  %v6567_v12 = vrot.slane %v6566_v34, 2  ;;  %v6581_v57 = vrot.slane %v6580_v1, 2  ;;  %v9650_v3 = vld [vmem:[#allocation17] ss:$8 sps:$4 sm:$0xff]   ;;  %v7027_v40 = vcombine.high %v12087_v42, %v12087_v42 }
 0xa44   :  { %v8324_v28 = vpack.c.b16 %v6557_v31, %v6542_v19  ;;  %v9655_v19 = vld [vmem:[#allocation17 + $0x14] ss:$8 sps:$4 sm:$0xff]   ;;  %v9653_v31 = vld [vmem:[#allocation17 + $0x10] ss:$8 sps:$4 sm:$0xff]   ;;  %v7452_v44 = vld [vmem:[%s12292_s17 + $0x88] sm:$0xff] }
 0xa45   :  { %v6569_v46 = vshll.u32 %v8322_v15, 16  ;;  %v9658_v15 = vld [vmem:[#allocation17 + $0x24] ss:$8 sps:$4 sm:$0xff]  }
 0xa46   :  { %v6583_v20 = vshll.u32 %v8324_v28, 16  ;;  %v7451_v28 = vld [vmem:[%s12292_s17 + $0x80] sm:$0xff]  ;;  %v7436_v34 = vld [vmem:[%s12292_s17 + $0x8] sm:$0xff]  ;;  %v7453_v1 = vld [vmem:[%s12292_s17 + $0x90] sm:$0xff] }
 0xa47   :  { %v6571_v47 = vrot.slane %v6569_v46, 7  ;;  %v12101_v11 = vpack.c.bf16 %v7452_v44, %v7451_v28  ;;  %v7454_v46 = vld [vmem:[%s12292_s17 + $0x98] sm:$0xff]  ;;  %v9700_v28 = vld [vmem:[#allocation17 + $0x104] ss:$8 sps:$4 sm:$0xff]   ;;  %v12184_v44 = vrot.slane %v12071_v39, %v10730_v30 }
 0xa48   :  { %v6585_v52 = vrot.slane %v6583_v20, 7  ;;  %v12112_v20 = vpack.c.bf16 %v7436_v34, %v7435_v59  ;;  %v9698_v59 = vld [vmem:[#allocation17 + $0x100] ss:$8 sps:$4 sm:$0xff]   ;;  %v9703_v34 = vld [vmem:[#allocation17 + $0x114] ss:$8 sps:$4 sm:$0xff]  }
 0xa49   :  { %v6572_v26 = vsel %vm10982_vm0, %v6567_v12, %v6571_v47  ;;  %v12114_v12 = vpack.c.bf16 %v7454_v46, %v7453_v1  ;;  %v7437_v47 = vld [vmem:[%s12292_s17 + $0x10] sm:$0xff]  ;;  %8831 = vmatprep.subr.bf16.mxu1 %v12101_v11  ;;  %v7028_v1 = vcombine.high %v12184_v44, %v12184_v44  ;;  %v9701_v46 = vld [vmem:[#allocation17 + $0x110] ss:$8 sps:$4 sm:$0xff]  }
 0xa4a   :  { %v6586_v38 = vsel %vm10982_vm0, %v6581_v57, %v6585_v52  ;;  %v7438_v57 = vld [vmem:[%s12292_s17 + $0x18] sm:$0xff]  ;;  %v7455_v52 = vld [vmem:[%s12292_s17 + $0xa0] sm:$0xff]  ;;  %8833 = vmatpush3.bf16.msra.mxu1 %v12112_v20  ;;  %v9712_v39 = vld [vmem:[#allocation17 + $0x144] ss:$8 sps:$4 sm:$0xff]  }
 0xa4b   :  { %v6587_v32 = vcombine.low %v6572_v26, %v6586_v38  ;;  %v6588_v8 = vcombine.high %v6572_v26, %v6586_v38  ;;  %v7456_v26 = vld [vmem:[%s12292_s17 + $0xa8] sm:$0xff]  ;;  %v12130_v38 = vpack.c.bf16 %v7438_v57, %v7437_v47  ;;  %8835 = vmatprep.subr.bf16.mxu1 %v12114_v12  ;;  %vm12347_vm0 = vmmov %vm12345_vm13 }
 0xa4c   :  { %v9706_v47 = vld [vmem:[#allocation17 + $0x124] ss:$8 sps:$4 sm:$0xff]   ;;  %v9704_v57 = vld [vmem:[#allocation17 + $0x120] ss:$8 sps:$4 sm:$0xff]  }
 0xa4d   :  { %v6595_v0 = vrot.slane %v6587_v32, %v10730_v30  ;;  %v12079_v18 = vrot.slane %v6588_v8, %v10730_v30  ;;  %v9656_v32 = vld [vmem:[#allocation17 + $0x20] ss:$8 sps:$4 sm:$0xff]   ;;  %v12133_v8 = vpack.c.bf16 %v7456_v26, %v7455_v52  ;;  %v9709_v52 = vld [vmem:[#allocation17 + $0x134] ss:$8 sps:$4 sm:$0xff]   ;;  %v9707_v30 = vld [vmem:[#allocation17 + $0x130] ss:$8 sps:$4 sm:$0xff]  }
 0xa4e   :  { %8837 = vmatpush3.bf16.msra.mxu1 %v12130_v38  ;;  %v9710_v26 = vld [vmem:[#allocation17 + $0x140] ss:$8 sps:$4 sm:$0xff]  }
 0xa4f   :  { %v6603_v55 = vcombine.high %v6595_v0, %v6595_v0  ;;  %v6604_v22 = vcombine.high %v12079_v18, %v12079_v18  ;;  %8839 = vmatprep.subr.bf16.mxu1 %v12133_v8 }
 0xa51   :  { %6961 = vmatprep.mubr.bf16.mxu0 %v6603_v55  ;;  %v9661_v55 = vld [vmem:[#allocation17 + $0x34] ss:$8 sps:$4 sm:$0xff]  }
 0xa52   :  { %6962 = vmatmul.mubr.bf16.vlgmr.msra.gmra.mrb[28].mxu0 %v6595_v0  ;;  %v7439_v0 = vld [vmem:[%s12292_s17 + $0x20] sm:$0xff] }
 0xa53   :  { %6971 = vmatpush1.bf16.msra.mxu0 %v9602_v61  ;;  %7002 = vmatprep.mubr.bf16.mxu0 %v6604_v22  ;;  %v7457_v61 = vld [vmem:[%s12292_s17 + $0xb0] sm:$0xff] }
 0xa54   :  { %6972 = vmatprep.subr.bf16.mxu0 %v9607_v23  ;;  %v7458_v23 = vld [vmem:[%s12292_s17 + $0xb8] sm:$0xff] }
 0xa57   :  { %6973 = vmatpush1.bf16.msra.mxu0 %v9605_v6  ;;  %v9659_v6 = vld [vmem:[#allocation17 + $0x30] ss:$8 sps:$4 sm:$0xff]  }
 0xa58   :  { %6974 = vmatprep.subr.bf16.mxu0 %v9610_v36  ;;  %v12151_v36 = vpack.c.bf16 %v7458_v23, %v7457_v61  ;;  %v9719_v61 = vld [vmem:[#allocation17 + $0x170] ss:$8 sps:$4 sm:$0xff]   ;;  %v9724_v23 = vld [vmem:[#allocation17 + $0x184] ss:$8 sps:$4 sm:$0xff]  }
 0xa5b   :  { %6975 = vmatpush1.bf16.msra.mxu0 %v9608_v24  ;;  %v7441_v24 = vld [vmem:[%s12292_s17 + $0x30] sm:$0xff] }
 0xa5c   :  { %6976 = vmatprep.subr.bf16.mxu0 %v9613_v2  ;;  %v7442_v2 = vld [vmem:[%s12292_s17 + $0x38] sm:$0xff] }
 0xa5f   :  { %6977 = vmatpush1.bf16.msra.mxu0 %v9611_v41  ;;  %v9664_v41 = vld [vmem:[#allocation17 + $0x44] ss:$8 sps:$4 sm:$0xff]  }
 0xa60   :  { %6978 = vmatprep.subr.bf16.mxu0 %v9616_v13  ;;  %v7459_v13 = vld [vmem:[%s12292_s17 + $0xc0] sm:$0xff] }
 0xa63   :  { %6979 = vmatpush1.bf16.msra.mxu0 %v9614_v5  ;;  %v7460_v5 = vld [vmem:[%s12292_s17 + $0xc8] sm:$0xff] }
 0xa64   :  { %6980 = vmatprep.subr.bf16.mxu0 %v9619_v43  ;;  %v12166_v43 = vpack.c.bf16 %v7442_v2, %v7441_v24  ;;  %v9727_v24 = vld [vmem:[#allocation17 + $0x194] ss:$8 sps:$4 sm:$0xff]   ;;  %v9725_v2 = vld [vmem:[#allocation17 + $0x190] ss:$8 sps:$4 sm:$0xff]  }
 0xa67   :  { %6981 = vmatpush1.bf16.msra.mxu0 %v9617_v48  ;;  %v9662_v48 = vld [vmem:[#allocation17 + $0x40] ss:$8 sps:$4 sm:$0xff]  }
 0xa68   :  { %6982 = vmatprep.subr.bf16.mxu0 %v9622_v51  ;;  %v12169_v51 = vpack.c.bf16 %v7460_v5, %v7459_v13  ;;  %v9728_v13 = vld [vmem:[#allocation17 + $0x1a0] ss:$8 sps:$4 sm:$0xff]   ;;  %v9733_v5 = vld [vmem:[#allocation17 + $0x1b4] ss:$8 sps:$4 sm:$0xff]  }
 0xa6b   :  { %6983 = vmatpush1.bf16.msra.mxu0 %v9620_v7  ;;  %v7443_v7 = vld [vmem:[%s12292_s17 + $0x40] sm:$0xff] }
 0xa6c   :  { %6984 = vmatprep.subr.bf16.mxu0 %v9625_v63  ;;  %v7444_v63 = vld [vmem:[%s12292_s17 + $0x48] sm:$0xff] }
 0xa6f   :  { %6985 = vmatpush1.bf16.msra.mxu0 %v9623_v17  ;;  %v9667_v17 = vld [vmem:[#allocation17 + $0x54] ss:$8 sps:$4 sm:$0xff]  }
 0xa70   :  { %6986 = vmatprep.subr.bf16.mxu0 %v9628_v9  ;;  %v12178_v9 = vpack.c.bf16 %v7444_v63, %v7443_v7  ;;  %v9736_v7 = vld [vmem:[#allocation17 + $0x1c4] ss:$8 sps:$4 sm:$0xff]   ;;  %v9734_v63 = vld [vmem:[#allocation17 + $0x1c0] ss:$8 sps:$4 sm:$0xff]  }
 0xa73   :  { %6987 = vmatpush1.bf16.msra.mxu0 %v9626_v4  ;;  %v9665_v4 = vld [vmem:[#allocation17 + $0x50] ss:$8 sps:$4 sm:$0xff]  }
 0xa74   :  { %6988 = vmatprep.subr.bf16.mxu0 %v9631_v10  ;;  %v9670_v10 = vld [vmem:[#allocation17 + $0x64] ss:$8 sps:$4 sm:$0xff]  }
 0xa77   :  { %6989 = vmatpush1.bf16.msra.mxu0 %v9629_v27  ;;  %v9668_v27 = vld [vmem:[#allocation17 + $0x60] ss:$8 sps:$4 sm:$0xff]  }
 0xa78   :  { %6990 = vmatprep.subr.bf16.mxu0 %v9634_v45  ;;  %v9673_v45 = vld [vmem:[#allocation17 + $0x74] ss:$8 sps:$4 sm:$0xff]  }
 0xa7b   :  { %6991 = vmatpush1.bf16.msra.mxu0 %v9632_v60  ;;  %v9671_v60 = vld [vmem:[#allocation17 + $0x70] ss:$8 sps:$4 sm:$0xff]  }
 0xa7c   :  { %6992 = vmatprep.subr.bf16.mxu0 %v9637_v62  ;;  %v9676_v62 = vld [vmem:[#allocation17 + $0x84] ss:$8 sps:$4 sm:$0xff]  }
 0xa7f   :  { %6993 = vmatpush1.bf16.msra.mxu0 %v9635_v29  ;;  %v9674_v29 = vld [vmem:[#allocation17 + $0x80] ss:$8 sps:$4 sm:$0xff]  }
 0xa80   :  { %6994 = vmatprep.subr.bf16.mxu0 %v9640_v25  ;;  %v9679_v25 = vld [vmem:[#allocation17 + $0x94] ss:$8 sps:$4 sm:$0xff]  }
 0xa83   :  { %6995 = vmatpush1.bf16.msra.mxu0 %v9638_v54  ;;  %v9677_v54 = vld [vmem:[#allocation17 + $0x90] ss:$8 sps:$4 sm:$0xff]  }
 0xa84   :  { %6996 = vmatprep.subr.bf16.mxu0 %v9643_v50  ;;  %v9682_v50 = vld [vmem:[#allocation17 + $0xa4] ss:$8 sps:$4 sm:$0xff]  }
 0xa87   :  { %6997 = vmatpush1.bf16.msra.mxu0 %v9641_v33  ;;  %v9680_v33 = vld [vmem:[#allocation17 + $0xa0] ss:$8 sps:$4 sm:$0xff]  }
 0xa88   :  { %6998 = vmatprep.subr.bf16.mxu0 %v9646_v49  ;;  %v9685_v49 = vld [vmem:[#allocation17 + $0xb4] ss:$8 sps:$4 sm:$0xff]  }
 0xa8b   :  { %6999 = vmatpush1.bf16.msra.mxu0 %v9644_v56  ;;  %v9683_v56 = vld [vmem:[#allocation17 + $0xb0] ss:$8 sps:$4 sm:$0xff]  }
 0xa8c   :  { %7000 = vmatprep.subr.bf16.mxu0 %v9649_v14  ;;  %v9688_v14 = vld [vmem:[#allocation17 + $0xc4] ss:$8 sps:$4 sm:$0xff]  }
 0xa8f   :  { %7001 = vmatpush1.bf16.msra.mxu0 %v9647_v58  ;;  %v9686_v58 = vld [vmem:[#allocation17 + $0xc0] ss:$8 sps:$4 sm:$0xff]  }
 0xa90   :  { %7353 = vmatprep.subr.bf16.mxu0 %v9652_v37  ;;  %v9691_v37 = vld [vmem:[#allocation17 + $0xd4] ss:$8 sps:$4 sm:$0xff]  }
 0xa92   :  { %7003 = vmatmul.mubr.bf16.vlgmr.msra.gmra.mrb[28].mxu0 %v12079_v18  ;;  %v7440_v18 = vld [vmem:[%s12292_s17 + $0x28] sm:$0xff] }
 0xa93   :  { %7354 = vmatpush1.bf16.msra.mxu0 %v9650_v3  ;;  %7385 = vmatprep.mubr.bf16.mxu0 %v7027_v40  ;;  %v12148_v22 = vpack.c.bf16 %v7440_v18, %v7439_v0  ;;  %v9689_v3 = vld [vmem:[#allocation17 + $0xd0] ss:$8 sps:$4 sm:$0xff]   ;;  %v9692_v40 = vld [vmem:[#allocation17 + $0xe0] ss:$8 sps:$4 sm:$0xff]  }
 0xa94   :  { %7355 = vmatprep.subr.bf16.mxu0 %v9655_v19  ;;  %v9694_v19 = vld [vmem:[#allocation17 + $0xe4] ss:$8 sps:$4 sm:$0xff]   ;;  %v9713_v0 = vld [vmem:[#allocation17 + $0x150] ss:$8 sps:$4 sm:$0xff]   ;;  %v9716_v18 = vld [vmem:[#allocation17 + $0x160] ss:$8 sps:$4 sm:$0xff]  }
 0xa95   :  { %8841 = vmatpush3.bf16.msra.mxu1 %v12148_v22 }
 0xa96   :  { %8843 = vmatprep.subr.bf16.mxu1 %v12151_v36 }
 0xa97   :  { %7356 = vmatpush1.bf16.msra.mxu0 %v9653_v31  ;;  %v9697_v31 = vld [vmem:[#allocation17 + $0xf4] ss:$8 sps:$4 sm:$0xff]  }
 0xa98   :  { %7357 = vmatprep.subr.bf16.mxu0 %v9658_v15  ;;  %v9695_v15 = vld [vmem:[#allocation17 + $0xf0] ss:$8 sps:$4 sm:$0xff]  }
 0xa99   :  { %8845 = vmatpush3.bf16.msra.mxu1 %v12166_v43 }
 0xa9a   :  { %8847 = vmatprep.subr.bf16.mxu1 %v12169_v51 }
 0xa9b   :  { %7358 = vmatpush1.bf16.msra.mxu0 %v9656_v32  ;;  %v9715_v32 = vld [vmem:[#allocation17 + $0x154] ss:$8 sps:$4 sm:$0xff]  }
 0xa9c   :  { %7359 = vmatprep.subr.bf16.mxu0 %v9661_v55  ;;  %v9721_v55 = vld [vmem:[#allocation17 + $0x174] ss:$8 sps:$4 sm:$0xff]  }
 0xa9d   :  { %8849 = vmatpush3.bf16.msra.mxu1 %v12178_v9 }
 0xa9f   :  { %7360 = vmatpush1.bf16.msra.mxu0 %v9659_v6  ;;  %v9722_v6 = vld [vmem:[#allocation17 + $0x180] ss:$8 sps:$4 sm:$0xff]  }
 0xaa0   :  { %7361 = vmatprep.subr.bf16.mxu0 %v9664_v41  ;;  %v9730_v41 = vld [vmem:[#allocation17 + $0x1a4] ss:$8 sps:$4 sm:$0xff]  }
 0xaa3   :  { %7362 = vmatpush1.bf16.msra.mxu0 %v9662_v48  ;;  %v9731_v48 = vld [vmem:[#allocation17 + $0x1b0] ss:$8 sps:$4 sm:$0xff]  }
 0xaa4   :  { %7363 = vmatprep.subr.bf16.mxu0 %v9667_v17  ;;  %v9739_v17 = vld [vmem:[#allocation17 + $0x1d4] ss:$8 sps:$4 sm:$0xff]  }
 0xaa7   :  { %7364 = vmatpush1.bf16.msra.mxu0 %v9665_v4  ;;  %v9737_v4 = vld [vmem:[#allocation17 + $0x1d0] ss:$8 sps:$4 sm:$0xff]  }
 0xaa8   :  { %7365 = vmatprep.subr.bf16.mxu0 %v9670_v10  ;;  %v9742_v10 = vld [vmem:[#allocation17 + $0x1e4] ss:$8 sps:$4 sm:$0xff]  }
 0xaab   :  { %7366 = vmatpush1.bf16.msra.mxu0 %v9668_v27  ;;  %v9740_v27 = vld [vmem:[#allocation17 + $0x1e0] ss:$8 sps:$4 sm:$0xff]  }
 0xaac   :  { %7367 = vmatprep.subr.bf16.mxu0 %v9673_v45  ;;  %v9745_v45 = vld [vmem:[#allocation17 + $0x1f4] ss:$8 sps:$4 sm:$0xff]  }
 0xaaf   :  { %7368 = vmatpush1.bf16.msra.mxu0 %v9671_v60  ;;  %v9743_v60 = vld [vmem:[#allocation17 + $0x1f0] ss:$8 sps:$4 sm:$0xff]  }
 0xab0   :  { %7369 = vmatprep.subr.bf16.mxu0 %v9676_v62  ;;  %v7461_v62 = vld [vmem:[%s12292_s17 + $0xd0] sm:$0xff] }
 0xab3   :  { %7370 = vmatpush1.bf16.msra.mxu0 %v9674_v29  ;;  %v7462_v29 = vld [vmem:[%s12292_s17 + $0xd8] sm:$0xff] }
 0xab4   :  { %7371 = vmatprep.subr.bf16.mxu0 %v9679_v25  ;;  %v7445_v25 = vld [vmem:[%s12292_s17 + $0x50] sm:$0xff] }
 0xab7   :  { %7372 = vmatpush1.bf16.msra.mxu0 %v9677_v54  ;;  %v8850_v54 = vpack.c.bf16 %v7462_v29, %v7461_v62  ;;  %v7478_v62 = vld [vmem:[#allocation20 + $0x58] sm:$0xff] }
 0xab8   :  { %7373 = vmatprep.subr.bf16.mxu0 %v9682_v50  ;;  %v7446_v50 = vld [vmem:[%s12292_s17 + $0x58] sm:$0xff] }
 0xab9   :  { %8851 = vmatprep.subr.bf16.mxu1 %v8850_v54 }
 0xabb   :  { %7374 = vmatpush1.bf16.msra.mxu0 %v9680_v33  ;;  %v7463_v33 = vld [vmem:[%s12292_s17 + $0xe0] sm:$0xff] }
 0xabc   :  { %7375 = vmatprep.subr.bf16.mxu0 %v9685_v49  ;;  %v7464_v49 = vld [vmem:[%s12292_s17 + $0xe8] sm:$0xff] }
 0xabf   :  { %7376 = vmatpush1.bf16.msra.mxu0 %v9683_v56  ;;  %v8852_v56 = vpack.c.bf16 %v7446_v50, %v7445_v25  ;;  %v7480_v50 = vld [vmem:[#allocation20 + $0x68] sm:$0xff] }
 0xac0   :  { %7377 = vmatprep.subr.bf16.mxu0 %v9688_v14  ;;  %v8854_v14 = vpack.c.bf16 %v7464_v49, %v7463_v33  ;;  %v7482_v33 = vld [vmem:[#allocation20 + $0x78] sm:$0xff] }
 0xac1   :  { %8853 = vmatpush3.bf16.msra.mxu1 %v8852_v56 }
 0xac2   :  { %8855 = vmatprep.subr.bf16.mxu1 %v8854_v14 }
 0xac3   :  { %7378 = vmatpush1.bf16.msra.mxu0 %v9686_v58  ;;  %v7447_v58 = vld [vmem:[%s12292_s17 + $0x60] sm:$0xff] }
 0xac4   :  { %7379 = vmatprep.subr.bf16.mxu0 %v9691_v37  ;;  %v7448_v37 = vld [vmem:[%s12292_s17 + $0x68] sm:$0xff] }
 0xac7   :  { %7380 = vmatpush1.bf16.msra.mxu0 %v9689_v3  ;;  %v7465_v3 = vld [vmem:[%s12292_s17 + $0xf0] sm:$0xff] }
 0xac8   :  { %7381 = vmatprep.subr.bf16.mxu0 %v9694_v19  ;;  %v7466_v19 = vld [vmem:[%s12292_s17 + $0xf8] sm:$0xff] }
 0xacb   :  { %7382 = vmatpush1.bf16.msra.mxu0 %v9692_v40  ;;  %v8856_v40 = vpack.c.bf16 %v7448_v37, %v7447_v58  ;;  %v7481_v58 = vld [vmem:[#allocation20 + $0x70] sm:$0xff] }
 0xacc   :  { %7383 = vmatprep.subr.bf16.mxu0 %v9697_v31  ;;  %v8858_v31 = vpack.c.bf16 %v7466_v19, %v7465_v3 }
 0xacd   :  { %8857 = vmatpush3.bf16.msra.mxu1 %v8856_v40 }
 0xace   :  { %8859 = vmatprep.subr.bf16.mxu1 %v8858_v31 }
 0xacf   :  { %7384 = vmatpush1.bf16.msra.mxu0 %v9695_v15  ;;  %v7449_v15 = vld [vmem:[%s12292_s17 + $0x70] sm:$0xff] }
 0xad0   :  { %7394 = vmatprep.subr.bf16.mxu0 %v9700_v28  ;;  %v7450_v28 = vld [vmem:[%s12292_s17 + $0x78] sm:$0xff] }
 0xad2   :  { %7386 = vmatmul.mubr.bf16.vlgmr.msra.gmra.mrb[28].mxu0 %v12087_v42  ;;  %v9718_v42 = vld [vmem:[#allocation17 + $0x164] ss:$8 sps:$4 sm:$0xff]  }
 0xad3   :  { %7395 = vmatpush1.bf16.msra.mxu0 %v9698_v59  ;;  %7426 = vmatprep.mubr.bf16.mxu0 %v7028_v1 }
 0xad4   :  { %7396 = vmatprep.subr.bf16.mxu0 %v9703_v34 }
 0xad7   :  { %7397 = vmatpush1.bf16.msra.mxu0 %v9701_v46 }
 0xad8   :  { %7398 = vmatprep.subr.bf16.mxu0 %v9706_v47 }
 0xadb   :  { %7399 = vmatpush1.bf16.msra.mxu0 %v9704_v57 }
 0xadc   :  { %7400 = vmatprep.subr.bf16.mxu0 %v9709_v52 }
 0xadf   :  { %7401 = vmatpush1.bf16.msra.mxu0 %v9707_v30 }
 0xae0   :  { %7402 = vmatprep.subr.bf16.mxu0 %v9712_v39 }
 0xae3   :  { %7403 = vmatpush1.bf16.msra.mxu0 %v9710_v26 }
 0xae4   :  { %7404 = vmatprep.subr.bf16.mxu0 %v9715_v32 }
 0xae7   :  { %7405 = vmatpush1.bf16.msra.mxu0 %v9713_v0 }
 0xae8   :  { %7406 = vmatprep.subr.bf16.mxu0 %v9718_v42 }
 0xaeb   :  { %7407 = vmatpush1.bf16.msra.mxu0 %v9716_v18 }
 0xaec   :  { %7408 = vmatprep.subr.bf16.mxu0 %v9721_v55 }
 0xaef   :  { %7409 = vmatpush1.bf16.msra.mxu0 %v9719_v61 }
 0xaf0   :  { %7410 = vmatprep.subr.bf16.mxu0 %v9724_v23 }
 0xaf3   :  { %7411 = vmatpush1.bf16.msra.mxu0 %v9722_v6 }
 0xaf4   :  { %7412 = vmatprep.subr.bf16.mxu0 %v9727_v24 }
 0xaf7   :  { %7413 = vmatpush1.bf16.msra.mxu0 %v9725_v2 }
 0xaf8   :  { %7414 = vmatprep.subr.bf16.mxu0 %v9730_v41 }
 0xafb   :  { %7415 = vmatpush1.bf16.msra.mxu0 %v9728_v13 }
 0xafc   :  { %7416 = vmatprep.subr.bf16.mxu0 %v9733_v5 }
 0xaff   :  { %7417 = vmatpush1.bf16.msra.mxu0 %v9731_v48 }
 0xb00   :  { %7418 = vmatprep.subr.bf16.mxu0 %v9736_v7 }
 0xb03   :  { %7419 = vmatpush1.bf16.msra.mxu0 %v9734_v63 }
 0xb04   :  { %7420 = vmatprep.subr.bf16.mxu0 %v9739_v17  ;;  %v7472_v17 = vld [vmem:[#allocation20 + $0x28] sm:$0xff] }
 0xb07   :  { %7421 = vmatpush1.bf16.msra.mxu0 %v9737_v4 }
 0xb08   :  { %7422 = vmatprep.subr.bf16.mxu0 %v9742_v10 }
 0xb0b   :  { %7423 = vmatpush1.bf16.msra.mxu0 %v9740_v27  ;;  %v7471_v27 = vld [vmem:[#allocation20 + $0x20] sm:$0xff] }
 0xb0c   :  { %7424 = vmatprep.subr.bf16.mxu0 %v9745_v45  ;;  %v7473_v45 = vld [vmem:[#allocation20 + $0x30] sm:$0xff] }
 0xb0d   :  { %v8900_v29 = vpack.c.bf16 %v7473_v45, %v7471_v27 }
 0xb0f   :  { %7425 = vmatpush1.bf16.msra.mxu0 %v9743_v60  ;;  %v7476_v60 = vld [vmem:[#allocation20 + $0x48] sm:$0xff] }
 0xb10   :  { %v8902_v25 = vpack.c.bf16 %v7478_v62, %v7476_v60 }
 0xb12   :  { %7427 = vmatmul.mubr.bf16.vlgmr.msra.gmra.mrb[28].mxu0 %v12184_v44  ;;  %v8860_v44 = vpack.c.bf16 %v7450_v28, %v7449_v15 }
 0xb14   :  { %8861 = vmatpush3.bf16.msra.mxu1 %v8860_v44 }
 0xb15   :  { %8863 = vmatprep.subr.bf16.mxu1 %v12101_v11 }
 0xbe5   :  { %v12227_v59 = vpop.f32.mrb[28].mxu0 }
 0xbe6   :  { %v7485_v34 = vrot.slane %v12227_v59, 4  ;;  %v12230_v1 = vpop.f32.mrb[29].mxu0  ;;  %v7497_v5 = vmul.f32 %v12227_v59, %v12227_v59 }
 0xbe7   :  { %v7491_v46 = vrot.slane %v12230_v1, 4  ;;  %v7498_v47 = vmul.f32 %v12230_v1, %v12230_v1  ;;  %v7432_v57 = vpop.f32.mrb[30].mxu0 }
 0xbe8   :  { %v7486_v52 = vadd.f32 %v7485_v34, %v12227_v59  ;;  %v7433_v30 = vpop.f32.mrb[31].mxu0  ;;  %v7499_v48 = vrot.slane %v7497_v5, 4 }
 0xbe9   :  { %v7492_v39 = vadd.f32 %v7491_v46, %v12230_v1  ;;  %v7505_v26 = vrot.slane %v7498_v47, 4 }
 0xbea   :  { %v7487_v32 = vrot.slane %v7486_v52, 2  ;;  %v7500_v7 = vadd.f32 %v7499_v48, %v7497_v5 }
 0xbeb   :  { %v7493_v11 = vrot.slane %v7492_v39, 2  ;;  %v7506_v0 = vadd.f32 %v7505_v26, %v7498_v47  ;;  %v7484_v26 = vld [vmem:[%s12346_s7] sm:$0x1] }
 0xbec   :  { %v7488_v42 = vadd.f32 %v7487_v32, %v7486_v52  ;;  %v7483_v52 = vld [vmem:[%s12294_s19] sm:$0x1] }
 0xbed   :  { %v7494_v18 = vadd.f32 %v7493_v11, %v7492_v39  ;;  %v7507_v55 = vrot.slane %v7506_v0, 2 }
 0xbee   :  { %v7489_v61 = vrot.slane %v7488_v42, 1 }
 0xbef   :  { %v7495_v23 = vrot.slane %v7494_v18, 1  ;;  %v7508_v6 = vadd.f32 %v7507_v55, %v7506_v0 }
 0xbf0   :  { %v7490_v41 = vadd.f32 %v7489_v61, %v7488_v42 }
 0xbf1   :  { %v7496_v24 = vadd.f32 %v7495_v23, %v7494_v18  ;;  %v7509_v2 = vrot.slane %v7508_v6, 1 }
 0xbf3   :  { %7575 = vmatprep.mubr.f32.mxu1 %v7496_v24  ;;  %v7510_v13 = vadd.f32 %v7509_v2, %v7508_v6 }
 0xbf4   :  { %7576 = vmatmul.mubr.f32.vlgmr.msra.gmra.mrb[12].mxu1 %v7490_v41 }
 0xbf5   :  { %8865 = vmatpush3.bf16.msra.mxu1 %v12112_v20  ;;  %7647 = vmatprep.mubr.f32.mxu1 %v7510_v13  ;;  %v7501_v20 = vrot.slane %v7500_v7, 2 }
 0xbf6   :  { %8867 = vmatprep.subr.bf16.mxu1 %v12114_v12 }
 0xbf7   :  { %v7502_v12 = vadd.f32 %v7501_v20, %v7500_v7 }
 0xbf9   :  { %8869 = vmatpush3.bf16.msra.mxu1 %v12130_v38  ;;  %v7503_v38 = vrot.slane %v7502_v12, 1 }
 0xbfa   :  { %8871 = vmatprep.subr.bf16.mxu1 %v12133_v8 }
 0xbfb   :  { %v7504_v8 = vadd.f32 %v7503_v38, %v7502_v12 }
 0xbfd   :  { %8873 = vmatpush3.bf16.msra.mxu1 %v12148_v22  ;;  %v7468_v22 = vld [vmem:[#allocation20 + $0x8] sm:$0xff] }
 0xbfe   :  { %8875 = vmatprep.subr.bf16.mxu1 %v12151_v36  ;;  %v7470_v36 = vld [vmem:[#allocation20 + $0x18] sm:$0xff] }
 0xbff   :  { %v8894_v63 = vpack.c.bf16 %v7470_v36, %v7468_v22 }
 0xc01   :  { %8877 = vmatpush3.bf16.msra.mxu1 %v12166_v43  ;;  %v7467_v43 = vld [vmem:[#allocation20] sm:$0xff] }
 0xc02   :  { %8879 = vmatprep.subr.bf16.mxu1 %v12169_v51  ;;  %v7469_v51 = vld [vmem:[#allocation20 + $0x10] sm:$0xff] }
 0xc03   :  { %v8896_v4 = vpack.c.bf16 %v7469_v51, %v7467_v43 }
 0xc05   :  { %8881 = vmatpush3.bf16.msra.mxu1 %v12178_v9  ;;  %v7474_v9 = vld [vmem:[#allocation20 + $0x38] sm:$0xff] }
 0xc06   :  { %8883 = vmatprep.subr.bf16.mxu1 %v8850_v54  ;;  %v8898_v10 = vpack.c.bf16 %v7474_v9, %v7472_v17  ;;  %v7475_v54 = vld [vmem:[#allocation20 + $0x40] sm:$0xff] }
 0xc09   :  { %8885 = vmatpush3.bf16.msra.mxu1 %v8852_v56  ;;  %v8906_v56 = vpack.c.bf16 %v7482_v33, %v7480_v50 }
 0xc0a   :  { %8887 = vmatprep.subr.bf16.mxu1 %v8854_v14  ;;  %v7479_v14 = vld [vmem:[#allocation20 + $0x60] sm:$0xff] }
 0xc0b   :  { %v8908_v37 = vpack.c.bf16 %v7481_v58, %v7479_v14 }
 0xc0d   :  { %8889 = vmatpush3.bf16.msra.mxu1 %v8856_v40 }
 0xc0e   :  { %8891 = vmatprep.subr.bf16.mxu1 %v8858_v31 }
 0xc11   :  { %8893 = vmatpush3.bf16.msra.mxu1 %v8860_v44 }
 0xc12   :  { %8895 = vmatprep.subr.bf16.mxu1 %v8894_v63 }
 0xc14   :  { %7648 = vmatmul.mubr.f32.vlgmr.msra.gmra.mrb[14].mxu1 %v7504_v8 }
 0xc15   :  { %7736 = vmatprep.mubr.f32.mxu1 %v10007_v35  ;;  %8897 = vmatpush1.bf16.msra.mxu1 %v8896_v4  ;;  %v7477_v35 = vld [vmem:[#allocation20 + $0x50] sm:$0xff] }
 0xc16   :  { %8899 = vmatprep.subr.bf16.mxu1 %v8898_v10  ;;  %v8904_v49 = vpack.c.bf16 %v7477_v35, %v7475_v54 }
 0xc19   :  { %8901 = vmatpush1.bf16.msra.mxu1 %v8900_v29 }
 0xc1a   :  { %8903 = vmatprep.subr.bf16.mxu1 %v8902_v25  ;;  %v12349_v25 = vlaneseq }
 0xc1c   :  { %v7834_v54 = vand.u32 127, %v12349_v25 }
 0xc1d   :  { %8905 = vmatpush1.bf16.msra.mxu1 %v8904_v49 }
 0xc1e   :  { %8907 = vmatprep.subr.bf16.mxu1 %v8906_v56  ;;  %v7837_v50 = vsub.s32 %v7834_v54, %v10273_v16 }
 0xc21   :  { %8909 = vmatpush1.bf16.msra.mxu1 %v8908_v37 }
 0xcc7   :  { %v8652_v3 = vpop.f32.mrb[12].mxu1 }
 0xcc8   :  { %v8653_v19 = vpop.f32.mrb[13].mxu1 }
 0xcc9   :  { %v8654_v40 = vadd.f32 %v8653_v19, %v8652_v3 }
 0xccb   :  { %v7582_v31 = vmul.f32 0.03125, %v8654_v40 }
 0xccd   :  { %v7654_v34 = vmul.f32 %v7582_v31, %v7582_v31 }
 0xce7   :  { %v8687_v15 = vpop.f32.mrb[14].mxu1 }
 0xce8   :  { %v8688_v28 = vpop.f32.mrb[15].mxu1 }
 0xce9   :  { %v8689_v44 = vadd.f32 %v8688_v28, %v8687_v15 }
 0xceb   :  { %v7653_v46 = vmul.f32 0.03125, %v8689_v44 }
 0xced   :  { %v7655_v47 = vsub.f32 %v7653_v46, %v7654_v34 }
 0xcef   :  { %v7656_v57 = vadd.f32 1e-05, %v7655_v47 }
 0xcf1   :  { %9750 = vrsqrt.f32 %v7656_v57 }
 0xcfb   :  { %v9751_v30 = vpop.eup %9750 }
 0xcfc   :  { %v7658_v39 = vmul.f32 %v9751_v30, %v7483_v52 }
 0xcfe   :  { %v7659_v32 = vmul.f32 %v7658_v39, %v7582_v31 }
 0xd00   :  { %v7660_v11 = vsub.f32 %v7484_v26, %v7659_v32 }
 0xd02   :  { %v7665_v0 = vrot.slane %v7660_v11, %v11550_v53 }
 0xd04   :  { %v7667_v42 = vsel %vm12347_vm0, %v7658_v39, %v7665_v0 }
 0xd05   :  { %8455 = vmatmul.mubr.msk.f32.vlgmr.msra.gmra.mrb[16].mxu1 %vm7668_vm15, %v7667_v42 }
 0xdd8   :  { %v7738_v18 = vpop.f32.mrb[16].mxu1 }
 0xdd9   :  { %v7746_v55 = vrot.slane %v7738_v18, %v11550_v53  ;;  %v7740_v61 = vpop.f32.mrb[17].mxu1  ;;  %v7756_v24 = vrot.slane %v7738_v18, %v11571_v21 }
 0xdda   :  { %v7750_v23 = vrot.slane %v7740_v61, %v11550_v53  ;;  %v7760_v41 = vrot.slane %v7740_v61, %v11571_v21  ;;  %v7807_v21 = vld [vmem:[%s12348_s15] sm:$0xff] }
 0xddb   :  { %v7751_v6 = vmul.f32 %v7746_v55, %v12227_v59 }
 0xddc   :  { %v7752_v2 = vmul.f32 %v7750_v23, %v12230_v1 }
 0xddd   :  { %v7761_v13 = vadd.f32 %v7756_v24, %v7751_v6 }
 0xdde   :  { %v7762_v5 = vadd.f32 %v7760_v41, %v7752_v2 }
 0xddf   :  { %vm7763_vm3 = vcmp.ge.f32.partialorder %v7761_v13, 0.0  ;;  %v7765_v48 = vmul.f32 0.2, %v7761_v13 }
 0xde0   :  { %vm7764_vm4 = vcmp.ge.f32.partialorder %v7762_v5, 0.0  ;;  %v7766_v7 = vmul.f32 0.2, %v7762_v5 }
 0xde1   :  { %v7767_v20 = vsel %vm7763_vm3, %v7761_v13, %v7765_v48 }
 0xde2   :  { %v7768_v12 = vsel %vm7764_vm4, %v7762_v5, %v7766_v7 }
 0xde3   :  { %v7771_v38 = vcombine.low %v7767_v20, %v7768_v12  ;;  %v7772_v8 = vcombine.high %v7767_v20, %v7768_v12  ;;  %v8456_v22 = vcombine.low %v7768_v12, %v7768_v12  ;;  %v8457_v53 = vcombine.high %v7768_v12, %v7768_v12 }
 0xde5   :  { %v8458_v36 = vpack.c.bf16 %v8456_v22, %v7771_v38  ;;  %v8459_v59 = vpack.c.bf16 %v8457_v53, %v7772_v8 }
 0xde7   :  { %8460 = vst.sshfl [vmem:[#allocation5] sm:$0x33 pattern:$0x76325410] %v8458_v36 }
 0xde8   :  { %8461 = vst.sshfl [vmem:[#allocation5 + $0x4] sm:$0x33 pattern:$0x76325410] %v8459_v59 }
 0xdef   :  { %v8477_v1 = vld [vmem:[#allocation5] sm:$0xff]  }
 0xdf0   :  { %v8478_v43 = vunpack.c.l.bf16 %v8477_v1  ;;  %v8479_v63 = vunpack.c.h.bf16 %v8477_v1 }
 0xdf2   :  { %v7812_v51 = vmul.f32 %v8478_v43, %v7807_v21  ;;  %v7813_v17 = vmul.f32 %v8479_v63, %v7807_v21 }
 0xdf4   :  { %v7816_v9 = vcombine.high %v7812_v51, %v7812_v51  ;;  %v7817_v4 = vcombine.high %v7813_v17, %v7813_v17  ;;  %v7821_v10 = vsel %vm4906_vm5, %v7812_v51, 0.0  ;;  %v7826_v62 = vsel %vm4906_vm5, %v7813_v17, 0.0 }
 0xdf6   :  { %v7822_v27 = vsel %vm4906_vm5, %v7816_v9, 0.0  ;;  %v7827_v60 = vsel %vm4906_vm5, %v7817_v4, 0.0  ;;  %vm7856_vm5 = vcmask 1024  }
 0xdf7   :  { %v7823_v45 = vadd.f32 %v7822_v27, %v7821_v10  ;;  %v7828_v29 = vadd.f32 %v7827_v60, %v7826_v62 }
 0xdf9   :  { %7824 = vadd.xlane.f32.xlu0 %v7823_v45 }
 0xdfd   :  { %7829 = vadd.xlane.f32.xlu0 %v7828_v29 }
 0xe86   :  { %v7825_v35 = vpop.xlane.xlu0 %7824 }
 0xe87   :  { %v7838_v49 = vrot.slane %v7825_v35, %v7837_v50 }
 0xe8a   :  { %v7830_v33 = vpop.xlane.xlu0 %7829 }
 0xe8b   :  { %v7842_v56 = vrot.slane %v7830_v33, %v7837_v50 }
 0xe8d   :  { %v7844_v14 = vsel %vm7843_vm14, %v7842_v56, %v7838_v49 }
 0xe8e   :  { %v7847_v58 = vsel %vm7846_vm8, %v7844_v14, 0.0 }
 0xe8f   :  { %7848 = vadd.xlane.f32.xlu1 %v7847_v58 }
 0xf1c   :  { %v7849_v37 = vpop.xlane.xlu1 %7848 }
 0xf1d   :  { %v7850_v3 = vsub.f32 0.0, %v7849_v37 }
 0xf1f   :  { %v7851_v19 = vmul.f32 1.442695, %v7850_v3 }
 0xf21   :  { %9752 = vpow2.f32 %v7851_v19 }
 0xf2b   :  { %v9753_v40 = vpop.eup %9752 }
 0xf2c   :  { %v7853_v31 = vadd.f32 1.0, %v9753_v40 }
 0xf2e   :  { %9754 = vrcp.f32 %v7853_v31 }
 0xf38   :  { %v9755_v15 = vpop.eup %9754 }
 0xf39   :  { %7857 = vst.msk [vmem:[%s12350_s30] sm:$0x3] %vm7856_vm5, %v9755_v15 }
 0xf3a   :  { %7862 = vsyncpa [#allocation7], 1 }
 0xf3b   :  { %7863 = vsyncpa [#allocation9], 1 }
 0xf3c   :  { %7864 = vsyncpa [#allocation12], 1 }
 0xf3d   :  { %7865 = vsyncpa [#allocation15], 1 }
 0xf3e   :  { %7866 = vsyncpa [#allocation18], 1 }
 0xf3f   :  { %7867 = vsyncpa [#allocation21], 1 }

</bundles_post_ra>
